<compile_context>
chip_gen: v5e
topology: v5e:2x2
jax: 0.10.0
libtpu: 0.0.40
codegen_flags: <defaults>
</compile_context>

<pallas_src>
import functools
import math

import numpy as np
import jax
import jax.numpy as jnp
from jax import lax
from jax.experimental import pallas as pl
from jax.experimental.pallas import tpu as pltpu


# ----------------------------------------------------------------------------- helpers
def _round_up(x, m):
    return ((x + m - 1) // m) * m


def _gelu(x, approx):
    if approx:
        # tanh approximation -> EUP slot (nearly free on v6e/v7x); small
        # numerics delta vs torch.nn.GELU()'s exact erf, so off by default.
        return jax.nn.gelu(x, approximate=True)
    return 0.5 * x * (1.0 + lax.erf(x * (1.0 / math.sqrt(2.0))))


def _ln_f32(x, gamma, beta, eps):
    mu = jnp.mean(x, axis=-1, keepdims=True)
    var = jnp.mean(jnp.square(x - mu), axis=-1, keepdims=True)
    return (x - mu) * lax.rsqrt(var + eps) * gamma + beta


# --------------------------------------------------------- Buffered(1) capability probe
_SINGLE_BUFFER_OK = None


def _probe_copy_kernel(x_ref, o_ref):
    o_ref[...] = x_ref[...]


def _single_buffer_ok():
    """One-time probe: does this Pallas build accept pipeline_mode=pl.Buffered(1)
    (single-buffered, grid-invariant operands)?  Fall back to default double
    buffering otherwise so the main kernels always compile."""
    global _SINGLE_BUFFER_OK
    if _SINGLE_BUFFER_OK is None:
        try:
            fn = pl.pallas_call(
                _probe_copy_kernel,
                out_shape=jax.ShapeDtypeStruct((16, 128), jnp.float32),
                grid_spec=pltpu.PrefetchScalarGridSpec(
                    num_scalar_prefetch=0,
                    grid=(2,),
                    in_specs=[pl.BlockSpec((8, 128), lambda i: (0, 0),
                                           pipeline_mode=pl.Buffered(1))],
                    out_specs=pl.BlockSpec((8, 128), lambda i: (i, 0)),
                ),
            )
            jax.block_until_ready(fn(jnp.ones((8, 128), jnp.float32)))
            _SINGLE_BUFFER_OK = True
        except Exception:
            _SINGLE_BUFFER_OK = False
    return _SINGLE_BUFFER_OK


def _resident_spec(shape, index_map):
    """BlockSpec for an operand whose block index never changes.  Single-buffer
    it when supported (double buffering a resident operand only wastes VMEM)."""
    if _single_buffer_ok():
        return pl.BlockSpec(shape, index_map, pipeline_mode=pl.Buffered(1))
    return pl.BlockSpec(shape, index_map)


# --------------------------------------------------------------------- MLP kernel bodies
def _mlp_kernel_resident(x_ref, gamma_ref, beta_ref, w1_ref, b1_ref, w2_ref,
                         b2_ref, o_ref, *, fuse_ln_residual, ln_eps, approx_gelu):
    """Full-weight-residency path: grid = (row_tiles,), weights fetched once."""
    xf = x_ref[...].astype(jnp.float32)
    if fuse_ln_residual:
        xn = _ln_f32(xf, gamma_ref[...].astype(jnp.float32),
                     beta_ref[...].astype(jnp.float32), ln_eps)
    else:
        xn = xf
    # Linear(dim -> 4*dim): bf16 MXU matmul, f32 accumulation.
    h = jnp.dot(xn.astype(w1_ref.dtype), w1_ref[...],
                preferred_element_type=jnp.float32)
    h = _gelu(h + b1_ref[...].astype(jnp.float32), approx_gelu)
    # TODO(synk): Dropout(0.1) is identity (eval semantics); training mode would
    #             need a pltpu.prng_seed / pltpu.prng_random_bits mask.
    out = jnp.dot(h.astype(w2_ref.dtype), w2_ref[...],
                  preferred_element_type=jnp.float32)
    out = out + b2_ref[...].astype(jnp.float32)
    if fuse_ln_residual:
        out = out + xf                      # second residual branch of Block.forward
    o_ref[...] = out.astype(o_ref.dtype)


def _mlp_kernel_strips(x_ref, gamma_ref, beta_ref, w1_ref, b1_ref, w2_ref,
                       b2_ref, o_ref, xn_ref, acc_ref, *, fuse_ln_residual,
                       ln_eps, approx_gelu):
    """Fallback for huge weights: grid = (row_tiles, hidden_strips)."""
    h_idx = pl.program_id(1)

    @pl.when(h_idx == 0)
    def _init():
        xf = x_ref[...].astype(jnp.float32)
        if fuse_ln_residual:
            xn = _ln_f32(xf, gamma_ref[...].astype(jnp.float32),
                         beta_ref[...].astype(jnp.float32), ln_eps)
        else:
            xn = xf
        xn_ref[...] = xn.astype(xn_ref.dtype)
        acc_ref[...] = jnp.zeros_like(acc_ref)

    h = jnp.dot(xn_ref[...], w1_ref[...], preferred_element_type=jnp.float32)
    h = _gelu(h + b1_ref[...].astype(jnp.float32), approx_gelu)
    acc_ref[...] += jnp.dot(h.astype(w2_ref.dtype), w2_ref[...],
                            preferred_element_type=jnp.float32)

    @pl.when(h_idx == pl.num_programs(1) - 1)
    def _finalize():
        out = acc_ref[...] + b2_ref[...].astype(jnp.float32)
        if fuse_ln_residual:
            out = out + x_ref[...].astype(jnp.float32)
        o_ref[...] = out.astype(o_ref.dtype)


# ----------------------------------------------------------------------- tiling policies
def _pick_row_tile(n, requested, min_row_tiles):
    """16-aligned (bf16 sublane pack), 256-aligned when large, capped so at
    least `min_row_tiles` row blocks exist (both v7x TensorCores get work)."""
    rt = int(requested)
    rt = min(rt, _round_up(n, 16))
    if min_row_tiles > 1 and n > 16 * min_row_tiles:
        rt = min(rt, _round_up(pl.cdiv(n, min_row_tiles), 16))
    if rt >= 256:
        rt = (rt // 256) * 256
    else:
        rt = max(16, (rt // 16) * 16)
    if rt >= n:
        rt = n          # single full-extent block: no divisibility constraint
    return rt


def _auto_h_tile(dim, hidden, cd_bytes, budget_bytes):
    """Full weight residency when both matmul weights fit the budget; otherwise
    the largest power-of-two fraction of hidden that is >= 512 wide (>=1 KiB
    DMA segments) whose double-buffered strip weights fit."""
    if 2 * dim * hidden * cd_bytes <= budget_bytes:
        return hidden
    h_tile = hidden
    while (h_tile % 2 == 0 and h_tile // 2 >= 512
           and 2 * (2 * dim * h_tile * cd_bytes) > budget_bytes):
        h_tile //= 2
    return h_tile


# ------------------------------------------------------------------- pallas_call builder
_MLP_CACHE = {}


def _build_mlp_call(*, n, dim, hidden, row_tile, h_tile, fuse_ln_residual,
                    in_dtype, out_dtype, compute_dtype, ln_eps, approx_gelu):
    n_tiles = pl.cdiv(n, row_tile)
    h_tiles = hidden // h_tile
    resident = h_tiles == 1
    cd_bytes = np.dtype(compute_dtype).itemsize
    in_bytes = np.dtype(in_dtype).itemsize
    out_bytes = np.dtype(out_dtype).itemsize

    # Weights are streamed once when resident, n_tiles times when strip-mined.
    weight_stream = 1 if resident else n_tiles
    cost = pl.CostEstimate(
        flops=4 * n * dim * hidden,
        transcendentals=n * hidden,
        bytes_accessed=int(n * dim * (in_bytes + out_bytes)
                           + 2 * dim * hidden * cd_bytes * weight_stream
                           + (hidden + 3 * dim) * 4),
    )

    weight_bufs = 1 if (resident and _single_buffer_ok()) else 2
    need = (2 * dim * h_tile * cd_bytes * weight_bufs        # w1 + w2 (per strip)
            + 2 * row_tile * dim * in_bytes                  # x (double buffered)
            + 2 * row_tile * dim * out_bytes                 # out
            + 2 * (hidden + 3 * dim) * 4                     # biases + LN params
            + (0 if resident else row_tile * dim * (cd_bytes + 4))  # xn + acc scratch
            + 3 * row_tile * h_tile * 4)                     # f32 hidden temporaries
    vmem_limit = int(min(max(2 * need, 32 << 20), 64 << 20))
    vmem_limit = max(vmem_limit, need + (8 << 20))

    if resident:
        kernel = functools.partial(_mlp_kernel_resident,
                                   fuse_ln_residual=fuse_ln_residual,
                                   ln_eps=ln_eps, approx_gelu=approx_gelu)
        grid = (n_tiles,)

        def cspec(shape):
            return _resident_spec(shape, lambda i: (0,) * len(shape))

        in_specs = [
            pl.BlockSpec((row_tile, dim), lambda i: (i, 0)),   # x tile
            cspec((1, dim)),                                   # ln gamma
            cspec((1, dim)),                                   # ln beta
            cspec((dim, hidden)),                              # w1 (resident)
            cspec((1, hidden)),                                # b1
            cspec((hidden, dim)),                              # w2 (resident)
            cspec((1, dim)),                                   # b2
        ]
        out_specs = pl.BlockSpec((row_tile, dim), lambda i: (i, 0))
        scratch = []
        dims_sem = ("parallel",)
    else:
        kernel = functools.partial(_mlp_kernel_strips,
                                   fuse_ln_residual=fuse_ln_residual,
                                   ln_eps=ln_eps, approx_gelu=approx_gelu)
        grid = (n_tiles, h_tiles)
        in_specs = [
            pl.BlockSpec((row_tile, dim), lambda i, h: (i, 0)),
            pl.BlockSpec((1, dim), lambda i, h: (0, 0)),
            pl.BlockSpec((1, dim), lambda i, h: (0, 0)),
            pl.BlockSpec((dim, h_tile), lambda i, h: (0, h)),
            pl.BlockSpec((1, h_tile), lambda i, h: (0, h)),
            pl.BlockSpec((h_tile, dim), lambda i, h: (h, 0)),
            pl.BlockSpec((1, dim), lambda i, h: (0, 0)),
        ]
        out_specs = pl.BlockSpec((row_tile, dim), lambda i, h: (i, 0))
        scratch = [pltpu.VMEM((row_tile, dim), compute_dtype),
                   pltpu.VMEM((row_tile, dim), jnp.float32)]
        dims_sem = ("parallel", "arbitrary")

    call = pl.pallas_call(
        kernel,
        out_shape=jax.ShapeDtypeStruct((n, dim), out_dtype),
        grid_spec=pltpu.PrefetchScalarGridSpec(
            num_scalar_prefetch=0, grid=grid,
            in_specs=in_specs, out_specs=out_specs, scratch_shapes=scratch),
        compiler_params=pltpu.CompilerParams(
            dimension_semantics=dims_sem, vmem_limit_bytes=vmem_limit),
        cost_estimate=cost,
    )
    return jax.jit(call)


def mlp_pallas(x2d, params, *, fuse_ln_residual=False, row_tile=None, h_tile=None,
               compute_dtype=jnp.bfloat16, out_dtype=None, ln_eps=1e-5,
               approx_gelu=False, weight_residency_bytes=40 << 20,
               min_row_tiles=2):
    """x2d: (N, dim).  Computes MLP(x) or, if fuse_ln_residual, x + MLP(LN(x)).
    Weights are (in_features, out_features); transpose PyTorch weights once."""
    n, dim = x2d.shape
    hidden = params["w1"].shape[1]
    out_dt = np.dtype(out_dtype) if out_dtype is not None else np.dtype(x2d.dtype)
    cd = np.dtype(compute_dtype)

    if h_tile is None:
        h_tile = _auto_h_tile(dim, hidden, cd.itemsize, weight_residency_bytes)
    else:
        h_tile = min(int(h_tile), hidden)
        if hidden % h_tile != 0 or h_tile % 128 != 0:
            h_tile = hidden
    h_tiles = hidden // h_tile

    if row_tile is None:
        # Resident weights: 512 rows amortize the ~0.35us/step overhead.
        # Strip-mined weights are re-streamed per row tile -> use bigger tiles.
        row_tile = 512 if h_tiles == 1 else 1024
    row_tile = _pick_row_tile(n, row_tile, min_row_tiles)

    key = (n, dim, hidden, row_tile, h_tile, bool(fuse_ln_residual),
           str(np.dtype(x2d.dtype)), str(out_dt), str(cd), float(ln_eps),
           bool(approx_gelu))
    fn = _MLP_CACHE.get(key)
    if fn is None:
        fn = _build_mlp_call(n=n, dim=dim, hidden=hidden, row_tile=row_tile,
                             h_tile=h_tile, fuse_ln_residual=fuse_ln_residual,
                             in_dtype=np.dtype(x2d.dtype), out_dtype=out_dt,
                             compute_dtype=cd, ln_eps=ln_eps,
                             approx_gelu=approx_gelu)
        _MLP_CACHE[key] = fn

    gamma = params.get("ln_gamma", jnp.ones((dim,), jnp.float32))
    beta = params.get("ln_beta", jnp.zeros((dim,), jnp.float32))
    gamma = gamma.reshape(1, dim).astype(jnp.float32)
    beta = beta.reshape(1, dim).astype(jnp.float32)
    w1 = params["w1"].astype(cd)
    w2 = params["w2"].astype(cd)
    b1 = params["b1"].reshape(1, hidden).astype(jnp.float32)
    b2 = params["b2"].reshape(1, dim).astype(jnp.float32)
    return fn(x2d, gamma, beta, w1, b1, w2, b2)


def mlp_forward(x_bsd, params, **kw):
    """(batch, seq, dim) -> (batch, seq, dim); matches MLP.forward (eval mode)."""
    b, s, d = x_bsd.shape
    return mlp_pallas(x_bsd.reshape(b * s, d), params,
                      fuse_ln_residual=False, **kw).reshape(b, s, d)


def block_mlp_forward(x_bsd, params, **kw):
    """Fused x + MLP(LayerNorm(x)) -- the MLP residual branch of Block.forward."""
    b, s, d = x_bsd.shape
    return mlp_pallas(x_bsd.reshape(b * s, d), params,
                      fuse_ln_residual=True, **kw).reshape(b, s, d)


# ------------------------------------------------------------------- attention core kernel
_ATTN_CACHE = {}


def _attn_kernel(q_ref, k_ref, v_ref, o_ref, *, scale):
    q = q_ref[0].astype(jnp.float32)
    k = k_ref[0].astype(jnp.float32)
    v = v_ref[0].astype(jnp.float32)
    s = lax.dot_general(q, k, (((1,), (1,)), ((), ())),
                        preferred_element_type=jnp.float32) * scale
    s = s - jnp.max(s, axis=-1, keepdims=True)
    p = jnp.exp(s)
    p = p / jnp.sum(p, axis=-1, keepdims=True)
    # TODO(synk): attention-prob Dropout(0.1) + attention_map capture omitted (eval).
    o_ref[0] = jnp.dot(p, v, preferred_element_type=jnp.float32).astype(o_ref.dtype)


def _build_attn_call(*, bh, t, d, dtype):
    kernel = functools.partial(_attn_kernel, scale=1.0 / math.sqrt(d))
    call = pl.pallas_call(
        kernel,
        out_shape=jax.ShapeDtypeStruct((bh, t, d), dtype),
        grid_spec=pltpu.PrefetchScalarGridSpec(
            num_scalar_prefetch=0, grid=(bh,),
            in_specs=[pl.BlockSpec((1, t, d), lambda i: (i, 0, 0)),
                      pl.BlockSpec((1, t, d), lambda i: (i, 0, 0)),
                      pl.BlockSpec((1, t, d), lambda i: (i, 0, 0))],
            out_specs=pl.BlockSpec((1, t, d), lambda i: (i, 0, 0))),
        compiler_params=pltpu.CompilerParams(dimension_semantics=("parallel",)),
    )
    return jax.jit(call)


def attention_core_pallas(q, k, v):
    """softmax(q @ k^T / sqrt(d)) @ v; q/k/v: (B, H, T, D)."""
    b, h, t, d = q.shape
    key = (b * h, t, d, str(np.dtype(q.dtype)))
    fn = _ATTN_CACHE.get(key)
    if fn is None:
        fn = _build_attn_call(bh=b * h, t=t, d=d, dtype=np.dtype(q.dtype))
        _ATTN_CACHE[key] = fn
    out = fn(q.reshape(b * h, t, d), k.reshape(b * h, t, d), v.reshape(b * h, t, d))
    return out.reshape(b, h, t, d)


# ------------------------------------------------------------ full VisionTransformer glue
def _conv2d(x, w, b, *, stride, padding, groups=1):
    # TODO(synk): conv layers (patch embedding, grouped q/k/v) left to XLA conv.
    y = lax.conv_general_dilated(
        x, w, window_strides=(stride, stride),
        padding=[(padding, padding), (padding, padding)],
        dimension_numbers=("NCHW", "OIHW", "NCHW"),
        feature_group_count=groups)
    return y + b.reshape(1, -1, 1, 1)


def _bn2d_eval(x, p, eps=1e-5):
    # BatchNorm2d, eval mode (running statistics folded into scale/shift).
    scale = p["bn_gamma"] / jnp.sqrt(p["bn_var"] + eps)
    shift = p["bn_beta"] - p["bn_mean"] * scale
    return x * scale.reshape(1, -1, 1, 1) + shift.reshape(1, -1, 1, 1)


def _layer_norm(x, gamma, beta, eps=1e-5):
    mu = jnp.mean(x, axis=-1, keepdims=True)
    var = jnp.mean(jnp.square(x - mu), axis=-1, keepdims=True)
    return (x - mu) * lax.rsqrt(var + eps) * gamma + beta


def _mlp_reference(x, params):
    h = jnp.dot(x, params["w1"], precision=lax.Precision.HIGHEST) + params["b1"]
    h = _gelu(h, False)
    return jnp.dot(h, params["w2"], precision=lax.Precision.HIGHEST) + params["b2"]


def _block_mlp_reference(x, params, eps=1e-5):
    xn = _layer_norm(x, params["ln_gamma"], params["ln_beta"], eps)
    return x + _mlp_reference(xn, params)


def mhsa_forward(x, mp, *, num_heads, with_cls_token, use_pallas):
    B, T, C = x.shape
    if with_cls_token:
        cls_tok, tokens = x[:, :1, :], x[:, 1:, :]
    else:
        cls_tok, tokens = None, x
    hw = tokens.shape[1]
    side = int(round(math.sqrt(hw)))
    img = tokens.transpose(0, 2, 1).reshape(B, C, side, side)

    def proj(pp):
        y = _conv2d(img, pp["w"], pp["b"], stride=1, padding=1, groups=num_heads)
        y = _bn2d_eval(y, pp)
        return y.reshape(B, C, hw).transpose(0, 2, 1)   # 'b c h w -> b (h w) c'

    q, k, v = proj(mp["q"]), proj(mp["k"]), proj(mp["v"])
    if with_cls_token:
        q = jnp.concatenate([cls_tok, q], axis=1)
        k = jnp.concatenate([cls_tok, k], axis=1)
        v = jnp.concatenate([cls_tok, v], axis=1)
    head_dim = C // num_heads

    def split_heads(t):
        return t.reshape(B, -1, num_heads, head_dim).transpose(0, 2, 1, 3)

    qh, kh, vh = split_heads(q), split_heads(k), split_heads(v)
    if use_pallas:
        oh = attention_core_pallas(qh, kh, vh)
    else:
        s = jnp.einsum("bhtd,bhsd->bhts", qh, kh,
                       precision=lax.Precision.HIGHEST) / math.sqrt(head_dim)
        a = jax.nn.softmax(s, axis=-1)
        oh = jnp.einsum("bhts,bhsd->bhtd", a, vh, precision=lax.Precision.HIGHEST)
    return oh.transpose(0, 2, 1, 3).reshape(B, -1, C)


def block_forward(x, p, *, num_heads, with_cls_token, use_pallas):
    # x = x + Dropout(mhsa(norm1(x)))   (Dropout == identity in eval mode)
    xn1 = _layer_norm(x, p["norm1_gamma"], p["norm1_beta"])
    x = x + mhsa_forward(xn1, p["mhsa"], num_heads=num_heads,
                         with_cls_token=with_cls_token, use_pallas=use_pallas)
    # x = x + Dropout(MLP(norm2(x)))  -- fused LN+MLP+residual Pallas kernel
    if use_pallas:
        B, T, C = x.shape
        mlp_p = dict(p["mlp"])
        mlp_p["ln_gamma"] = p["norm2_gamma"]
        mlp_p["ln_beta"] = p["norm2_beta"]
        x = mlp_pallas(x.reshape(B * T, C), mlp_p,
                       fuse_ln_residual=True).reshape(B, T, C)
    else:
        xn2 = _layer_norm(x, p["norm2_gamma"], p["norm2_beta"])
        x = x + _mlp_reference(xn2, p["mlp"])
    return x


def vit_forward(x_img, params, *, num_heads, cls_token, stride, padding,
                use_pallas=True):
    """VisionTransformer.forward -> last_hidden_state (eval-mode semantics)."""
    B = x_img.shape[0]
    emb = params["embed"]
    y = _conv2d(x_img, emb["w"], emb["b"], stride=stride, padding=padding)
    C, Ho, Wo = y.shape[1], y.shape[2], y.shape[3]
    y = y.reshape(B, C, Ho * Wo).transpose(0, 2, 1)
    y = _layer_norm(y, emb["ln_gamma"], emb["ln_beta"])
    if cls_token:
        tok = jnp.broadcast_to(params["cls_token"], (B, 1, C))
        y = jnp.concatenate([tok, y], axis=1)
    for p in params["layers"]:
        y = block_forward(y, p, num_heads=num_heads, with_cls_token=cls_token,
                          use_pallas=use_pallas)
    if not cls_token:
        y = y.transpose(0, 2, 1).reshape(B, C, Ho, Wo)
    # TODO(synk): output_hidden_states / output_attentions bookkeeping omitted.
    return y


# ----------------------------------------------------------------------- parameter init
def init_mlp_params(key, dim, dtype=jnp.float32):
    hidden = 4 * dim
    ks = jax.random.split(key, 6)
    lim1 = 1.0 / math.sqrt(dim)
    lim2 = 1.0 / math.sqrt(hidden)
    return {
        "w1": jax.random.uniform(ks[0], (dim, hidden), dtype, -lim1, lim1),
        "b1": jax.random.uniform(ks[1], (hidden,), dtype, -lim1, lim1),
        "w2": jax.random.uniform(ks[2], (hidden, dim), dtype, -lim2, lim2),
        "b2": jax.random.uniform(ks[3], (dim,), dtype, -lim2, lim2),
        "ln_gamma": 1.0 + 0.1 * jax.random.normal(ks[4], (dim,), dtype),
        "ln_beta": 0.1 * jax.random.normal(ks[5], (dim,), dtype),
    }


def init_vit_params(key, *, depth, embed_dim, num_heads, patch_size, in_ch,
                    cls_token):
    def u(k, shape, fan_in):
        lim = 1.0 / math.sqrt(fan_in)
        return jax.random.uniform(k, shape, jnp.float32, -lim, lim)

    keys = jax.random.split(key, 2 + depth)
    ek = jax.random.split(keys[0], 4)
    fan_e = in_ch * patch_size * patch_size
    params = {
        "embed": {
            "w": u(ek[0], (embed_dim, in_ch, patch_size, patch_size), fan_e),
            "b": u(ek[1], (embed_dim,), fan_e),
            "ln_gamma": 1.0 + 0.05 * jax.random.normal(ek[2], (embed_dim,)),
            "ln_beta": 0.05 * jax.random.normal(ek[3], (embed_dim,)),
        },
        "layers": [],
    }
    if cls_token:
        params["cls_token"] = jax.random.normal(keys[1], (1, 1, embed_dim),
                                                jnp.float32)
    hidden = 4 * embed_dim
    fan_qkv = (embed_dim // num_heads) * 9
    for li in range(depth):
        lk = iter(jax.random.split(keys[2 + li], 32))

        def conv_bn():
            return {
                "w": u(next(lk), (embed_dim, embed_dim // num_heads, 3, 3), fan_qkv),
                "b": u(next(lk), (embed_dim,), fan_qkv),
                "bn_gamma": 1.0 + 0.05 * jax.random.normal(next(lk), (embed_dim,)),
                "bn_beta": 0.05 * jax.random.normal(next(lk), (embed_dim,)),
                "bn_mean": 0.05 * jax.random.normal(next(lk), (embed_dim,)),
                "bn_var": 1.0 + 0.5 * jax.random.uniform(next(lk), (embed_dim,)),
            }

        layer = {
            "norm1_gamma": 1.0 + 0.05 * jax.random.normal(next(lk), (embed_dim,)),
            "norm1_beta": 0.05 * jax.random.normal(next(lk), (embed_dim,)),
            "norm2_gamma": 1.0 + 0.05 * jax.random.normal(next(lk), (embed_dim,)),
            "norm2_beta": 0.05 * jax.random.normal(next(lk), (embed_dim,)),
            "mhsa": {"q": conv_bn(), "k": conv_bn(), "v": conv_bn()},
            "mlp": {
                "w1": u(next(lk), (embed_dim, hidden), embed_dim),
                "b1": u(next(lk), (hidden,), embed_dim),
                "w2": u(next(lk), (hidden, embed_dim), hidden),
                "b2": u(next(lk), (embed_dim,), hidden),
            },
        }
        params["layers"].append(layer)
    return params


def _rel_err(y, ref):
    y = y.astype(jnp.float32)
    ref = ref.astype(jnp.float32)
    return float(jnp.linalg.norm(y - ref) / (jnp.linalg.norm(ref) + 1e-12))


# --------------------------------------------------------------------------------- main
if __name__ == "__main__":
    key = jax.random.PRNGKey(0)
    k_tok, k_mlp, k_img, k_vit = jax.random.split(key, 4)

    # ---- standalone MLP-branch checks (the kernel the perf review targets) ----
    # dim=128 (hidden=512), seq=65 (8x8 patches + CLS); batch*seq=130 is not a
    # row-tile multiple, so the ragged-last-block path (no pad/slice) is hit.
    batch, seq, dim = 2, 65, 128
    x_tok = jax.random.normal(k_tok, (batch, seq, dim), jnp.float32)
    mlp_params = init_mlp_params(k_mlp, dim)

    y_mlp = jax.block_until_ready(mlp_forward(x_tok, mlp_params))       # resident weights
    y_blk = jax.block_until_ready(block_mlp_forward(x_tok, mlp_params)) # fused LN+MLP+res
    # Explicit h_tile override exercises the strip-mined fallback (accumulator path).
    y_strip = jax.block_until_ready(block_mlp_forward(x_tok, mlp_params, h_tile=256))

    ref_mlp = _mlp_reference(x_tok, mlp_params)
    ref_blk = _block_mlp_reference(x_tok, mlp_params)
    err_mlp = _rel_err(y_mlp, ref_mlp)
    err_blk = _rel_err(y_blk, ref_blk)
    err_strip = _rel_err(y_strip, ref_blk)
    assert y_mlp.shape == (batch, seq, dim)
    assert err_mlp < 2e-2, f"MLP mismatch: rel_err={err_mlp}"
    assert err_blk < 2e-2, f"fused LN+MLP+residual mismatch: rel_err={err_blk}"
    assert err_strip < 2e-2, f"strip-mined MLP mismatch: rel_err={err_strip}"

    # ---- full VisionTransformer forward (CvT-style, depth=2, cls token) ----
    depth, embed_dim, num_heads = 2, 128, 4
    patch, stride, padding, in_ch = 4, 4, 0, 3
    img = jax.random.normal(k_img, (2, in_ch, 32, 32), jnp.float32)
    vit_params = init_vit_params(k_vit, depth=depth, embed_dim=embed_dim,
                                 num_heads=num_heads, patch_size=patch,
                                 in_ch=in_ch, cls_token=True)

    out_pallas = jax.block_until_ready(
        vit_forward(img, vit_params, num_heads=num_heads, cls_token=True,
                    stride=stride, padding=padding, use_pallas=True))
    out_ref = jax.block_until_ready(
        vit_forward(img, vit_params, num_heads=num_heads, cls_token=True,
                    stride=stride, padding=padding, use_pallas=False))

    assert out_pallas.shape == (2, 8 * 8 + 1, embed_dim)
    err_vit = _rel_err(out_pallas, out_ref)
    assert err_vit < 2e-2, f"VisionTransformer mismatch: rel_err={err_vit}"

    print("KERNEL_OK")
</pallas_src>

<mosaic_0001>
module attributes {stable_mosaic.version = 11 : i64} {
  func.func @_probe_copy_kernel(%arg0: i32, %arg1: memref<8x128xf32, #tpu.memory_space<vmem>>, %arg2: memref<8x128xf32, #tpu.memory_space<vmem>>) attributes {dimension_semantics = [#tpu.dimension_semantics<arbitrary>], iteration_bounds = array<i64: 2>, scalar_prefetch = 0 : i64, scratch_operands = 0 : i64, tpu.core_type = #tpu.core_type<tc>, window_params = [{pipeline_mode = #tpu.pipeline_mode<synchronous>, transform_indices = @transform_0, window_bounds = array<i64: 8, 128>}, {transform_indices = @transform_1, window_bounds = array<i64: 8, 128>}]} {
    %c0 = arith.constant 0 : index
    %c0_0 = arith.constant 0 : index
    %0 = vector.load %arg1[%c0, %c0_0] : memref<8x128xf32, #tpu.memory_space<vmem>>, vector<8x128xf32>
    %c0_1 = arith.constant 0 : index
    %c0_2 = arith.constant 0 : index
    %1 = vector.load %arg2[%c0_1, %c0_2] : memref<8x128xf32, #tpu.memory_space<vmem>>, vector<8x128xf32>
    tpu.vector_store %arg2[%c0_1, %c0_2], %0 {strides = array<i32>} : memref<8x128xf32, #tpu.memory_space<vmem>>, vector<8x128xf32>,
    return
  }
  func.func @transform_0(%arg0: i32) -> (i32, i32) {
    %c0_i32 = arith.constant 0 : i32
    %c0_i32_0 = arith.constant 0 : i32
    %c0_i32_1 = arith.constant 0 : i32
    return %c0_i32, %c0_i32_0 : i32, i32
  }
  func.func @transform_1(%arg0: i32) -> (i32, i32) {
    %c0_i32 = arith.constant 0 : i32
    %c0_i32_0 = arith.constant 0 : i32
    return %arg0, %c0_i32 : i32, i32
  }
}

module attributes {stable_mosaic.version = 11 : i64} {
  func.func @_mlp_kernel_resident(%arg0: i32, %arg1: memref<80x128xf32, #tpu.memory_space<vmem>>, %arg2: memref<1x128xf32, #tpu.memory_space<vmem>>, %arg3: memref<1x128xf32, #tpu.memory_space<vmem>>, %arg4: memref<128x512xbf16, #tpu.memory_space<vmem>>, %arg5: memref<1x512xf32, #tpu.memory_space<vmem>>, %arg6: memref<512x128xbf16, #tpu.memory_space<vmem>>, %arg7: memref<1x128xf32, #tpu.memory_space<vmem>>, %arg8: memref<80x128xf32, #tpu.memory_space<vmem>>) attributes {dimension_semantics = [#tpu.dimension_semantics<parallel>], iteration_bounds = array<i64: 2>, scalar_prefetch = 0 : i64, scratch_operands = 0 : i64, tpu.core_type = #tpu.core_type<tc>, window_params = [{transform_indices = @transform_0, window_bounds = array<i64: 80, 128>}, {pipeline_mode = #tpu.pipeline_mode<synchronous>, transform_indices = @transform_1, window_bounds = array<i64: 1, 128>}, {pipeline_mode = #tpu.pipeline_mode<synchronous>, transform_indices = @transform_2, window_bounds = array<i64: 1, 128>}, {pipeline_mode = #tpu.pipeline_mode<synchronous>, transform_indices = @transform_3, window_bounds = array<i64: 128, 512>}, {pipeline_mode = #tpu.pipeline_mode<synchronous>, transform_indices = @transform_4, window_bounds = array<i64: 1, 512>}, {pipeline_mode = #tpu.pipeline_mode<synchronous>, transform_indices = @transform_5, window_bounds = array<i64: 512, 128>}, {pipeline_mode = #tpu.pipeline_mode<synchronous>, transform_indices = @transform_6, window_bounds = array<i64: 1, 128>}, {transform_indices = @transform_7, window_bounds = array<i64: 80, 128>}]} {
    %c0 = arith.constant 0 : index
    %c0_0 = arith.constant 0 : index
    %0 = vector.load %arg1[%c0, %c0_0] : memref<80x128xf32, #tpu.memory_space<vmem>>, vector<80x128xf32>
    %1 = arith.truncf %0 : vector<80x128xf32> to vector<80x128xbf16>
    %c0_1 = arith.constant 0 : index
    %c0_2 = arith.constant 0 : index
    %2 = vector.load %arg4[%c0_1, %c0_2] : memref<128x512xbf16, #tpu.memory_space<vmem>>, vector<128x512xbf16>
    %cst = arith.constant dense<0.000000e+00> : vector<80x512xf32>
    %3 = tpu.matmul %1, %2, %cst {dimension_numbers = #tpu.dot_dimension_numbers<[1], [0], [0], [1], [0, 0, 1, 1], [], []>} : vector<80x128xbf16>, vector<128x512xbf16>, vector<80x512xf32> -> vector<80x512xf32>
    %c0_3 = arith.constant 0 : index
    %c0_4 = arith.constant 0 : index
    %4 = vector.load %arg5[%c0_3, %c0_4] : memref<1x512xf32, #tpu.memory_space<vmem>>, vector<1x512xf32>
    %5 = vector.broadcast %4 : vector<1x512xf32> to vector<80x512xf32>
    %6 = arith.addf %3, %5 : vector<80x512xf32>
    %cst_5 = arith.constant 5.000000e-01 : f32
    %7 = vector.broadcast %cst_5 : f32 to vector<80x512xf32>
    %8 = arith.mulf %7, %6 : vector<80x512xf32>
    %cst_6 = arith.constant 0.707106769 : f32
    %9 = vector.broadcast %cst_6 : f32 to vector<80x512xf32>
    %10 = arith.mulf %6, %9 : vector<80x512xf32>
    %11 = math.erf %10 : vector<80x512xf32>
    %cst_7 = arith.constant 1.000000e+00 : f32
    %12 = vector.broadcast %cst_7 : f32 to vector<80x512xf32>
    %13 = arith.addf %12, %11 : vector<80x512xf32>
    %14 = arith.mulf %8, %13 : vector<80x512xf32>
    %15 = arith.truncf %14 : vector<80x512xf32> to vector<80x512xbf16>
    %c0_8 = arith.constant 0 : index
    %c0_9 = arith.constant 0 : index
    %16 = vector.load %arg6[%c0_8, %c0_9] : memref<512x128xbf16, #tpu.memory_space<vmem>>, vector<512x128xbf16>
    %cst_10 = arith.constant dense<0.000000e+00> : vector<80x128xf32>
    %17 = tpu.matmul %15, %16, %cst_10 {dimension_numbers = #tpu.dot_dimension_numbers<[1], [0], [0], [1], [0, 0, 1, 1], [], []>} : vector<80x512xbf16>, vector<512x128xbf16>, vector<80x128xf32> -> vector<80x128xf32>
    %c0_11 = arith.constant 0 : index
    %c0_12 = arith.constant 0 : index
    %18 = vector.load %arg7[%c0_11, %c0_12] : memref<1x128xf32, #tpu.memory_space<vmem>>, vector<1x128xf32>
    %19 = vector.broadcast %18 : vector<1x128xf32> to vector<80x128xf32>
    %20 = arith.addf %17, %19 : vector<80x128xf32>
    %c0_13 = arith.constant 0 : index
    %c0_14 = arith.constant 0 : index
    %21 = vector.load %arg8[%c0_13, %c0_14] : memref<80x128xf32, #tpu.memory_space<vmem>>, vector<80x128xf32>
    tpu.vector_store %arg8[%c0_13, %c0_14], %20 {strides = array<i32>} : memref<80x128xf32, #tpu.memory_space<vmem>>, vector<80x128xf32>,
    return
  }
  func.func @transform_0(%arg0: i32) -> (i32, i32) {
    %c0_i32 = arith.constant 0 : i32
    %c0_i32_0 = arith.constant 0 : i32
    return %arg0, %c0_i32 : i32, i32
  }
  func.func @transform_1(%arg0: i32) -> (i32, i32) {
    %c0_i32 = arith.constant 0 : i32
    %c0_i32_0 = arith.constant 0 : i32
    %c0_i32_1 = arith.constant 0 : i32
    return %c0_i32, %c0_i32_0 : i32, i32
  }
  func.func @transform_2(%arg0: i32) -> (i32, i32) {
    %c0_i32 = arith.constant 0 : i32
    %c0_i32_0 = arith.constant 0 : i32
    %c0_i32_1 = arith.constant 0 : i32
    return %c0_i32, %c0_i32_0 : i32, i32
  }
  func.func @transform_3(%arg0: i32) -> (i32, i32) {
    %c0_i32 = arith.constant 0 : i32
    %c0_i32_0 = arith.constant 0 : i32
    %c0_i32_1 = arith.constant 0 : i32
    return %c0_i32, %c0_i32_0 : i32, i32
  }
  func.func @transform_4(%arg0: i32) -> (i32, i32) {
    %c0_i32 = arith.constant 0 : i32
    %c0_i32_0 = arith.constant 0 : i32
    %c0_i32_1 = arith.constant 0 : i32
    return %c0_i32, %c0_i32_0 : i32, i32
  }
  func.func @transform_5(%arg0: i32) -> (i32, i32) {
    %c0_i32 = arith.constant 0 : i32
    %c0_i32_0 = arith.constant 0 : i32
    %c0_i32_1 = arith.constant 0 : i32
    return %c0_i32, %c0_i32_0 : i32, i32
  }
  func.func @transform_6(%arg0: i32) -> (i32, i32) {
    %c0_i32 = arith.constant 0 : i32
    %c0_i32_0 = arith.constant 0 : i32
    %c0_i32_1 = arith.constant 0 : i32
    return %c0_i32, %c0_i32_0 : i32, i32
  }
  func.func @transform_7(%arg0: i32) -> (i32, i32) {
    %c0_i32 = arith.constant 0 : i32
    %c0_i32_0 = arith.constant 0 : i32
    return %arg0, %c0_i32 : i32, i32
  }
}

</mosaic_0001>

<bundles_post_ra>
// kernel: tpu_custom_call.1
= control target key start
LH: loop header
LB: loop body
LE: loop exit
PB: predicated region body
PF: predicated region fallthrough
CT: control target
= control target key end

     0   :  { %6 = vsyncpa [#allocation3], 0  ;;  %s440_s0 = inlined_call_operand.hbm [shape: f32[8,128], index: 0, kind: input, shape index: {}]   ;;  %s441_s1 = inlined_call_operand.hbm [shape: f32[16,128], index: 1, kind: output, shape index: {}]  }
   0x1   :  { %7 = vsyncpa [#allocation4], 0 }
   0x2   :  { %9 = vsyncpa [#allocation4 + $0x1], 0  ;;  %s356_s6 = smov 0   ;;  %s358_s7 = smov 0  }
   0x3   :  { %s360_s8 = smov 0   ;;  %s362_s9 = smov 0  }
   0x4 LB: > { %s377_s10 = sadd.s32 4294967295, %s343_s9   ;;  %s187_s11 = sadd.s32 4294967294, %s343_s9   ;;  %s343_s9 = sphi %s362_s9, %s447_s9   ;;  %s339_s8 = sphi %s360_s8, %s446_s8   ;;  %s335_s7 = sphi %s358_s7, %s445_s7   ;;  %s331_s6 = sphi %s356_s6, %s444_s6  }
   0x5   : > { %s381_s12 = sadd.s32 1, %s343_s9   ;;  %s43_s13 = sadd.s32 1, %s339_s8 }
   0x6   : > { %s40_s14 = ssub.s32 %s343_s9, %s381_s12  ;;  %p53_p0 = scmp.ne.s32.totalorder %s339_s8, %s335_s7 }
   0x7   : > { %p41_p1 = scmp.eq.s32.totalorder %s40_s14, 0  ;;  %p54_p2 = scmp.eq.s32.totalorder %s377_s10, 1 }
   0x8   : > { %p59_p3 = scmp.ne.s32.totalorder %s335_s7, %s331_s6  ;;  %p60_p4 = scmp.eq.s32.totalorder %s187_s11, 1 }
   0x9   : > { %s392_s15 = scalar_select %p41_p1, %s339_s8, %s43_s13  }
   0xa   : > { %p394_p5 = por %p54_p2, %p53_p0  ;;  %p398_p6 = por %p60_p4, %p59_p3 }
   0xb   : > { %p188_p7 = scmp.ge.s32.totalorder %s343_s9, 1  ;;  %p67_p8 = scmp.lt.s32.totalorder %s343_s9, 3 }
   0xc   : > { %p211_p9 = scmp.eq.s32.totalorder %s377_s10, 0  ;;  %s79_s20 = sshll.u32 %s440_s0, 4  ;;  %s80_s20 = int_to_ptr.hbm [resolvable:$true] %s79_s20 }
   0xd   : > { %p68_p10 = pnand %p188_p7, %p67_p8  ;;  %s345_s21 = smov [#allocation2]  }
   0xe   : > { %s81_s22 = sshll.u32 %s345_s21, 4  ;;  %s82_s22 = int_to_ptr.vmem [resolvable:$true] %s81_s22 }
   0xf   : > { %p203_p11 = pneg %p68_p10  ;;  %94 = sbr.rel (%p68_p10) target bundleno = 37 (0x25), region = 24 }
  0x11   : > { %p204_p12 = pnand %p211_p9, %p203_p11 }
  0x13   : > { %206 = dma.hbm_to_vmem [thread:$0]  (!%p204_p12), %s80_s20, 128, %s82_s22, [#allocation3]  }
  0x14   : > { %322 = dma.done.wait (%p211_p9), [#allocation3], 128  }
  0x15   : > { %324 = vsyncadd (%p211_p9), [#allocation3], 4294967168  ;;  %s107_s23 = sand.u32 1, %s335_s7   ;;  %s194_s24 = sshll.u32 %s377_s10, 3  ;;  %v110_v0 = vld [vmem:[#allocation2] sm:$0xff] }
  0x16   : > { %s192_s25 = sshll.u32 %s107_s23, 3  ;;  %s123_s28 = scalar_lea.hbm %s441_s1, %s194_s24 }
  0x17   : > { %s109_s29 = scalar_lea.vmem [#allocation5], %s192_s25  ;;  %s127_s2 = sshll.u32 %s123_s28, 4  ;;  %s128_s2 = int_to_ptr.hbm [resolvable:$true] %s127_s2 }
  0x18   : > { %s125_s30 = sshll.u32 %s109_s29, 4  ;;  %111 = vst [vmem:[%s109_s29] sm:$0xff] %v110_v0  ;;  %s113_s3 = scalar_lea.sflag [#allocation4], %s107_s23  ;;  %s126_s30 = int_to_ptr.vmem [resolvable:$true] %s125_s30 }
  0x19   : > { %s291_s4 = sshra.s32 %s128_s2, 4  ;;  %s297_s13 = scalar_lea.hbm %s441_s1, 16  ;;  %s292_s4 = int_to_ptr.hbm [resolvable:$true] %s291_s4 }
  0x1a   : > { %s293_s5 = scalar_lea.hbm %s292_s4, 8  ;;  %p298_p2 = scmp.lt.s32.totalorder %s292_s4, %s441_s1 }
  0x1b   : > { %p294_p13 = scmp.ne.s32.totalorder %s292_s4, %s293_s5  ;;  %p299_p3 = scmp.lt.s32.totalorder %s297_s13, %s293_s5 }
  0x1d   : > { %p295_p0 = pnand %p294_p13, %p394_p5  ;;  %p300_p4 = por %p299_p3, %p298_p2 }
  0x1f   : > { %p296_p1 = pneg %p295_p0 }
  0x21   : > { %p301_p7 = pnand %p300_p4, %p296_p1 }
  0x23   : > { %304 = shalt.err (!%p301_p7)
}
  0x24   : > { %201 = dma.vmem_to_hbm [thread:$0]  (%p394_p5), %s126_s30, 128, %s128_s2, %s113_s3  }
  0x25 PF: > { %p213_p8 = scmp.ge.s32.totalorder %s343_s9, 2  ;;  %s139_s19 = sand.u32 1, %s331_s6  }
  0x26   : > { %s140_s20 = scalar_lea.sflag [#allocation4], %s139_s19 }
  0x27   : > { %p208_p9 = pnand %p213_p8, %p398_p6 }
  0x29   : > { %p209_p10 = pneg %p208_p9 }
  0x2b   : > { %326 = dma.done.wait (%p209_p10), %s140_s20, 128  }
  0x2c   : > { %328 = vsyncadd (%p209_p10), %s140_s20, 4294967168  ;;  %p12_p11 = scmp.ge.s32.totalorder %s381_s12, 4   ;;  %s444_s6 = smov %s335_s7 }
  0x2d   : > { %s445_s7 = smov %s339_s8  ;;  %s446_s8 = smov %s392_s15 }
  0x2e   : > { %s447_s9 = smov %s381_s12  ;;  %14 = sbr.rel (!%p12_p11) target bundleno = 4 (0x4), region = 61 }
  0x33   :  { %146 = vsyncpa [#allocation3], 1 }
  0x34   :  { %148 = vsyncpa [#allocation3 + $0x1], 1 }
  0x35   :  { %149 = vsyncpa [#allocation4], 1 }
  0x36   :  { %151 = vsyncpa [#allocation4 + $0x1], 1 }

// kernel: tpu_custom_call.1
= control target key start
LH: loop header
LB: loop body
LE: loop exit
PB: predicated region body
PF: predicated region fallthrough
CT: control target
= control target key end

     0   :  { %s6017_s0 = inlined_call_operand.hbm [shape: f32[130,128], index: 0, kind: input, shape index: {}]   ;;  %s6018_s1 = inlined_call_operand.hbm [shape: f32[1,128], index: 1, kind: input, shape index: {}]   ;;  %s6019_s2 = inlined_call_operand.vmem [shape: f32[1,128], index: 2, kind: input, shape index: {}]   ;;  %s6020_s3 = inlined_call_operand.hbm [shape: bf16[128,512], index: 3, kind: input, shape index: {}]   ;;  %s6021_s4 = inlined_call_operand.hbm [shape: f32[1,512], index: 4, kind: input, shape index: {}]   ;;  %s6022_s5 = inlined_call_operand.hbm [shape: bf16[512,128], index: 5, kind: input, shape index: {}]   ;;  %s6023_s6 = inlined_call_operand.vmem [shape: f32[1,128], index: 6, kind: input, shape index: {}]   ;;  %s6024_s7 = inlined_call_operand.hbm [shape: f32[130,128], index: 7, kind: output, shape index: {}]  }
   0x1   :  { %6074 = sst [smem:[#allocation84_spill]] %s6018_s1 }
   0x2   :  { %6075 = sst [smem:[#allocation85_spill]] %s6021_s4 }
   0x3   :  { %12 = vsyncpa [#allocation3], 0 }
   0x4   :  { %14 = vsyncpa [#allocation3 + $0x1], 0 }
   0x5   :  { %15 = vsyncpa [#allocation6], 0 }
   0x6   :  { %16 = vsyncpa [#allocation9], 0 }
   0x7   :  { %17 = vsyncpa [#allocation4], 0 }
   0x8   :  { %19 = vsyncpa [#allocation4 + $0x1], 0  ;;  %s3908_s2 = smov 0   ;;  %s3910_s24 = smov 0  }
   0x9   :  { %s3912_s25 = smov 0   ;;  %s3914_s26 = smov 0  }
   0xa LB: > { %s3929_s27 = sadd.s32 4294967295, %s3852_s26   ;;  %s3051_s28 = sadd.s32 4294967294, %s3852_s26   ;;  %s3852_s26 = sphi %s3914_s26, %s6341_s26   ;;  %s3848_s25 = sphi %s3912_s25, %s6340_s25   ;;  %s3844_s24 = sphi %s3910_s24, %s6339_s24   ;;  %s3840_s2 = sphi %s3908_s2, %s6338_s2  }
   0xb   : > { %s3933_s29 = sadd.s32 1, %s3852_s26   ;;  %s32_s30 = sadd.s32 1, %s3848_s25 }
   0xc   : > { %s29_s8 = ssub.s32 %s3852_s26, %s3933_s29  ;;  %p39_p0 = scmp.ne.s32.totalorder %s3848_s25, %s3844_s24 }
   0xd   : > { %p30_p1 = scmp.eq.s32.totalorder %s29_s8, 0  ;;  %p40_p2 = scmp.eq.s32.totalorder %s3852_s26, 0 }
   0xe   : > { %p45_p3 = scmp.ne.s32.totalorder %s3844_s24, %s3840_s2  ;;  %p6026_p4 = scmp.eq.s32.totalorder %s3929_s27, 0 }
   0xf   : > { %s3945_s9 = scalar_select %p30_p1, %s3848_s25, %s32_s30  }
  0x10   : > { %p3947_p5 = por %p40_p2, %p39_p0  ;;  %p3953_p6 = por %p6026_p4, %p45_p3 }
  0x11   : > { %6076 = sst [smem:[#allocation16_spill]] %s3945_s9  ;;  %p195_p7 = scmp.eq.s32.totalorder %s3929_s27, 1 }
  0x12   : > { %p201_p8 = scmp.eq.s32.totalorder %s3051_s28, 1  ;;  %p3052_p9 = scmp.ge.s32.totalorder %s3852_s26, 1 }
  0x13   : > { %p208_p10 = scmp.lt.s32.totalorder %s3852_s26, 3  ;;  %p3960_p11 = por %p195_p7, %p39_p0 }
  0x14   : > { %p3964_p12 = por %p201_p8, %p45_p3  ;;  %s6082_s1 = sld [smem:[#allocation84_spill]] }
  0x15   : > { %p3968_p13 = pnand %p3052_p9, %p208_p10  ;;  %s3854_s18 = smov [#allocation5]  }
  0x16   : > { %s6080_s13 = scalar_select %p3964_p12, 1, 0 }
  0x17   : > { %p3457_p1 = pneg %p3968_p13  ;;  %s222_s19 = sshll.u32 %s3854_s18, 4  ;;  %s223_s19 = int_to_ptr.vmem [resolvable:$true] %s222_s19 }
  0x18   : > { %s6083_s4 = sld [smem:[#allocation85_spill]]  ;;  %s3855_s28 = smov [#allocation8]  }
  0x19   : > { %p3982_p0 = pnand %p3457_p1, %p6026_p4  ;;  %s251_s30 = sshll.u32 %s3855_s28, 4  ;;  %s252_s30 = int_to_ptr.vmem [resolvable:$true] %s251_s30 }
  0x1a   : > { %s220_s17 = sshll.u32 %s6082_s1, 4  ;;  %s234_s16 = sshll.u32 %s6020_s3, 4  ;;  %s221_s17 = int_to_ptr.hbm [resolvable:$true] %s220_s17  ;;  %s235_s16 = int_to_ptr.hbm [resolvable:$true] %s234_s16 }
  0x1b   : > { %3460 = dma.hbm_to_vmem [thread:$0]  (!%p3982_p0), %s221_s17, 16, %s223_s19, [#allocation6]  }
  0x1c   : > { %s3856_s18 = smov [#allocation7]   ;;  %s3857_s21 = smov 256  }
  0x1d   : > { %s236_s20 = sshll.u32 %s3856_s18, 4  ;;  %s3858_s1 = smov 16   ;;  %s237_s20 = int_to_ptr.vmem [resolvable:$true] %s236_s20 }
  0x1e   : > { %s249_s22 = sshll.u32 %s6083_s4, 4  ;;  %s260_s17 = sshll.u32 %s6022_s5, 4  ;;  %s250_s22 = int_to_ptr.hbm [resolvable:$true] %s249_s22  ;;  %s261_s17 = int_to_ptr.hbm [resolvable:$true] %s260_s17 }
  0x1f   : > { %3466 = dma.hbm_to_vmem [thread:$0]  (!%p3982_p0), %s250_s22, 64, %s252_s30, [#allocation9]  }
  0x20   : > { %3463 = dma.hbm_to_vmem [thread:$0]  (!%p3982_p0), %s235_s16, 4096, %s237_s20, [#allocation6], %s3857_s21, %s3857_s21, %s3858_s1  }
  0x21   : > { %s3859_s19 = smov [#allocation10]   ;;  %s3860_s8 = smov 64  }
  0x22   : > { %s262_s9 = sshll.u32 %s3859_s19, 4  ;;  %s3861_s15 = smov 4   ;;  %s263_s9 = int_to_ptr.vmem [resolvable:$true] %s262_s9 }
  0x23   : > { %3469 = dma.hbm_to_vmem [thread:$0]  (!%p3982_p0), %s261_s17, 4096, %s263_s9, [#allocation9], %s3860_s8, %s3860_s8, %s3861_s15  }
  0x24   : > { %p6025_p2 = scmp.ge.s32.totalorder %s3852_s26, 2 }
  0x26   : > { %275 = sbr.rel (%p6025_p2) target bundleno = 81 (0x51), region = 40 }
  0x2b   : > { %278 = sbr.rel (!%p3947_p5) target bundleno = 81 (0x51), region = 44  ;;  %s279_s1 = sand.u32 (%p3947_p5), 1, %s3848_s25  }
  0x2c   : > { %s284_s4 = smul.u32 (%p3947_p5), 10, %s3852_s26  ;;  %s4010_s18 = scalar_lea.sflag (%p3947_p5), [#allocation3], %s279_s1 }
  0x2d   : > { %s3437_s22 = smul.u32 (%p3947_p5), 80, %s279_s1 }
  0x2e   : > { %s285_s30 = ssub.s32 (%p3947_p5), 17, %s284_s4 }
  0x2f   : > { %p286_p3 = scmp.lt.s32.totalorder (%p3947_p5), %s285_s30, 10  ;;  %s283_s20 = scalar_lea.vmem (%p3947_p5), [#allocation2], %s3437_s22 }
  0x31   : > { %s6343_s30 = smov (!%p286_p3, %s285_s30), 10 }
  0x32   : > { %s3058_s23 = sshll.u32 %s6343_s30, 3 }
  0x33   : > { %s289_s9 = ssub.s32 80, %s3058_s23 }
  0x34   : > { %s290_s16 = sshll.u32 %s289_s9, 4 }
  0x35   : > { %291 = vsyncadd %s4010_s18, %s290_s16  ;;  %p4013_p5 = scmp.ne.s32.totalorder %s3058_s23, 0  ;;  %s3371_s21 = smul.u32 80, %s3852_s26 }
  0x36   : > { %s4018_s28 = sshll.u32 %s283_s20, 4  ;;  %s3062_s17 = sshll.u32 %s6343_s30, 7  ;;  %s299_s28 = int_to_ptr.vmem [resolvable:$true] %s4018_s28 }
  0x37   : > { %s294_s15 = scalar_lea.hbm %s6017_s0, %s3371_s21  ;;  %s3730_s22 = sshrl.u32 %s3062_s17, 4 }
  0x38   : > { %s296_s1 = sshll.u32 %s294_s15, 4  ;;  %s3739_s20 = scalar_lea.hbm %s6017_s0, 136  ;;  %s4025_s1 = int_to_ptr.hbm [resolvable:$true] %s296_s1 }
  0x39   : > { %s3728_s4 = sshra.s32 %s4025_s1, 4  ;;  %s3729_s4 = int_to_ptr.hbm [resolvable:$true] %s3728_s4 }
  0x3a   : > { %s3735_s23 = scalar_lea.hbm %s3729_s4, %s3730_s22  ;;  %p3740_p10 = scmp.lt.s32.totalorder %s3729_s4, %s6017_s0 }
  0x3b   : > { %p3736_p7 = scmp.ne.s32.totalorder %s3729_s4, %s3735_s23  ;;  %p3741_p1 = scmp.lt.s32.totalorder %s3739_s20, %s3735_s23 }
  0x3d   : > { %p3737_p8 = pnand %p3736_p7, %p4013_p5  ;;  %p3742_p0 = por %p3741_p1, %p3740_p10 }
  0x3f   : > { %p3738_p9 = pneg %p3737_p8 }
  0x41   : > { %p3743_p3 = pnand %p3742_p0, %p3738_p9 }
  0x43   : > { %3746 = shalt.err (!%p3743_p3)
}
  0x44   : > { %s3747_s8 = sshra.s32 %s299_s28, 4  ;;  %s3862_s9 = smov [#allocation2]   ;;  %s3748_s8 = int_to_ptr.vmem [resolvable:$true] %s3747_s8 }
  0x45   : > { %s3754_s15 = scalar_lea.vmem %s3748_s8, %s3730_s22  ;;  %s3758_s16 = scalar_lea.vmem %s3862_s9, 160 }
  0x46   : > { %p3755_p7 = scmp.ne.s32.totalorder %s3748_s8, %s3754_s15  ;;  %p3760_p4 = scmp.lt.s32.totalorder %s3758_s16, %s3754_s15 }
  0x48   : > { %p3756_p8 = pnand %p3755_p7, %p4013_p5 }
  0x4a   : > { %p3757_p2 = pneg %p3756_p8 }
  0x4c   : > { %p3762_p12 = pnand %p3760_p4, %p3757_p2 }
  0x4e   : > { %3765 = shalt.err (!%p3762_p12)
}
  0x4f   : > { %s3863_s4 = smov 128   ;;  %s3864_s23 = smov 8  }
  0x50   : > { %304 = dma.hbm_to_vmem [thread:$0]  (%p4013_p5), %s4025_s1, %s3062_s17, %s299_s28, %s4010_s18, %s3863_s4, %s3863_s4, %s3864_s23  }
  0x51 PF: > { %310 = sbr.rel (%p3968_p13) target bundleno = 889 (0x379), region = 48 }
  0x56   : > { %s4053_s22 = sand.u32 1, %s3844_s24  }
  0x57   : > { %s3438_s20 = smul.u32 80, %s4053_s22  ;;  %s313_s19 = scalar_lea.sflag [#allocation3], %s4053_s22 }
  0x59   : > { %s4059_s21 = scalar_lea.vmem [#allocation2], %s3438_s20 }
  0x5a   : > { %3823 = dma.done.wait (%p3953_p6), %s313_s19, 1280  }
  0x5b   : > { %3825 = vsyncadd (%p3953_p6), %s313_s19, 4294966016  ;;  %p6086_p4 = scmp.eq.s32.totalorder %s3929_s27, 0 }
  0x5d   : > { %3827 = dma.done.wait (%p6086_p4), [#allocation6], 4112   ;;  %p6087_p12 = pmov %p6086_p4 }
  0x5e   : > { %p6088_p13 = pmov %p6086_p4 }
  0x5f   : > { %3829 = vsyncadd (%p6087_p12), [#allocation6], 4294963184 }
  0x60   : > { %3831 = dma.done.wait (%p6088_p13), [#allocation9], 4160   ;;  %p6089_p2 = pmov %p6086_p4 }
  0x61   : > { %v3182_v0 = vld [vmem:[#allocation7 + $0xe0] sm:$0xf]  ;;  %v3402_v1 = vld [vmem:[#allocation7 + $0xec] sm:$0xf0]  ;;  %v3400_v2 = vld [vmem:[#allocation7 + $0xe4] sm:$0xf] }
  0x62   : > { %3833 = vsyncadd (%p6089_p2), [#allocation9], 4294963136  ;;  %v3183_v3 = vor.u32 %v3402_v1, %v3182_v0  ;;  %v3184_v4 = vld [vmem:[#allocation7 + $0xf0] sm:$0xf0]  ;;  %v3190_v5 = vld [vmem:[#allocation7 + $0xe8] sm:$0xf] }
  0x63   : > { %v3403_v6 = vld [vmem:[#allocation7 + $0xf4] sm:$0xf0]  ;;  %v3187_v7 = vor.u32 %v3400_v2, %v3184_v4  ;;  %v3401_v9 = vld [vmem:[#allocation7 + $0xec] sm:$0xf]  ;;  %v3192_v10 = vld [vmem:[#allocation7 + $0xf8] sm:$0xf0] }
  0x64   : > { %v3191_v8 = vor.u32 %v3403_v6, %v3190_v5  ;;  %v3166_v11 = vld [vmem:[#allocation7 + $0xc0] sm:$0xf]  ;;  %595 = vmatpush.bf16.msra.mxu0 %v3183_v3  ;;  %v3195_v12 = vor.u32 %v3401_v9, %v3192_v10  ;;  %v3398_v13 = vld [vmem:[#allocation7 + $0xcc] sm:$0xf0]  ;;  %v3396_v14 = vld [vmem:[#allocation7 + $0xc4] sm:$0xf] }
  0x65   : > { %v3168_v15 = vld [vmem:[#allocation7 + $0xd0] sm:$0xf0]  ;;  %629 = vmatpush.bf16.msra.mxu1 %v3187_v7  ;;  %v3167_v16 = vor.u32 %v3398_v13, %v3166_v11  ;;  %v3174_v18 = vld [vmem:[#allocation7 + $0xc8] sm:$0xf]  ;;  %v3399_v19 = vld [vmem:[#allocation7 + $0xd4] sm:$0xf0] }
  0x66   : > { %663 = vmatpush.bf16.msra.mxu2 %v3191_v8  ;;  %v3171_v17 = vor.u32 %v3396_v14, %v3168_v15  ;;  %v3397_v20 = vld [vmem:[#allocation7 + $0xcc] sm:$0xf]  ;;  %697 = vmatpush.bf16.msra.mxu3 %v3195_v12  ;;  %v3175_v21 = vor.u32 %v3399_v19, %v3174_v18  ;;  %v3176_v22 = vld [vmem:[#allocation7 + $0xd8] sm:$0xf0]  ;;  %v3150_v23 = vld [vmem:[#allocation7 + $0xa0] sm:$0xf] }
  0x67   : > { %v3394_v24 = vld [vmem:[#allocation7 + $0xac] sm:$0xf0]  ;;  %v3179_v25 = vor.u32 %v3397_v20, %v3176_v22  ;;  %v3392_v26 = vld [vmem:[#allocation7 + $0xa4] sm:$0xf]  ;;  %v3152_v27 = vld [vmem:[#allocation7 + $0xb0] sm:$0xf0] }
  0x68   : > { %v3158_v28 = vld [vmem:[#allocation7 + $0xa8] sm:$0xf]  ;;  %596 = vmatpush.bf16.msra.mxu0 %v3167_v16  ;;  %v3151_v29 = vor.u32 %v3394_v24, %v3150_v23  ;;  %v3395_v30 = vld [vmem:[#allocation7 + $0xb4] sm:$0xf0]  ;;  %v3393_v31 = vld [vmem:[#allocation7 + $0xac] sm:$0xf]  ;;  %v3155_v33 = vor.u32 %v3392_v26, %v3152_v27 }
  0x69   : > { %v3160_v32 = vld [vmem:[#allocation7 + $0xb8] sm:$0xf0]  ;;  %630 = vmatpush.bf16.msra.mxu1 %v3171_v17  ;;  %v3159_v34 = vor.u32 %v3395_v30, %v3158_v28  ;;  %v3134_v35 = vld [vmem:[#allocation7 + $0x80] sm:$0xf]  ;;  %v3390_v36 = vld [vmem:[#allocation7 + $0x8c] sm:$0xf0] }
  0x6a   : > { %664 = vmatpush.bf16.msra.mxu2 %v3175_v21  ;;  %v3388_v37 = vld [vmem:[#allocation7 + $0x84] sm:$0xf]  ;;  %698 = vmatpush.bf16.msra.mxu3 %v3179_v25  ;;  %v3163_v38 = vor.u32 %v3393_v31, %v3160_v32  ;;  %v3136_v39 = vld [vmem:[#allocation7 + $0x90] sm:$0xf0]  ;;  %v3142_v40 = vld [vmem:[#allocation7 + $0x88] sm:$0xf]  ;;  %v3135_v44 = vor.u32 %v3390_v36, %v3134_v35 }
  0x6b   : > { %v3391_v41 = vld [vmem:[#allocation7 + $0x94] sm:$0xf0]  ;;  %v3389_v42 = vld [vmem:[#allocation7 + $0x8c] sm:$0xf]  ;;  %v3144_v43 = vld [vmem:[#allocation7 + $0x98] sm:$0xf0]  ;;  %v3139_v45 = vor.u32 %v3388_v37, %v3136_v39 }
  0x6c   : > { %597 = vmatpush.bf16.msra.mxu0 %v3151_v29  ;;  %v3143_v46 = vor.u32 %v3391_v41, %v3142_v40  ;;  %v3118_v47 = vld [vmem:[#allocation7 + $0x60] sm:$0xf]  ;;  %v3386_v48 = vld [vmem:[#allocation7 + $0x6c] sm:$0xf0]  ;;  %v3384_v49 = vld [vmem:[#allocation7 + $0x64] sm:$0xf]  ;;  %v3147_v50 = vor.u32 %v3389_v42, %v3144_v43 }
  0x6d   : > { %631 = vmatpush.bf16.msra.mxu1 %v3155_v33  ;;  %v3120_v51 = vld [vmem:[#allocation7 + $0x70] sm:$0xf0]  ;;  %v3126_v52 = vld [vmem:[#allocation7 + $0x68] sm:$0xf]  ;;  %v3387_v53 = vld [vmem:[#allocation7 + $0x74] sm:$0xf0]  ;;  %v3119_v56 = vor.u32 %v3386_v48, %v3118_v47 }
  0x6e   : > { %665 = vmatpush.bf16.msra.mxu2 %v3159_v34  ;;  %699 = vmatpush.bf16.msra.mxu3 %v3163_v38  ;;  %v3385_v54 = vld [vmem:[#allocation7 + $0x6c] sm:$0xf]  ;;  %v3128_v55 = vld [vmem:[#allocation7 + $0x78] sm:$0xf0]  ;;  %v3123_v57 = vor.u32 %v3384_v49, %v3120_v51  ;;  %v3127_v58 = vor.u32 %v3387_v53, %v3126_v52  ;;  %v3102_v59 = vld [vmem:[#allocation7 + $0x40] sm:$0xf] }
  0x6f   : > { %v3382_v60 = vld [vmem:[#allocation7 + $0x4c] sm:$0xf0]  ;;  %v3380_v61 = vld [vmem:[#allocation7 + $0x44] sm:$0xf]  ;;  %v3131_v62 = vor.u32 %v3385_v54, %v3128_v55  ;;  %v3104_v63 = vld [vmem:[#allocation7 + $0x50] sm:$0xf0] }
  0x70   : > { %598 = vmatpush.bf16.msra.mxu0 %v3135_v44  ;;  %v3110_v0 = vld [vmem:[#allocation7 + $0x48] sm:$0xf]  ;;  %v3383_v1 = vld [vmem:[#allocation7 + $0x54] sm:$0xf0]  ;;  %v3381_v2 = vld [vmem:[#allocation7 + $0x4c] sm:$0xf]  ;;  %v3103_v4 = vor.u32 %v3382_v60, %v3102_v59  ;;  %v3107_v5 = vor.u32 %v3380_v61, %v3104_v63 }
  0x71   : > { %632 = vmatpush.bf16.msra.mxu1 %v3139_v45  ;;  %v3112_v3 = vld [vmem:[#allocation7 + $0x58] sm:$0xf0]  ;;  %v3111_v6 = vor.u32 %v3383_v1, %v3110_v0  ;;  %v3086_v7 = vld [vmem:[#allocation7 + $0x20] sm:$0xf]  ;;  %v3378_v8 = vld [vmem:[#allocation7 + $0x2c] sm:$0xf0] }
  0x72   : > { %666 = vmatpush.bf16.msra.mxu2 %v3143_v46  ;;  %700 = vmatpush.bf16.msra.mxu3 %v3147_v50  ;;  %v3376_v9 = vld [vmem:[#allocation7 + $0x24] sm:$0xf]  ;;  %v3115_v10 = vor.u32 %v3381_v2, %v3112_v3  ;;  %v3088_v11 = vld [vmem:[#allocation7 + $0x30] sm:$0xf0]  ;;  %v3094_v12 = vld [vmem:[#allocation7 + $0x28] sm:$0xf]  ;;  %v3087_v16 = vor.u32 %v3378_v8, %v3086_v7 }
  0x73   : > { %v3379_v13 = vld [vmem:[#allocation7 + $0x34] sm:$0xf0]  ;;  %v3377_v14 = vld [vmem:[#allocation7 + $0x2c] sm:$0xf]  ;;  %v3096_v15 = vld [vmem:[#allocation7 + $0x38] sm:$0xf0]  ;;  %v3091_v17 = vor.u32 %v3376_v9, %v3088_v11 }
  0x74   : > { %599 = vmatpush.bf16.msra.mxu0 %v3119_v56  ;;  %v3095_v18 = vor.u32 %v3379_v13, %v3094_v12  ;;  %v3070_v19 = vld [vmem:[#allocation7] sm:$0xf]  ;;  %v3374_v20 = vld [vmem:[#allocation7 + $0xc] sm:$0xf0]  ;;  %v3372_v21 = vld [vmem:[#allocation7 + $0x4] sm:$0xf]  ;;  %v3099_v22 = vor.u32 %v3377_v14, %v3096_v15 }
  0x75   : > { %633 = vmatpush.bf16.msra.mxu1 %v3123_v57  ;;  %v3072_v23 = vld [vmem:[#allocation7 + $0x10] sm:$0xf0]  ;;  %v3078_v24 = vld [vmem:[#allocation7 + $0x8] sm:$0xf]  ;;  %v3375_v25 = vld [vmem:[#allocation7 + $0x14] sm:$0xf0]  ;;  %v3071_v28 = vor.u32 %v3374_v20, %v3070_v19 }
  0x76   : > { %667 = vmatpush.bf16.msra.mxu2 %v3127_v58  ;;  %701 = vmatpush.bf16.msra.mxu3 %v3131_v62  ;;  %v3373_v26 = vld [vmem:[#allocation7 + $0xc] sm:$0xf]  ;;  %v3080_v27 = vld [vmem:[#allocation7 + $0x18] sm:$0xf0]  ;;  %v3075_v31 = vor.u32 %v3372_v21, %v3072_v23  ;;  %v3079_v32 = vor.u32 %v3375_v25, %v3078_v24  ;;  %v425_v51 = vld [vmem:[#allocation8] sm:$0xf] }
  0x77   : > { %v378_v29 = vld [vmem:[%s4059_s21] sm:$0xff]  ;;  %v379_v30 = vld [vmem:[%s4059_s21 + $0x8] sm:$0xff]  ;;  %v3083_v33 = vor.u32 %v3373_v26, %v3080_v27  ;;  %v380_v35 = vld [vmem:[%s4059_s21 + $0x10] sm:$0xff]  ;;  %v4083_v52 = vperm.slane %v425_v51, 0  ;;  %v4085_v53 = vperm.slane %v425_v51, 1  ;;  %v4099_v60 = vperm.slane %v425_v51, 2 }
  0x78   : > { %600 = vmatpush.bf16.msra.mxu0 %v3103_v4  ;;  %v388_v34 = vpack.c.bf16 %v379_v30, %v378_v29  ;;  %v381_v36 = vld [vmem:[%s4059_s21 + $0x18] sm:$0xff]  ;;  %v382_v38 = vld [vmem:[%s4059_s21 + $0x20] sm:$0xff]  ;;  %v383_v39 = vld [vmem:[%s4059_s21 + $0x28] sm:$0xff]  ;;  %v4103_v0 = vperm.slane %v425_v51, 3  ;;  %s5924_s30 = scalar_lea.vmem [#allocation11], %s3438_s20  ;;  %s2918_s18 = scalar_lea.sflag [#allocation4], %s4053_s22 }
  0x79   : > { %634 = vmatpush.bf16.msra.mxu1 %v3107_v5  ;;  %v389_v37 = vpack.c.bf16 %v381_v36, %v380_v35  ;;  %v390_v40 = vpack.c.bf16 %v383_v39, %v382_v38  ;;  %v3427_v41 = vld [vmem:[#allocation10 + $0xb8] sm:$0xff]  ;;  %v3410_v62 = vld [vmem:[#allocation10 + $0x30] sm:$0xff]  ;;  %s2925_s10 = smul.u32 (%p3960_p11), 10, %s3929_s27 }
  0x7a   : > { %668 = vmatpush.bf16.msra.mxu2 %v3111_v6  ;;  %702 = vmatpush.bf16.msra.mxu3 %v3115_v10  ;;  %v3411_v42 = vld [vmem:[#allocation10 + $0x38] sm:$0xff]  ;;  %v3418_v63 = vld [vmem:[#allocation10 + $0x70] sm:$0xff] }
  0x7b   : > { %v3435_v43 = vld [vmem:[#allocation10 + $0xf8] sm:$0xff]  ;;  %v3426_v12 = vld [vmem:[#allocation10 + $0xb0] sm:$0xff]  ;;  %s2926_s28 = ssub.s32 (%p3960_p11), 17, %s2925_s10 }
  0x7c   : > { %601 = vmatpush.bf16.msra.mxu0 %v3087_v16  ;;  %v3419_v44 = vld [vmem:[#allocation10 + $0x78] sm:$0xff]  ;;  %v3434_v13 = vld [vmem:[#allocation10 + $0xf0] sm:$0xff]  ;;  %p2927_p6 = scmp.lt.s32.totalorder (%p3960_p11), %s2926_s28, 10 }
  0x7d   : > { %635 = vmatpush.bf16.msra.mxu1 %v3091_v17  ;;  %v384_v45 = vld [vmem:[%s4059_s21 + $0x30] sm:$0xff]  ;;  %v385_v46 = vld [vmem:[%s4059_s21 + $0x38] sm:$0xff]  ;;  %v386_v48 = vld [vmem:[%s4059_s21 + $0x40] sm:$0xff] }
  0x7e   : > { %669 = vmatpush.bf16.msra.mxu2 %v3095_v18  ;;  %703 = vmatpush.bf16.msra.mxu3 %v3099_v22  ;;  %v391_v47 = vpack.c.bf16 %v385_v46, %v384_v45  ;;  %v387_v49 = vld [vmem:[%s4059_s21 + $0x48] sm:$0xff] }
  0x7f   : > { %v392_v50 = vpack.c.bf16 %v387_v49, %v386_v48 }
  0x80   : > { %602 = vmatpush.bf16.msra.mxu0 %v3071_v28 }
  0x81   : > { %636 = vmatpush.bf16.msra.mxu1 %v3075_v31 }
  0x82   : > { %670 = vmatpush.bf16.msra.mxu2 %v3079_v32  ;;  %704 = vmatpush.bf16.msra.mxu3 %v3083_v33 }
  0x83   : > { %603 = vmatmul.bf16.vlgmr.msra.gmra.mxu0 %v388_v34 }
  0x84   : > { %637 = vmatmul.bf16.vlgmr.msra.gmra.mxu1 %v388_v34  ;;  %2771 = vmatpush.bf16.msrb.mxu0 %v3411_v42 }
  0x85   : > { %671 = vmatmul.bf16.vlgmr.msra.gmra.mxu2 %v388_v34  ;;  %705 = vmatmul.bf16.vlgmr.msra.gmra.mxu3 %v388_v34 }
  0x86   : > { %2839 = vmatpush.bf16.msrb.mxu2 %v3427_v41  ;;  %2873 = vmatpush.bf16.msrb.mxu3 %v3435_v43 }
  0x87   : > { %2805 = vmatpush.bf16.msrb.mxu1 %v3419_v44 }
  0x88   : > { %2772 = vmatpush.bf16.msrb.mxu0 %v3410_v62 }
  0x8a   : > { %2840 = vmatpush.bf16.msrb.mxu2 %v3426_v12  ;;  %2874 = vmatpush.bf16.msrb.mxu3 %v3434_v13 }
  0x8b   : > { %2806 = vmatpush.bf16.msrb.mxu1 %v3418_v63 }
  0x93   : > { %608 = vmatmul.bf16.gmra.mxu0 %v389_v37 }
  0x94   : > { %642 = vmatmul.bf16.gmra.mxu1 %v389_v37 }
  0x95   : > { %676 = vmatmul.bf16.gmra.mxu2 %v389_v37  ;;  %710 = vmatmul.bf16.gmra.mxu3 %v389_v37 }
  0xa3   : > { %613 = vmatmul.bf16.gmra.mxu0 %v390_v40 }
  0xa4   : > { %647 = vmatmul.bf16.gmra.mxu1 %v390_v40 }
  0xa5   : > { %681 = vmatmul.bf16.gmra.mxu2 %v390_v40  ;;  %715 = vmatmul.bf16.gmra.mxu3 %v390_v40 }
  0xb3   : > { %618 = vmatmul.bf16.gmra.mxu0 %v391_v47 }
  0xb4   : > { %652 = vmatmul.bf16.gmra.mxu1 %v391_v47 }
  0xb5   : > { %686 = vmatmul.bf16.gmra.mxu2 %v391_v47  ;;  %720 = vmatmul.bf16.gmra.mxu3 %v391_v47 }
  0xc3   : > { %623 = vmatmul.bf16.gmra.mxu0 %v392_v50 }
  0xc4   : > { %657 = vmatmul.bf16.gmra.mxu1 %v392_v50 }
  0xc5   : > { %691 = vmatmul.bf16.gmra.mxu2 %v392_v50  ;;  %725 = vmatmul.bf16.gmra.mxu3 %v392_v50 }
 0x100   : > { %v604_v54 = vpop.f32.mrf.mxu0 }
 0x101   : > { %v4088_v55 = vadd.f32 %v604_v54, %v4083_v52  ;;  %v638_v56 = vpop.f32.mrf.mxu1 }
 0x102   : > { %v4091_v57 = vadd.f32 %v638_v56, %v4085_v53 }
 0x103   : > { %v4094_v58 = vmul.f32 0.70710677, %v4088_v55 }
 0x104   : > { %v4097_v59 = vmul.f32 0.70710677, %v4091_v57 }
 0x105   : > { %v811_v61 = vmul.f32 %v4094_v58, %v4094_v58 }
 0x106   : > { %v851_v1 = vmul.f32 %v4097_v59, %v4097_v59 }
 0x107   : > { %v4107_v2 = vmin.f32 %v811_v61, 16.0 }
 0x108   : > { %v672_v3 = vpop.f32.mrf.mxu2  ;;  %v4109_v4 = vmin.f32 %v851_v1, 16.0  ;;  %v706_v6 = vpop.f32.mrf.mxu3 }
 0x109   : > { %v4112_v5 = vadd.f32 %v672_v3, %v4099_v60  ;;  %v824_v7 = vmul.f32 3.8918573e-05, %v4107_v2  ;;  %v4116_v8 = vadd.f32 %v706_v6, %v4103_v0  ;;  %v813_v9 = vmul.f32 2.1237322e-06, %v4107_v2  ;;  %v606_v28 = vpop.f32.mrf.mxu0 }
 0x10a   : > { %v864_v10 = vmul.f32 3.8918573e-05, %v4109_v4  ;;  %v853_v17 = vmul.f32 2.1237322e-06, %v4109_v4  ;;  %v4142_v35 = vadd.f32 %v606_v28, %v4083_v52 }
 0x10b   : > { %v825_v11 = vadd.f32 0.001143296, %v824_v7  ;;  %v4121_v15 = vmul.f32 0.70710677, %v4112_v5  ;;  %v4126_v18 = vmul.f32 0.70710677, %v4116_v8 }
 0x10c   : > { %v865_v14 = vadd.f32 0.001143296, %v864_v10  ;;  %v814_v19 = vadd.f32 0.00028619796, %v813_v9  ;;  %v854_v27 = vadd.f32 0.00028619796, %v853_v17 }
 0x10d   : > { %v826_v16 = vmul.f32 %v825_v11, %v4107_v2  ;;  %v891_v21 = vmul.f32 %v4121_v15, %v4121_v15  ;;  %v931_v23 = vmul.f32 %v4126_v18, %v4126_v18  ;;  %v4152_v46 = vmul.f32 0.70710677, %v4142_v35 }
 0x10e   : > { %v866_v20 = vmul.f32 %v865_v14, %v4109_v4  ;;  %v815_v29 = vmul.f32 %v814_v19, %v4107_v2  ;;  %v855_v39 = vmul.f32 %v854_v27, %v4109_v4 }
 0x10f   : > { %v827_v22 = vadd.f32 0.014752088, %v826_v16  ;;  %v4133_v25 = vmin.f32 %v891_v21, 16.0  ;;  %v4139_v32 = vmin.f32 %v931_v23, 16.0  ;;  %v971_v63 = vmul.f32 %v4152_v46, %v4152_v46 }
 0x110   : > { %v867_v24 = vadd.f32 0.014752088, %v866_v20  ;;  %v816_v38 = vadd.f32 0.0036580483, %v815_v29  ;;  %v856_v49 = vadd.f32 0.0036580483, %v855_v39 }
 0x111   : > { %v828_v26 = vmul.f32 %v827_v22, %v4107_v2  ;;  %v904_v31 = vmul.f32 3.8918573e-05, %v4133_v25  ;;  %v893_v40 = vmul.f32 2.1237322e-06, %v4133_v25  ;;  %v944_v41 = vmul.f32 3.8918573e-05, %v4139_v32 }
 0x112   : > { %v868_v30 = vmul.f32 %v867_v24, %v4109_v4  ;;  %v933_v44 = vmul.f32 2.1237322e-06, %v4139_v32  ;;  %v817_v48 = vmul.f32 %v816_v38, %v4107_v2  ;;  %v857_v6 = vmul.f32 %v856_v49, %v4109_v4 }
 0x113   : > { %v829_v33 = vadd.f32 0.112945676, %v828_v26  ;;  %v905_v37 = vadd.f32 0.001143296, %v904_v31  ;;  %v894_v50 = vadd.f32 0.00028619796, %v893_v40  ;;  %v640_v26 = vpop.f32.mrf.mxu1 }
 0x114   : > { %v869_v34 = vadd.f32 0.112945676, %v868_v30  ;;  %v945_v51 = vadd.f32 0.001143296, %v944_v41  ;;  %v934_v56 = vadd.f32 0.00028619796, %v933_v44 }
 0x115   : > { %v830_v36 = vmul.f32 %v829_v33, %v4107_v2  ;;  %v906_v43 = vmul.f32 %v905_v37, %v4133_v25  ;;  %v818_v3 = vadd.f32 0.05243302, %v817_v48  ;;  %v895_v7 = vmul.f32 %v894_v50, %v4133_v25 }
 0x116   : > { %v870_v42 = vmul.f32 %v869_v34, %v4109_v4  ;;  %v946_v1 = vmul.f32 %v945_v51, %v4139_v32  ;;  %v935_v10 = vmul.f32 %v934_v56, %v4139_v32  ;;  %v4166_v13 = vmin.f32 %v971_v63, 16.0 }
 0x117   : > { %v831_v45 = vadd.f32 0.4994258, %v830_v36  ;;  %v907_v47 = vadd.f32 0.014752088, %v906_v43  ;;  %v819_v16 = vmul.f32 %v818_v3, %v4107_v2  ;;  %v858_v17 = vadd.f32 0.05243302, %v857_v6 }
 0x118   : > { %v871_v54 = vadd.f32 0.4994258, %v870_v42  ;;  %v947_v14 = vadd.f32 0.014752088, %v946_v1  ;;  %v896_v19 = vadd.f32 0.0036580483, %v895_v7  ;;  %v4178_v33 = vadd.f32 %v640_v26, %v4085_v53 }
 0x119   : > { %v832_v61 = vmul.f32 %v831_v45, %v4107_v2  ;;  %v908_v62 = vmul.f32 %v907_v47, %v4133_v25  ;;  %v936_v22 = vadd.f32 0.0036580483, %v935_v10  ;;  %v984_v24 = vmul.f32 3.8918573e-05, %v4166_v13 }
 0x11a   : > { %v872_v9 = vmul.f32 %v871_v54, %v4109_v4  ;;  %v948_v23 = vmul.f32 %v947_v14, %v4139_v32  ;;  %v820_v29 = vadd.f32 0.18741608, %v819_v16  ;;  %v859_v30 = vmul.f32 %v858_v17, %v4109_v4 }
 0x11b   : > { %v4164_v11 = vadd.f32 1.0, %v832_v61  ;;  %v909_v12 = vadd.f32 0.112945676, %v908_v62  ;;  %v897_v31 = vmul.f32 %v896_v19, %v4133_v25  ;;  %v937_v34 = vmul.f32 %v936_v22, %v4139_v32  ;;  %v674_v62 = vpop.f32.mrf.mxu2 }
 0x11c   : > { %v4170_v21 = vadd.f32 1.0, %v872_v9  ;;  %v949_v28 = vadd.f32 0.112945676, %v948_v23  ;;  %v985_v37 = vadd.f32 0.001143296, %v984_v24  ;;  %v821_v44 = vmul.f32 %v820_v29, %v4107_v2  ;;  %v3409_v2 = vld [vmem:[#allocation10 + $0x28] sm:$0xff] }
 0x11d   : > { %v910_v20 = vmul.f32 %v909_v12, %v4133_v25  ;;  %3528 = vrcp.f32 %v4164_v11  ;;  %v860_v42 = vadd.f32 0.18741608, %v859_v30  ;;  %v898_v43 = vadd.f32 0.05243302, %v897_v31  ;;  %2773 = vmatpush.bf16.msrb.mxu0 %v3409_v2  ;;  %v3433_v29 = vld [vmem:[#allocation10 + $0xe8] sm:$0xff] }
 0x11e   : > { %3530 = vrcp.f32 %v4170_v21  ;;  %v950_v36 = vmul.f32 %v949_v28, %v4139_v32  ;;  %v986_v40 = vmul.f32 %v985_v37, %v4166_v13  ;;  %v938_v45 = vadd.f32 0.05243302, %v937_v34  ;;  %v3425_v28 = vld [vmem:[#allocation10 + $0xa8] sm:$0xff]  ;;  %2875 = vmatpush.bf16.msrb.mxu3 %v3433_v29 }
 0x11f   : > { %v911_v27 = vadd.f32 0.4994258, %v910_v20  ;;  %v4189_v47 = vmul.f32 0.70710677, %v4178_v33  ;;  %v4192_v48 = vmul.f32 0.5, %v4088_v55  ;;  %v4203_v63 = vmul.f32 0.5, %v4091_v57  ;;  %2841 = vmatpush.bf16.msrb.mxu2 %v3425_v28 }
 0x120   : > { %v951_v39 = vadd.f32 0.4994258, %v950_v36  ;;  %v987_v49 = vadd.f32 0.014752088, %v986_v40  ;;  %v973_v61 = vmul.f32 2.1237322e-06, %v4166_v13  ;;  %v861_v55 = vmul.f32 %v860_v42, %v4109_v4 }
 0x121   : > { %v912_v38 = vmul.f32 %v911_v27, %v4133_v25  ;;  %v899_v1 = vmul.f32 %v898_v43, %v4133_v25  ;;  %v822_v6 = vadd.f32 1.1283791, %v821_v44  ;;  %v4209_v7 = vmul.f32 0.5, %v4112_v5 }
 0x122   : > { %v952_v56 = vmul.f32 %v951_v39, %v4139_v32  ;;  %v988_v3 = vmul.f32 %v987_v49, %v4166_v13  ;;  %v939_v9 = vmul.f32 %v938_v45, %v4139_v32  ;;  %v1011_v10 = vmul.f32 %v4189_v47, %v4189_v47 }
 0x123   : > { %v4185_v41 = vpop.eup %3528  ;;  %v4198_v54 = vadd.f32 1.0, %v912_v38  ;;  %v4217_v12 = vmul.f32 0.5, %v4116_v8  ;;  %v4220_v14 = vadd.f32 %v674_v62, %v4099_v60  ;;  %v974_v17 = vadd.f32 0.00028619796, %v973_v61  ;;  %v708_v61 = vpop.f32.mrf.mxu3 }
 0x124   : > { %v4194_v50 = vpop.eup %3530  ;;  %v835_v51 = vmul.f32 %v4185_v41, %v4164_v11  ;;  %v989_v4 = vadd.f32 0.112945676, %v988_v3  ;;  %v4223_v5 = vadd.f32 1.0, %v952_v56  ;;  %v843_v19 = vand.u32 2147483647, %v4164_v11 }
 0x125   : > { %v875_v57 = vmul.f32 %v4194_v50, %v4170_v21  ;;  %3532 = vrcp.f32 %v4198_v54  ;;  %v862_v20 = vadd.f32 1.1283791, %v861_v55  ;;  %v900_v22 = vadd.f32 0.18741608, %v899_v1 }
 0x126   : > { %v836_v16 = vsub.f32 1.0, %v835_v51  ;;  %v990_v23 = vmul.f32 %v989_v4, %v4166_v13  ;;  %v4228_v24 = vmul.f32 %v822_v6, %v4094_v58  ;;  %v940_v8 = vadd.f32 0.18741608, %v939_v9  ;;  %v3417_v6 = vld [vmem:[#allocation10 + $0x68] sm:$0xff] }
 0x127   : > { %v4231_v26 = vmul.f32 0.5, %v4142_v35  ;;  %v4233_v27 = vmin.f32 %v1011_v10, 16.0  ;;  %vm839_vm0 = vweird.f32 %v4164_v11  ;;  %v876_v30 = vsub.f32 1.0, %v875_v57  ;;  %2807 = vmatpush.bf16.msrb.mxu1 %v3417_v6 }
 0x128   : > { %v991_v31 = vadd.f32 0.4994258, %v990_v23  ;;  %v4237_v34 = vmul.f32 0.70710677, %v4220_v14  ;;  %v837_v36 = vmul.f32 %v4185_v41, %v836_v16  ;;  %3534 = vrcp.f32 %v4223_v5 }
 0x129   : > { %v975_v58 = vmul.f32 %v974_v17, %v4166_v13  ;;  %v1024_v35 = vmul.f32 3.8918573e-05, %v4233_v27  ;;  %v845_v37 = vand.u32 2147483648, %v4164_v11  ;;  %v4245_v38 = vmul.f32 %v862_v20, %v4097_v59 }
 0x12a   : > { %v883_v39 = vand.u32 2147483647, %v4170_v21  ;;  %v992_v40 = vmul.f32 %v991_v31, %v4166_v13  ;;  %vm879_vm1 = vweird.f32 %v4170_v21  ;;  %v885_v43 = vand.u32 2147483648, %v4170_v21 }
 0x12b   : > { %v4249_v42 = vpop.eup %3532  ;;  %v901_v44 = vmul.f32 %v900_v22, %v4133_v25  ;;  %v1025_v45 = vadd.f32 0.001143296, %v1024_v35  ;;  %v1051_v49 = vmul.f32 %v4237_v34, %v4237_v34  ;;  %vm840_vm2 = vweird.f32 %v4185_v41 }
 0x12c   : > { %v877_v59 = vmul.f32 %v4194_v50, %v876_v30  ;;  %v941_v51 = vmul.f32 %v940_v8, %v4139_v32  ;;  %v4259_v56 = vadd.f32 1.0, %v992_v40  ;;  %v838_v2 = vadd.f32 %v4185_v41, %v837_v36  ;;  %vm4286_vm5 = vmor %vm839_vm0, %vm840_vm2 }
 0x12d   : > { %v976_v62 = vadd.f32 0.0036580483, %v975_v58  ;;  %v1026_v55 = vmul.f32 %v1025_v45, %v4233_v27  ;;  %v4263_v1 = vmin.f32 %v1051_v49, 16.0  ;;  %vm4265_vm3 = vcmp.eq.f32.partialorder %v843_v19, 8.507059e+37 }
 0x12e   : > { %v915_v3 = vmul.f32 %v4249_v42, %v4198_v54  ;;  %3536 = vrcp.f32 %v4259_v56  ;;  %v1013_v32 = vmul.f32 2.1237322e-06, %v4233_v27  ;;  %v4273_v9 = vpop.eup %3534  ;;  %v846_v10 = vor.u32 1.1754944e-38, %v845_v37 }
 0x12f   : > { %vm4275_vm4 = vcmp.eq.f32.partialorder %v883_v39, 8.507059e+37  ;;  %v902_v4 = vadd.f32 1.1283791, %v901_v44  ;;  %v4280_v16 = vadd.f32 %v708_v61, %v4103_v0  ;;  %vm880_vm6 = vweird.f32 %v4194_v50 }
 0x130   : > { %v886_v19 = vor.u32 1.1754944e-38, %v885_v43  ;;  %v942_v20 = vadd.f32 1.1283791, %v941_v51  ;;  %v1027_v22 = vadd.f32 0.014752088, %v1026_v55  ;;  %v842_v23 = vsel %vm4286_vm5, %v4185_v41, %v838_v2  ;;  %vm4313_vm7 = vmor %vm879_vm1, %vm880_vm6 }
 0x131   : > { %v878_v8 = vadd.f32 %v4194_v50, %v877_v59  ;;  %v977_v28 = vmul.f32 %v976_v62, %v4166_v13  ;;  %v1064_v11 = vmul.f32 3.8918573e-05, %v4263_v1  ;;  %v916_v29 = vsub.f32 1.0, %v915_v3 }
 0x132   : > { %v955_v30 = vmul.f32 %v4273_v9, %v4223_v5  ;;  %v1014_v31 = vadd.f32 0.00028619796, %v1013_v32  ;;  %v1028_v36 = vmul.f32 %v1027_v22, %v4233_v27  ;;  %v4301_v58 = vmul.f32 %v902_v4, %v4121_v15 }
 0x133   : > { %v1053_v35 = vmul.f32 2.1237322e-06, %v4263_v1  ;;  %v1065_v37 = vadd.f32 0.001143296, %v1064_v11  ;;  %v4305_v41 = vmul.f32 0.70710677, %v4280_v16  ;;  %vm919_vm8 = vweird.f32 %v4198_v54 }
 0x134   : > { %v4307_v39 = vpop.eup %3536  ;;  %v923_v15 = vand.u32 2147483647, %v4198_v54  ;;  %v925_v43 = vand.u32 2147483648, %v4198_v54  ;;  %v4321_v44 = vmul.f32 %v942_v20, %v4126_v18  ;;  %v1029_v45 = vadd.f32 0.112945676, %v1028_v36 }
 0x135   : > { %v847_v49 = vsel %vm4265_vm3, %v846_v10, %v842_v23  ;;  %v882_v21 = vsel %vm4313_vm7, %v4194_v50, %v878_v8  ;;  %v978_v59 = vadd.f32 0.05243302, %v977_v28  ;;  %v1066_v51 = vmul.f32 %v1065_v37, %v4263_v1  ;;  %v609_v8 = vpop.f32.mrf.mxu0 }
 0x136   : > { %v917_v61 = vmul.f32 %v4249_v42, %v916_v29  ;;  %v956_v2 = vsub.f32 1.0, %v955_v30  ;;  %v1015_v62 = vmul.f32 %v1014_v31, %v4233_v27  ;;  %v1030_v55 = vmul.f32 %v1029_v45, %v4233_v27 }
 0x137   : > { %v995_v18 = vmul.f32 %v4307_v39, %v4259_v56  ;;  %v1054_v3 = vadd.f32 0.00028619796, %v1053_v35  ;;  %v1067_v25 = vadd.f32 0.014752088, %v1066_v51  ;;  %v1091_v32 = vmul.f32 %v4305_v41, %v4305_v41 }
 0x138   : > { %v848_v50 = vmul.f32 %v847_v49, %v4228_v24  ;;  %v887_v6 = vsel %vm4275_vm4, %v886_v19, %v882_v21  ;;  %v926_v10 = vor.u32 1.1754944e-38, %v925_v43  ;;  %v1031_v4 = vadd.f32 0.4994258, %v1030_v55 }
 0x139   : > { %vm920_vm9 = vweird.f32 %v4249_v42  ;;  %vm4340_vm10 = vcmp.eq.f32.partialorder %v923_v15, 8.507059e+37  ;;  %v979_v20 = vmul.f32 %v978_v59, %v4166_v13  ;;  %v1068_v22 = vmul.f32 %v1067_v25, %v4263_v1 }
 0x13a   : > { %v4346_v23 = vmin.f32 %v1091_v32, 16.0  ;;  %v918_v24 = vadd.f32 %v4249_v42, %v917_v61  ;;  %v957_v57 = vmul.f32 %v4273_v9, %v956_v2  ;;  %v1016_v19 = vadd.f32 0.0036580483, %v1015_v62  ;;  %vm4364_vm12 = vmor %vm919_vm8, %vm920_vm9 }
 0x13b   : > { %v1032_v28 = vmul.f32 %v1031_v4, %v4233_v27  ;;  %v996_v11 = vsub.f32 1.0, %v995_v18  ;;  %v1055_v29 = vmul.f32 %v1054_v3, %v4263_v1  ;;  %v1069_v30 = vadd.f32 0.112945676, %v1068_v22 }
 0x13c   : > { %v1104_v31 = vmul.f32 3.8918573e-05, %v4346_v23  ;;  %v888_v36 = vmul.f32 %v887_v6, %v4245_v38  ;;  %vm959_vm11 = vweird.f32 %v4223_v5  ;;  %v4358_v37 = vadd.f32 %v609_v8, %v4083_v52 }
 0x13d   : > { %v4355_v35 = vadd.f32 1.0, %v1032_v28  ;;  %v963_v15 = vand.u32 2147483647, %v4223_v5  ;;  %v980_v43 = vadd.f32 0.18741608, %v979_v20  ;;  %v1070_v38 = vmul.f32 %v1069_v30, %v4263_v1 }
 0x13e   : > { %v1105_v45 = vadd.f32 0.001143296, %v1104_v31  ;;  %v922_v49 = vsel %vm4364_vm12, %v4249_v42, %v918_v24  ;;  %v958_v21 = vadd.f32 %v4273_v9, %v957_v57  ;;  %vm960_vm13 = vweird.f32 %v4273_v9 }
 0x13f   : > { %v1017_v54 = vmul.f32 %v1016_v19, %v4233_v27  ;;  %v997_v59 = vmul.f32 %v4307_v39, %v996_v11  ;;  %3538 = vrcp.f32 %v4355_v35  ;;  %v1056_v51 = vadd.f32 0.0036580483, %v1055_v29  ;;  %vm4386_vm14 = vmor %vm959_vm11, %vm960_vm13  ;;  %v643_v29 = vpop.f32.mrf.mxu1 }
 0x140   : > { %v1093_v61 = vmul.f32 2.1237322e-06, %v4346_v23  ;;  %v965_v2 = vand.u32 2147483648, %v4223_v5  ;;  %v1071_v62 = vadd.f32 0.4994258, %v1070_v38  ;;  %v1106_v55 = vmul.f32 %v1105_v45, %v4346_v23  ;;  %v3408_v38 = vld [vmem:[#allocation10 + $0x20] sm:$0xff] }
 0x141   : > { %v4382_v42 = vmul.f32 0.70710677, %v4358_v37  ;;  %v3196_v18 = vclamps-f32 %v848_v50, 1.0  ;;  %v3197_v3 = vclamps-f32 %v888_v36, 1.0  ;;  %vm4390_vm15 = vcmp.eq.f32.partialorder %v963_v15, 8.507059e+37  ;;  %2774 = vmatpush.bf16.msrb.mxu0 %v3408_v38 }
 0x142   : > { %v981_v6 = vmul.f32 %v980_v43, %v4166_v13  ;;  %v927_v4 = vsel %vm4340_vm10, %v926_v10, %v922_v49  ;;  %v962_v50 = vsel %vm4386_vm14, %v4273_v9, %v958_v21  ;;  %v1018_v20 = vadd.f32 0.05243302, %v1017_v54  ;;  %v677_v43 = vpop.f32.mrf.mxu2 }
 0x143   : > { %v1107_v22 = vadd.f32 0.014752088, %v1106_v55  ;;  %v998_v5 = vadd.f32 %v4307_v39, %v997_v59  ;;  %vm1000_vm0 = vweird.f32 %v4307_v39  ;;  %v1057_v8 = vmul.f32 %v1056_v51, %v4263_v1 }
 0x144   : > { %v1094_v24 = vadd.f32 0.00028619796, %v1093_v61  ;;  %v966_v57 = vor.u32 1.1754944e-38, %v965_v2  ;;  %v1072_v19 = vmul.f32 %v1071_v62, %v4263_v1  ;;  %v1131_v10 = vmul.f32 %v4382_v42, %v4382_v42 }
 0x145   : > { %v1108_v13 = vmul.f32 %v1107_v22, %v4346_v23  ;;  %v4407_v17 = vpop.eup %3538  ;;  %v2411_v9 = vadd.f32 1.0, %v3196_v18  ;;  %v982_v28 = vadd.f32 1.1283791, %v981_v6  ;;  %vm999_vm1 = vweird.f32 %v4259_v56 }
 0x146   : > { %v1005_v11 = vand.u32 2147483648, %v4259_v56  ;;  %v928_v30 = vmul.f32 %v927_v4, %v4301_v58  ;;  %v967_v31 = vsel %vm4390_vm15, %v966_v57, %v962_v50  ;;  %vm4416_vm2 = vmor %vm999_vm1, %vm1000_vm0  ;;  %v1003_v40 = vand.u32 2147483647, %v4259_v56  ;;  %v711_v57 = vpop.f32.mrf.mxu3 }
 0x147   : > { %v1019_v15 = vmul.f32 %v1018_v20, %v4233_v27  ;;  %v1002_v45 = vsel %vm4416_vm2, %v4307_v39, %v998_v5  ;;  %v1058_v58 = vadd.f32 0.05243302, %v1057_v8  ;;  %v1095_v49 = vmul.f32 %v1094_v24, %v4346_v23  ;;  %v3424_v39 = vld [vmem:[#allocation10 + $0xa0] sm:$0xff] }
 0x148   : > { %v1109_v21 = vadd.f32 0.112945676, %v1108_v13  ;;  %v1035_v54 = vmul.f32 %v4407_v17, %v4355_v35  ;;  %v4428_v59 = vadd.f32 1.0, %v1072_v19  ;;  %v4430_v51 = vmin.f32 %v1131_v10, 16.0  ;;  %2842 = vmatpush.bf16.msrb.mxu2 %v3424_v39  ;;  %v3432_v8 = vld [vmem:[#allocation10 + $0xe0] sm:$0xff] }
 0x149   : > { %v4433_v56 = vadd.f32 %v643_v29, %v4085_v53  ;;  %v2412_v61 = vadd.f32 1.0, %v3197_v3  ;;  %v1006_v2 = vor.u32 1.1754944e-38, %v1005_v11  ;;  %v4437_v55 = vadd.f32 %v677_v43, %v4099_v60  ;;  %v3416_v19 = vld [vmem:[#allocation10 + $0x60] sm:$0xff]  ;;  %2876 = vmatpush.bf16.msrb.mxu3 %v3432_v8  ;;  %v611_v43 = vpop.f32.mrf.mxu0 }
 0x14a   : > { %6108 = vst [vmem:[#allocation17_spill] sm:$0xff] %v4430_v51  ;;  %v1110_v62 = vmul.f32 %v1109_v21, %v4346_v23  ;;  %v3198_v18 = vclamps-f32 %v928_v30, 1.0  ;;  %v968_v25 = vmul.f32 %v967_v31, %v4321_v44  ;;  %v983_v32 = vmul.f32 %v982_v28, %v4152_v46  ;;  %2808 = vmatpush.bf16.msrb.mxu1 %v3416_v19 }
 0x14b   : > { %vm1004_vm3 = vcmp.eq.f32.partialorder %v1003_v40, 8.507059e+37  ;;  %v1020_v4 = vadd.f32 0.18741608, %v1019_v15  ;;  %v1059_v50 = vmul.f32 %v1058_v58, %v4263_v1  ;;  %v1096_v20 = vadd.f32 0.0036580483, %v1095_v49 }
 0x14c   : > { %v1007_v6 = vsel %vm1004_vm3, %v1006_v2, %v1002_v45  ;;  %v1036_v3 = vsub.f32 1.0, %v1035_v54  ;;  %3540 = vrcp.f32 %v4428_v59  ;;  %v1133_v22 = vmul.f32 2.1237322e-06, %v4430_v51 }
 0x14d   : > { %v4445_v5 = vmul.f32 0.70710677, %v4433_v56  ;;  %v4448_v44 = vmul.f32 0.5, %v4178_v33  ;;  %v1111_v46 = vadd.f32 0.4994258, %v1110_v62  ;;  %v2413_v13 = vadd.f32 1.0, %v3198_v18 }
 0x14e   : > { %v4451_v24 = vmul.f32 0.70710677, %v4437_v55  ;;  %v3199_v10 = vclamps-f32 %v968_v25, 1.0  ;;  %v1008_v28 = vmul.f32 %v1007_v6, %v983_v32  ;;  %v4454_v11 = vmul.f32 0.5, %v4220_v14 }
 0x14f   : > { %v4457_v29 = vmul.f32 %v2411_v9, %v4192_v48  ;;  %v4460_v30 = vmul.f32 %v2412_v61, %v4203_v63  ;;  %v1060_v33 = vadd.f32 0.18741608, %v1059_v50  ;;  %v1097_v31 = vmul.f32 %v1096_v20, %v4346_v23  ;;  %v645_v50 = vpop.f32.mrf.mxu1 }
 0x150   : > { %v1037_v36 = vmul.f32 %v4407_v17, %v1036_v3  ;;  %v1134_v40 = vadd.f32 0.00028619796, %v1133_v22  ;;  %v1171_v15 = vmul.f32 %v4445_v5, %v4445_v5  ;;  %v4467_v14 = vadd.f32 %v711_v57, %v4103_v0 }
 0x151   : > { %6109 = vst [vmem:[#allocation18_spill] sm:$0xff] %v4457_v29  ;;  %v1021_v48 = vmul.f32 %v1020_v4, %v4233_v27  ;;  %v4471_v9 = vmul.f32 0.5, %v4280_v16  ;;  %v1112_v63 = vmul.f32 %v1111_v46, %v4346_v23  ;;  %v1211_v38 = vmul.f32 %v4451_v24, %v4451_v24  ;;  %v3429_v29 = vld [vmem:[#allocation10 + $0xc8] sm:$0xff] }
 0x152   : > { %6110 = vst [vmem:[#allocation19_spill] sm:$0xff] %v4460_v30  ;;  %v4476_v45 = vpop.eup %3540  ;;  %v4479_v58 = vmul.f32 %v2413_v13, %v4209_v7  ;;  %v2414_v49 = vadd.f32 1.0, %v3199_v10  ;;  %v3200_v21 = vclamps-f32 %v1008_v28, 1.0  ;;  %v4482_v54 = vmul.f32 0.5, %v4358_v37  ;;  %v679_v10 = vpop.f32.mrf.mxu2  ;;  %v3423_v28 = vld [vmem:[#allocation10 + $0x98] sm:$0xff] }
 0x153   : > { %vm1040_vm4 = vweird.f32 %v4407_v17  ;;  %v1061_v27 = vmul.f32 %v1060_v33, %v4263_v1  ;;  %v1098_v16 = vadd.f32 0.05243302, %v1097_v31  ;;  %v4487_v61 = vadd.f32 %v611_v43, %v4083_v52  ;;  %2843 = vmatpush.bf16.msrb.mxu2 %v3423_v28 }
 0x154   : > { %6111 = vst [vmem:[#allocation20_spill] sm:$0xff] %v4479_v58  ;;  %v1038_v2 = vadd.f32 %v4407_v17, %v1037_v36  ;;  %v1135_v62 = vmul.f32 %v1134_v40, %v4430_v51  ;;  %v4491_v39 = vmin.f32 %v1171_v15, 16.0  ;;  %v4494_v7 = vmul.f32 0.70710677, %v4467_v14  ;;  %v3407_v40 = vld [vmem:[#allocation10 + $0x18] sm:$0xff] }
 0x155   : > { %6112 = vst [vmem:[#allocation21_spill] sm:$0xff] %v4482_v54  ;;  %v1022_v18 = vadd.f32 1.1283791, %v1021_v48  ;;  %v1075_v37 = vmul.f32 %v4476_v45, %v4428_v59  ;;  %v4498_v25 = vadd.f32 1.0, %v1112_v63  ;;  %v4500_v1 = vmin.f32 %v1211_v38, 16.0  ;;  %2775 = vmatpush.bf16.msrb.mxu0 %v3407_v40 }
 0x156   : > { %vm1039_vm5 = vweird.f32 %v4355_v35  ;;  %v1043_v32 = vand.u32 2147483647, %v4355_v35  ;;  %v1045_v6 = vand.u32 2147483648, %v4355_v35  ;;  %v1251_v4 = vmul.f32 %v4494_v7, %v4494_v7 }
 0x157   : > { %6113 = vst [vmem:[#allocation22_spill] sm:$0xff] %v4500_v1  ;;  %v2415_v20 = vadd.f32 1.0, %v3200_v21  ;;  %vm4509_vm6 = vmor %vm1039_vm5, %vm1040_vm4  ;;  %v1062_v22 = vadd.f32 1.1283791, %v1061_v27  ;;  %v1099_v8 = vmul.f32 %v1098_v16, %v4346_v23  ;;  %v4515_v46 = vmul.f32 0.70710677, %v4487_v61 }
 0x158   : > { %v4518_v57 = vmul.f32 %v2414_v49, %v4217_v12  ;;  %v1042_v35 = vsel %vm4509_vm6, %v4407_v17, %v1038_v2  ;;  %v1136_v19 = vadd.f32 0.0036580483, %v1135_v62  ;;  %v1173_v13 = vmul.f32 2.1237322e-06, %v4491_v39  ;;  %v3415_v12 = vld [vmem:[#allocation10 + $0x58] sm:$0xff] }
 0x159   : > { %v1076_v33 = vsub.f32 1.0, %v1075_v37  ;;  %3542 = vrcp.f32 %v4498_v25  ;;  %v1213_v31 = vmul.f32 2.1237322e-06, %v4500_v1  ;;  %v4527_v36 = vadd.f32 %v645_v50, %v4085_v53  ;;  %2809 = vmatpush.bf16.msrb.mxu1 %v3415_v12  ;;  %v713_v37 = vpop.f32.mrf.mxu3 }
 0x15a   : > { %6116 = vst [vmem:[#allocation23_spill] sm:$0xff] %v4518_v57  ;;  %v1023_v15 = vmul.f32 %v1022_v18, %v4189_v47  ;;  %vm1044_vm7 = vcmp.eq.f32.partialorder %v1043_v32, 8.507059e+37  ;;  %v1046_v43 = vor.u32 1.1754944e-38, %v1045_v6  ;;  %v4530_v17 = vmin.f32 %v1251_v4, 16.0 }
 0x15b   : > { %v4533_v48 = vmul.f32 %v2415_v20, %v4231_v26  ;;  %v1100_v63 = vadd.f32 0.18741608, %v1099_v8  ;;  %v1291_v38 = vmul.f32 %v4515_v46, %v4515_v46  ;;  %v4538_v49 = vadd.f32 %v679_v10, %v4099_v60  ;;  %v3431_v8 = vld [vmem:[#allocation10 + $0xd8] sm:$0xff] }
 0x15c   : > { %6117 = vst [vmem:[#allocation24_spill] sm:$0xff] %v4530_v17  ;;  %v1047_v21 = vsel %vm1044_vm7, %v1046_v43, %v1042_v35  ;;  %v4541_v47 = vmul.f32 %v1062_v22, %v4237_v34  ;;  %v1083_v27 = vand.u32 2147483647, %v4428_v59  ;;  %v1137_v16 = vmul.f32 %v1136_v19, %v4430_v51  ;;  %2877 = vmatpush.bf16.msrb.mxu3 %v3431_v8 }
 0x15d   : > { %6118 = vst [vmem:[#allocation25_spill] sm:$0xff] %v4533_v48  ;;  %v1077_v26 = vmul.f32 %v4476_v45, %v1076_v33  ;;  %v1174_v2 = vadd.f32 0.00028619796, %v1173_v13  ;;  %v1214_v62 = vadd.f32 0.00028619796, %v1213_v31  ;;  %vm1079_vm8 = vweird.f32 %v4428_v59 }
 0x15e   : > { %v4547_v18 = vmul.f32 0.70710677, %v4527_v36  ;;  %v1085_v32 = vand.u32 2147483648, %v4428_v59  ;;  %v4552_v6 = vmul.f32 0.5, %v4433_v56  ;;  %v1253_v34 = vmul.f32 2.1237322e-06, %v4530_v17 }
 0x15f   : > { %v4555_v4 = vpop.eup %3542  ;;  %v1101_v50 = vmul.f32 %v1100_v63, %v4346_v23  ;;  %v4558_v20 = vmin.f32 %v1291_v38, 16.0  ;;  %v4563_v22 = vmul.f32 0.70710677, %v4538_v49  ;;  %v1048_v35 = vmul.f32 %v1047_v21, %v1023_v15  ;;  %v614_v21 = vpop.f32.mrf.mxu0 }
 0x160   : > { %6119 = vst [vmem:[#allocation26_spill] sm:$0xff] %v4552_v6  ;;  %v1331_v3 = vmul.f32 %v4547_v18, %v4547_v18  ;;  %vm1080_vm9 = vweird.f32 %v4476_v45  ;;  %vm4566_vm10 = vcmp.eq.f32.partialorder %v1083_v27, 8.507059e+37  ;;  %v4571_v19 = vadd.f32 %v713_v37, %v4103_v0  ;;  %v3406_v27 = vld [vmem:[#allocation10 + $0x10] sm:$0xff] }
 0x161   : > { %v1078_v23 = vadd.f32 %v4476_v45, %v1077_v26  ;;  %v1138_v13 = vadd.f32 0.05243302, %v1137_v16  ;;  %v1175_v10 = vmul.f32 %v1174_v2, %v4491_v39  ;;  %v1215_v28 = vmul.f32 %v1214_v62, %v4500_v1  ;;  %vm4590_vm11 = vmor %vm1079_vm8, %vm1080_vm9  ;;  %2776 = vmatpush.bf16.msrb.mxu0 %v3406_v27  ;;  %v3430_v27 = vld [vmem:[#allocation10 + $0xd0] sm:$0xff] }
 0x162   : > { %v1086_v33 = vor.u32 1.1754944e-38, %v1085_v32  ;;  %v1115_v31 = vmul.f32 %v4555_v4, %v4498_v25  ;;  %v4579_v40 = vmul.f32 0.5, %v4437_v55  ;;  %v1254_v12 = vadd.f32 0.00028619796, %v1253_v34  ;;  %2878 = vmatpush.bf16.msrb.mxu3 %v3430_v27 }
 0x163   : > { %v1102_v15 = vadd.f32 1.1283791, %v1101_v50  ;;  %v1293_v43 = vmul.f32 2.1237322e-06, %v4558_v20  ;;  %v4582_v63 = vmin.f32 %v1331_v3, 16.0  ;;  %v1371_v38 = vmul.f32 %v4563_v22, %v4563_v22  ;;  %v3414_v50 = vld [vmem:[#allocation10 + $0x50] sm:$0xff] }
 0x164   : > { %6122 = vst [vmem:[#allocation27_spill] sm:$0xff] %v4579_v40  ;;  %v3201_v16 = vclamps-f32 %v1048_v35, 1.0  ;;  %v4595_v55 = vmul.f32 0.5, %v4467_v14  ;;  %v4598_v2 = vmul.f32 0.5, %v4487_v61  ;;  %v4601_v62 = vmul.f32 0.70710677, %v4571_v19  ;;  %2810 = vmatpush.bf16.msrb.mxu1 %v3414_v50 }
 0x165   : > { %6123 = vst [vmem:[#allocation28_spill] sm:$0xff] %v4582_v63  ;;  %v1082_v37 = vsel %vm4590_vm11, %v4476_v45, %v1078_v23  ;;  %v1139_v32 = vmul.f32 %v1138_v13, %v4430_v51  ;;  %v1176_v59 = vadd.f32 0.0036580483, %v1175_v10  ;;  %v1216_v34 = vadd.f32 0.0036580483, %v1215_v28  ;;  %v648_v13 = vpop.f32.mrf.mxu1 }
 0x166   : > { %6126 = vst [vmem:[#allocation29_spill] sm:$0xff] %v4595_v55  ;;  %v1116_v3 = vsub.f32 1.0, %v1115_v31  ;;  %v1255_v14 = vmul.f32 %v1254_v12, %v4530_v17  ;;  %v1411_v61 = vmul.f32 %v4601_v62, %v4601_v62  ;;  %v4611_v8 = vadd.f32 %v614_v21, %v4083_v52  ;;  %v3422_v21 = vld [vmem:[#allocation10 + $0x90] sm:$0xff]  ;;  %2879 = vmatpush.bf16.msrb.mxu3 %v3429_v29 }
 0x167   : > { %6127 = vst [vmem:[#allocation30_spill] sm:$0xff] %v4598_v2  ;;  %v4614_v35 = vmul.f32 %v1102_v15, %v4305_v41  ;;  %v1294_v26 = vadd.f32 0.00028619796, %v1293_v43  ;;  %v1333_v45 = vmul.f32 2.1237322e-06, %v4582_v63  ;;  %v4617_v23 = vmin.f32 %v1371_v38, 16.0  ;;  %v682_v38 = vpop.f32.mrf.mxu2  ;;  %2844 = vmatpush.bf16.msrb.mxu2 %v3422_v21 }
 0x168   : > { %vm1119_vm12 = vweird.f32 %v4498_v25  ;;  %v1123_v10 = vand.u32 2147483647, %v4498_v25  ;;  %v4621_v28 = vmin.f32 %v1411_v61, 16.0  ;;  %v4624_v31 = vmul.f32 0.70710677, %v4611_v8 }
 0x169   : > { %6128 = vst [vmem:[#allocation31_spill] sm:$0xff] %v4617_v23  ;;  %v1087_v41 = vsel %vm4566_vm10, %v1086_v33, %v1082_v37  ;;  %v1140_v12 = vadd.f32 0.18741608, %v1139_v32  ;;  %v1177_v15 = vmul.f32 %v1176_v59, %v4491_v39  ;;  %v1217_v43 = vmul.f32 %v1216_v34, %v4500_v1 }
 0x16a   : > { %6129 = vst [vmem:[#allocation32_spill] sm:$0xff] %v4621_v28  ;;  %v1117_v50 = vmul.f32 %v4555_v4, %v1116_v3  ;;  %v1256_v55 = vadd.f32 0.0036580483, %v1255_v14  ;;  %v1451_v61 = vmul.f32 %v4624_v31, %v4624_v31  ;;  %v4634_v40 = vadd.f32 %v648_v13, %v4085_v53 }
 0x16b   : > { %v1125_v56 = vand.u32 2147483648, %v4498_v25  ;;  %v1295_v33 = vmul.f32 %v1294_v26, %v4558_v20  ;;  %v1334_v37 = vadd.f32 0.00028619796, %v1333_v45  ;;  %v1373_v32 = vmul.f32 2.1237322e-06, %v4617_v23  ;;  %v716_v45 = vpop.f32.mrf.mxu3 }
 0x16c   : > { %v2416_v59 = vadd.f32 1.0, %v3201_v16  ;;  %v1413_v34 = vmul.f32 2.1237322e-06, %v4621_v28  ;;  %v4640_v3 = vmin.f32 %v1451_v61, 16.0  ;;  %v4643_v14 = vadd.f32 %v682_v38, %v4099_v60 }
 0x16d   : > { %v1088_v13 = vmul.f32 %v1087_v41, %v4541_v47  ;;  %v1141_v6 = vmul.f32 %v1140_v12, %v4430_v51  ;;  %v1178_v2 = vadd.f32 0.05243302, %v1177_v15  ;;  %v4648_v26 = vmul.f32 0.70710677, %v4634_v40 }
 0x16e   : > { %6130 = vst [vmem:[#allocation33_spill] sm:$0xff] %v4640_v3  ;;  %v1118_v21 = vadd.f32 %v4555_v4, %v1117_v50  ;;  %vm1120_vm13 = vweird.f32 %v4555_v4  ;;  %vm4652_vm14 = vcmp.eq.f32.partialorder %v1123_v10, 8.507059e+37  ;;  %v1218_v27 = vadd.f32 0.05243302, %v1217_v43 }
 0x16f   : > { %v1257_v38 = vmul.f32 %v1256_v55, %v4530_v17  ;;  %v1296_v61 = vadd.f32 0.0036580483, %v1295_v33  ;;  %v1335_v47 = vmul.f32 %v1334_v37, %v4582_v63  ;;  %v1374_v41 = vadd.f32 0.00028619796, %v1373_v32  ;;  %vm4669_vm15 = vmor %vm1119_vm12, %vm1120_vm13  ;;  %v3405_v32 = vld [vmem:[#allocation10 + $0x8] sm:$0xff] }
 0x170   : > { %v1491_v12 = vmul.f32 %v4648_v26, %v4648_v26  ;;  %v1414_v15 = vadd.f32 0.00028619796, %v1413_v34  ;;  %v1453_v54 = vmul.f32 2.1237322e-06, %v4640_v3  ;;  %v4662_v50 = vmul.f32 0.70710677, %v4643_v14  ;;  %2777 = vmatpush.bf16.msrb.mxu0 %v3405_v32 }
 0x171   : > { %v4665_v10 = vadd.f32 %v716_v45, %v4103_v0  ;;  %v3202_v51 = vclamps-f32 %v1088_v13, 1.0  ;;  %v1126_v43 = vor.u32 1.1754944e-38, %v1125_v56  ;;  %v1142_v33 = vadd.f32 1.1283791, %v1141_v6  ;;  %v616_v13 = vpop.f32.mrf.mxu0 }
 0x172   : > { %v1179_v37 = vmul.f32 %v1178_v2, %v4491_v39  ;;  %v1122_v34 = vsel %vm4669_vm15, %v4555_v4, %v1118_v21  ;;  %v1219_v57 = vmul.f32 %v1218_v27, %v4500_v1  ;;  %v4678_v45 = vmin.f32 %v1491_v12, 16.0  ;;  %v3413_v12 = vld [vmem:[#allocation10 + $0x48] sm:$0xff] }
 0x173   : > { %v1531_v25 = vmul.f32 %v4662_v50, %v4662_v50  ;;  %v1258_v58 = vadd.f32 0.05243302, %v1257_v38  ;;  %v1297_v30 = vmul.f32 %v1296_v61, %v4558_v20  ;;  %v1375_v6 = vmul.f32 %v1374_v41, %v4617_v23  ;;  %2811 = vmatpush.bf16.msrb.mxu1 %v3413_v12 }
 0x174   : > { %6135 = vst [vmem:[#allocation34_spill] sm:$0xff] %v4678_v45  ;;  %v4685_v2 = vmul.f32 0.70710677, %v4665_v10  ;;  %v1336_v56 = vadd.f32 0.0036580483, %v1335_v47  ;;  %v1415_v4 = vmul.f32 %v1414_v15, %v4621_v28  ;;  %v2417_v55 = vadd.f32 1.0, %v3202_v51  ;;  %v650_v15 = vpop.f32.mrf.mxu1 }
 0x175   : > { %v1454_v21 = vadd.f32 0.00028619796, %v1453_v54  ;;  %v4688_v27 = vmin.f32 %v1531_v25, 16.0  ;;  %v1180_v48 = vadd.f32 0.18741608, %v1179_v37  ;;  %v4693_v61 = vadd.f32 %v616_v13, %v4083_v52  ;;  %v3421_v25 = vld [vmem:[#allocation10 + $0x88] sm:$0xff] }
 0x176   : > { %6136 = vst [vmem:[#allocation35_spill] sm:$0xff] %v4685_v2  ;;  %v1571_v38 = vmul.f32 %v4685_v2, %v4685_v2  ;;  %v4696_v41 = vmul.f32 %v2416_v59, %v4448_v44  ;;  %v4699_v32 = vmul.f32 %v1142_v33, %v4382_v42  ;;  %v1220_v47 = vadd.f32 0.18741608, %v1219_v57  ;;  %2845 = vmatpush.bf16.msrb.mxu2 %v3421_v25 }
 0x177   : > { %6137 = vst [vmem:[#allocation36_spill] sm:$0xff] %v4688_v27  ;;  %v1493_v54 = vmul.f32 2.1237322e-06, %v4678_v45  ;;  %v1127_v51 = vsel %vm4652_vm14, %v1126_v43, %v1122_v34  ;;  %v1259_v37 = vmul.f32 %v1258_v58, %v4530_v17  ;;  %v1298_v13 = vadd.f32 0.05243302, %v1297_v30 }
 0x178   : > { %6138 = vst [vmem:[#allocation37_spill] sm:$0xff] %v4699_v32  ;;  %v1376_v2 = vadd.f32 0.0036580483, %v1375_v6  ;;  %v1337_v44 = vmul.f32 %v1336_v56, %v4582_v63  ;;  %v1416_v59 = vadd.f32 0.0036580483, %v1415_v4  ;;  %v1455_v42 = vmul.f32 %v1454_v21, %v4640_v3  ;;  %v684_v21 = vpop.f32.mrf.mxu2 }
 0x179   : > { %v1533_v57 = vmul.f32 2.1237322e-06, %v4688_v27  ;;  %v4709_v33 = vmul.f32 0.5, %v4527_v36  ;;  %v4711_v12 = vmin.f32 %v1571_v38, 16.0  ;;  %v4714_v16 = vmul.f32 0.70710677, %v4693_v61 }
 0x17a   : > { %v4717_v30 = vadd.f32 %v650_v15, %v4085_v53  ;;  %v1181_v58 = vmul.f32 %v1180_v48, %v4491_v39  ;;  %v1221_v43 = vmul.f32 %v1220_v47, %v4500_v1  ;;  %v4722_v34 = vmul.f32 0.5, %v4538_v49 }
 0x17b   : > { %6139 = vst [vmem:[#allocation38_spill] sm:$0xff] %v4709_v33  ;;  %v1494_v6 = vadd.f32 0.00028619796, %v1493_v54  ;;  %v1128_v29 = vmul.f32 %v1127_v51, %v4614_v35  ;;  %v1260_v36 = vadd.f32 0.18741608, %v1259_v37  ;;  %v1299_v56 = vmul.f32 %v1298_v13, %v4558_v20  ;;  %v3404_v54 = vld [vmem:[#allocation10] sm:$0xff] }
 0x17c   : > { %6140 = vst [vmem:[#allocation39_spill] sm:$0xff] %v4711_v12  ;;  %v1377_v4 = vmul.f32 %v1376_v2, %v4617_v23  ;;  %v1338_v38 = vadd.f32 0.05243302, %v1337_v44  ;;  %v1417_v15 = vmul.f32 %v1416_v59, %v4621_v28  ;;  %v1456_v25 = vadd.f32 0.0036580483, %v1455_v42  ;;  %v3412_v51 = vld [vmem:[#allocation10 + $0x40] sm:$0xff]  ;;  %2778 = vmatpush.bf16.msrb.mxu0 %v3404_v54 }
 0x17d   : > { %6141 = vst [vmem:[#allocation40_spill] sm:$0xff] %v4722_v34  ;;  %v1534_v33 = vadd.f32 0.00028619796, %v1533_v57  ;;  %v4729_v48 = vmul.f32 %v2417_v55, %v4454_v11  ;;  %v1573_v49 = vmul.f32 2.1237322e-06, %v4711_v12  ;;  %v1611_v47 = vmul.f32 %v4714_v16, %v4714_v16  ;;  %v718_v57 = vpop.f32.mrf.mxu3  ;;  %2812 = vmatpush.bf16.msrb.mxu1 %v3412_v51 }
 0x17e   : > { %v4735_v35 = vmul.f32 0.70710677, %v4717_v30  ;;  %v1182_v2 = vadd.f32 1.1283791, %v1181_v58  ;;  %v1222_v37 = vadd.f32 1.1283791, %v1221_v43  ;;  %v1495_v13 = vmul.f32 %v1494_v6, %v4678_v45 }
 0x17f   : > { %v4739_v44 = vadd.f32 %v684_v21, %v4099_v60  ;;  %v3203_v59 = vclamps-f32 %v1128_v29, 1.0  ;;  %v1300_v11 = vadd.f32 0.18741608, %v1299_v56  ;;  %v1378_v55 = vadd.f32 0.05243302, %v1377_v4 }
 0x180   : > { %v4742_v42 = vmul.f32 0.5, %v4571_v19  ;;  %v1339_v34 = vmul.f32 %v1338_v38, %v4582_v63  ;;  %v1418_v32 = vadd.f32 0.05243302, %v1417_v15  ;;  %v1457_v58 = vmul.f32 %v1456_v25, %v4640_v3  ;;  %v3420_v15 = vld [vmem:[#allocation10 + $0x80] sm:$0xff] }
 0x181   : > { %v1535_v43 = vmul.f32 %v1534_v33, %v4688_v27  ;;  %v1261_v6 = vmul.f32 %v1260_v36, %v4530_v17  ;;  %v1574_v21 = vadd.f32 0.00028619796, %v1573_v49  ;;  %v4748_v1 = vmin.f32 %v1611_v47, 16.0  ;;  %2846 = vmatpush.bf16.msrb.mxu2 %v3420_v15  ;;  %v653_v15 = vpop.f32.mrf.mxu1 }
 0x182   : > { %6142 = vst [vmem:[#allocation41_spill] sm:$0xff] %v4742_v42  ;;  %v1651_v29 = vmul.f32 %v4735_v35, %v4735_v35  ;;  %v4753_v19 = vmul.f32 %v1182_v2, %v4445_v5  ;;  %v1496_v56 = vadd.f32 0.0036580483, %v1495_v13  ;;  %v4756_v4 = vmul.f32 0.70710677, %v4739_v44 }
 0x183   : > { %6143 = vst [vmem:[#allocation42_spill] sm:$0xff] %v4748_v1  ;;  %v4759_v38 = vadd.f32 %v718_v57, %v4103_v0  ;;  %v2418_v33 = vadd.f32 1.0, %v3203_v59  ;;  %v4762_v36 = vmul.f32 %v1222_v37, %v4451_v24  ;;  %v1301_v25 = vmul.f32 %v1300_v11, %v4558_v20  ;;  %v3428_v59 = vld [vmem:[#allocation10 + $0xc0] sm:$0xff] }
 0x184   : > { %6144 = vst [vmem:[#allocation43_spill] sm:$0xff] %v4753_v19  ;;  %v1379_v49 = vmul.f32 %v1378_v55, %v4617_v23  ;;  %v1340_v47 = vadd.f32 0.18741608, %v1339_v34  ;;  %v1419_v5 = vmul.f32 %v1418_v32, %v4621_v28  ;;  %v1458_v54 = vadd.f32 0.05243302, %v1457_v58  ;;  %2880 = vmatpush.bf16.msrb.mxu3 %v3428_v59 }
 0x185   : > { %6145 = vst [vmem:[#allocation44_spill] sm:$0xff] %v4762_v36  ;;  %v1536_v51 = vadd.f32 0.0036580483, %v1535_v43  ;;  %v1262_v2 = vadd.f32 1.1283791, %v1261_v6  ;;  %v1575_v13 = vmul.f32 %v1574_v21, %v4711_v12  ;;  %v4769_v42 = vmin.f32 %v1651_v29, 16.0  ;;  %v619_v6 = vpop.f32.mrf.mxu0 }
 0x186   : > { %v1613_v57 = vmul.f32 2.1237322e-06, %v4748_v1  ;;  %v4772_v24 = vmul.f32 0.5, %v4611_v8  ;;  %v1497_v37 = vmul.f32 %v1496_v56, %v4678_v45  ;;  %v1691_v34 = vmul.f32 %v4756_v4, %v4756_v4 }
 0x187   : > { %6146 = vst [vmem:[#allocation45_spill] sm:$0xff] %v4769_v42  ;;  %v4778_v32 = vmul.f32 0.70710677, %v4759_v38  ;;  %v4781_v11 = vmul.f32 %v2418_v33, %v4471_v9  ;;  %v1302_v55 = vadd.f32 1.1283791, %v1301_v25  ;;  %v4784_v43 = vmul.f32 0.5, %v4634_v40 }
 0x188   : > { %6147 = vst [vmem:[#allocation46_spill] sm:$0xff] %v4772_v24  ;;  %v1380_v58 = vadd.f32 0.18741608, %v1379_v49  ;;  %v1341_v8 = vmul.f32 %v1340_v47, %v4582_v63  ;;  %v1420_v21 = vadd.f32 0.18741608, %v1419_v5  ;;  %v1459_v29 = vmul.f32 %v1458_v54, %v4640_v3 }
 0x189   : > { %6148 = vst [vmem:[#allocation47_spill] sm:$0xff] %v4784_v43  ;;  %v1537_v56 = vmul.f32 %v1536_v51, %v4688_v27  ;;  %v4790_v24 = vmul.f32 %v1262_v2, %v4494_v7  ;;  %v1576_v9 = vadd.f32 0.0036580483, %v1575_v13  ;;  %v1614_v33 = vadd.f32 0.00028619796, %v1613_v57 }
 0x18a   : > { %v1653_v25 = vmul.f32 2.1237322e-06, %v4769_v42  ;;  %v1498_v49 = vadd.f32 0.05243302, %v1497_v37  ;;  %v4793_v40 = vmin.f32 %v1691_v34, 16.0  ;;  %v1731_v59 = vmul.f32 %v4778_v32, %v4778_v32  ;;  %v687_v34 = vpop.f32.mrf.mxu2 }
 0x18b   : > { %6149 = vst [vmem:[#allocation48_spill] sm:$0xff] %v4790_v24  ;;  %v4798_v47 = vadd.f32 %v619_v6, %v4083_v52  ;;  %v4801_v5 = vmul.f32 %v1302_v55, %v4515_v46  ;;  %v1381_v54 = vmul.f32 %v1380_v58, %v4617_v23  ;;  %v4805_v7 = vmul.f32 0.5, %v4643_v14 }
 0x18c   : > { %v4808_v51 = vadd.f32 %v653_v15, %v4085_v53  ;;  %v1342_v2 = vadd.f32 1.1283791, %v1341_v8  ;;  %v1421_v13 = vmul.f32 %v1420_v21, %v4621_v28  ;;  %v1460_v57 = vadd.f32 0.18741608, %v1459_v29  ;;  %v721_v21 = vpop.f32.mrf.mxu3 }
 0x18d   : > { %6150 = vst [vmem:[#allocation49_spill] sm:$0xff] %v4801_v5  ;;  %v1538_v37 = vadd.f32 0.05243302, %v1537_v56  ;;  %v4812_v6 = vmul.f32 0.5, %v4665_v10  ;;  %v1577_v46 = vmul.f32 %v1576_v9, %v4711_v12  ;;  %v1615_v55 = vmul.f32 %v1614_v33, %v4748_v1 }
 0x18e   : > { %6151 = vst [vmem:[#allocation50_spill] sm:$0xff] %v4805_v7  ;;  %v1654_v58 = vadd.f32 0.00028619796, %v1653_v25  ;;  %v1499_v14 = vmul.f32 %v1498_v49, %v4678_v45  ;;  %v1693_v7 = vmul.f32 2.1237322e-06, %v4793_v40  ;;  %v4818_v15 = vmin.f32 %v1731_v59, 16.0 }
 0x18f   : > { %6152 = vst [vmem:[#allocation51_spill] sm:$0xff] %v4812_v6  ;;  %v4821_v8 = vmul.f32 0.70710677, %v4798_v47  ;;  %v1382_v29 = vadd.f32 1.1283791, %v1381_v54  ;;  %v4824_v56 = vmul.f32 0.5, %v4693_v61  ;;  %v4830_v9 = vadd.f32 %v687_v34, %v4099_v60 }
 0x190   : > { %v4827_v10 = vmul.f32 0.70710677, %v4808_v51  ;;  %v4833_v33 = vmul.f32 %v1342_v2, %v4547_v18  ;;  %v1422_v25 = vadd.f32 1.1283791, %v1421_v13  ;;  %v1461_v49 = vmul.f32 %v1460_v57, %v4640_v3 }
 0x191   : > { %6153 = vst [vmem:[#allocation52_spill] sm:$0xff] %v4824_v56  ;;  %v1539_v59 = vmul.f32 %v1538_v37, %v4688_v27  ;;  %v1578_v6 = vadd.f32 0.05243302, %v1577_v46  ;;  %v1616_v43 = vadd.f32 0.0036580483, %v1615_v55  ;;  %v1655_v54 = vmul.f32 %v1654_v58, %v4769_v42  ;;  %v621_v56 = vpop.f32.mrf.mxu0 }
 0x192   : > { %6154 = vst [vmem:[#allocation53_spill] sm:$0xff] %v4833_v33  ;;  %v4839_v61 = vadd.f32 %v721_v21, %v4103_v0  ;;  %v1500_v24 = vadd.f32 0.18741608, %v1499_v14  ;;  %v1694_v36 = vadd.f32 0.00028619796, %v1693_v7  ;;  %v1771_v18 = vmul.f32 %v4821_v8, %v4821_v8 }
 0x193   : > { %v1733_v34 = vmul.f32 2.1237322e-06, %v4818_v15  ;;  %v4845_v2 = vmul.f32 %v1382_v29, %v4563_v22  ;;  %v4848_v13 = vmul.f32 0.5, %v4717_v30  ;;  %v1811_v57 = vmul.f32 %v4827_v10, %v4827_v10  ;;  %v655_v29 = vpop.f32.mrf.mxu1 }
 0x194   : > { %v4853_v37 = vmul.f32 0.70710677, %v4830_v9  ;;  %v4856_v46 = vmul.f32 %v1422_v25, %v4601_v62  ;;  %v1462_v7 = vadd.f32 1.1283791, %v1461_v49  ;;  %v1540_v55 = vadd.f32 0.18741608, %v1539_v59 }
 0x195   : > { %6155 = vst [vmem:[#allocation54_spill] sm:$0xff] %v4845_v2  ;;  %v4859_v58 = vadd.f32 %v621_v56, %v4083_v52  ;;  %v1579_v22 = vmul.f32 %v1578_v6, %v4711_v12  ;;  %v1617_v14 = vmul.f32 %v1616_v43, %v4748_v1  ;;  %v1656_v30 = vadd.f32 0.0036580483, %v1655_v54 }
 0x196   : > { %6156 = vst [vmem:[#allocation55_spill] sm:$0xff] %v4848_v13  ;;  %v4864_v21 = vmul.f32 0.70710677, %v4839_v61  ;;  %v1501_v13 = vmul.f32 %v1500_v24, %v4678_v45  ;;  %v1695_v2 = vmul.f32 %v1694_v36, %v4793_v40  ;;  %v1734_v62 = vadd.f32 0.00028619796, %v1733_v34  ;;  %v689_v45 = vpop.f32.mrf.mxu2 }
 0x197   : > { %6157 = vst [vmem:[#allocation56_spill] sm:$0xff] %v4856_v46  ;;  %v4868_v25 = vmin.f32 %v1771_v18, 16.0  ;;  %v4870_v49 = vmin.f32 %v1811_v57, 16.0  ;;  %v1851_v56 = vmul.f32 %v4853_v37, %v4853_v37  ;;  %v4877_v6 = vmul.f32 0.70710677, %v4859_v58 }
 0x198   : > { %v1891_v43 = vmul.f32 %v4864_v21, %v4864_v21  ;;  %v4880_v59 = vmul.f32 %v1462_v7, %v4624_v31  ;;  %v1541_v24 = vmul.f32 %v1540_v55, %v4688_v27  ;;  %v4884_v36 = vmul.f32 0.5, %v4739_v44  ;;  %v723_v27 = vpop.f32.mrf.mxu3 }
 0x199   : > { %v4887_v54 = vadd.f32 %v655_v29, %v4085_v53  ;;  %v1580_v34 = vadd.f32 0.18741608, %v1579_v22  ;;  %v1618_v18 = vadd.f32 0.05243302, %v1617_v14  ;;  %v1657_v57 = vmul.f32 %v1656_v30, %v4769_v42 }
 0x19a   : > { %6158 = vst [vmem:[#allocation57_spill] sm:$0xff] %v4880_v59  ;;  %v1931_v46 = vmul.f32 %v4877_v6, %v4877_v6  ;;  %v1696_v33 = vadd.f32 0.0036580483, %v1695_v2  ;;  %v4893_v31 = vmul.f32 0.5, %v4759_v38  ;;  %v1735_v7 = vmul.f32 %v1734_v62, %v4818_v15 }
 0x19b   : > { %6159 = vst [vmem:[#allocation58_spill] sm:$0xff] %v4884_v36  ;;  %v1773_v44 = vmul.f32 2.1237322e-06, %v4868_v25  ;;  %v1502_v55 = vadd.f32 1.1283791, %v1501_v13  ;;  %v4898_v36 = vmin.f32 %v1851_v56, 16.0  ;;  %v4908_v38 = vadd.f32 %v689_v45, %v4099_v60 }
 0x19c   : > { %6160 = vst [vmem:[#allocation59_spill] sm:$0xff] %v4893_v31  ;;  %v1813_v29 = vmul.f32 2.1237322e-06, %v4870_v49  ;;  %v4900_v22 = vmin.f32 %v1891_v43, 16.0  ;;  %v1542_v14 = vadd.f32 1.1283791, %v1541_v24  ;;  %v1581_v2 = vmul.f32 %v1580_v34, %v4711_v12 }
 0x19d   : > { %v4902_v30 = vmin.f32 %v1931_v46, 16.0  ;;  %v4905_v59 = vmul.f32 0.70710677, %v4887_v54  ;;  %v1619_v62 = vmul.f32 %v1618_v18, %v4748_v1  ;;  %v1658_v13 = vadd.f32 0.05243302, %v1657_v57 }
 0x19e   : > { %v4913_v31 = vmul.f32 0.5, %v4798_v47  ;;  %v1697_v56 = vmul.f32 %v1696_v33, %v4793_v40  ;;  %v1736_v43 = vadd.f32 0.0036580483, %v1735_v7  ;;  %v1774_v24 = vadd.f32 0.00028619796, %v1773_v44 }
 0x19f   : > { %v1971_v46 = vmul.f32 %v4905_v59, %v4905_v59  ;;  %v4919_v19 = vmul.f32 %v1502_v55, %v4648_v26  ;;  %v1814_v45 = vadd.f32 0.00028619796, %v1813_v29  ;;  %v1853_v34 = vmul.f32 2.1237322e-06, %v4898_v36  ;;  %v624_v29 = vpop.f32.mrf.mxu0 }
 0x1a0   : > { %6161 = vst [vmem:[#allocation60_spill] sm:$0xff] %v4913_v31  ;;  %v1893_v18 = vmul.f32 2.1237322e-06, %v4900_v22  ;;  %v4924_v57 = vmul.f32 %v1542_v14, %v4662_v50  ;;  %v1933_v47 = vmul.f32 2.1237322e-06, %v4902_v30  ;;  %v1659_v26 = vmul.f32 %v1658_v13, %v4769_v42 }
 0x1a1   : > { %6162 = vst [vmem:[#allocation61_spill] sm:$0xff] %v4919_v19  ;;  %v4927_v33 = vmin.f32 %v1971_v46, 16.0  ;;  %v4930_v7 = vmul.f32 0.70710677, %v4908_v38  ;;  %v1582_v44 = vadd.f32 1.1283791, %v1581_v2  ;;  %v4934_v55 = vadd.f32 %v723_v27, %v4103_v0 }
 0x1a2   : > { %6163 = vst [vmem:[#allocation62_spill] sm:$0xff] %v4924_v57  ;;  %v1620_v31 = vadd.f32 0.18741608, %v1619_v62  ;;  %v1698_v19 = vadd.f32 0.05243302, %v1697_v56  ;;  %v1737_v12 = vmul.f32 %v1736_v43, %v4818_v15  ;;  %v1775_v50 = vmul.f32 %v1774_v24, %v4868_v25  ;;  %v6165_v43 = vld [vmem:[#allocation35_spill] sm:$0xff] }
 0x1a3   : > { %v2011_v14 = vmul.f32 %v4930_v7, %v4930_v7  ;;  %v4941_v46 = vmul.f32 0.5, %v4808_v51  ;;  %v1815_v2 = vmul.f32 %v1814_v45, %v4870_v49  ;;  %v1854_v62 = vadd.f32 0.00028619796, %v1853_v34  ;;  %v658_v45 = vpop.f32.mrf.mxu1 }
 0x1a4   : > { %v1973_v13 = vmul.f32 2.1237322e-06, %v4927_v33  ;;  %v1894_v57 = vadd.f32 0.00028619796, %v1893_v18  ;;  %v1934_v27 = vadd.f32 0.00028619796, %v1933_v47  ;;  %v4948_v56 = vadd.f32 %v624_v29, %v4083_v52 }
 0x1a5   : > { %6164 = vst [vmem:[#allocation63_spill] sm:$0xff] %v4941_v46  ;;  %v4945_v5 = vmin.f32 %v2011_v14, 16.0  ;;  %v4951_v24 = vmul.f32 %v1582_v44, %v6165_v43  ;;  %v1621_v3 = vmul.f32 %v1620_v31, %v4748_v1  ;;  %v1660_v28 = vadd.f32 0.18741608, %v1659_v26 }
 0x1a6   : > { %v4955_v51 = vmul.f32 0.70710677, %v4934_v55  ;;  %v1699_v34 = vmul.f32 %v1698_v19, %v4793_v40  ;;  %v1738_v46 = vadd.f32 0.05243302, %v1737_v12  ;;  %v1776_v18 = vadd.f32 0.0036580483, %v1775_v50 }
 0x1a7   : > { %6166 = vst [vmem:[#allocation35_spill] sm:$0xff] %v4951_v24  ;;  %v2013_v47 = vmul.f32 2.1237322e-06, %v4945_v5  ;;  %v1816_v14 = vadd.f32 0.0036580483, %v1815_v2  ;;  %v1855_v29 = vmul.f32 %v1854_v62, %v4898_v36  ;;  %v1895_v31 = vmul.f32 %v1894_v57, %v4900_v22 }
 0x1a8   : > { %6167 = vst [vmem:[#allocation64_spill] sm:$0xff] %v4955_v51  ;;  %v1974_v17 = vadd.f32 0.00028619796, %v1973_v13  ;;  %v2051_v44 = vmul.f32 %v4955_v51, %v4955_v51  ;;  %v1935_v26 = vmul.f32 %v1934_v27, %v4902_v30  ;;  %v4965_v43 = vmul.f32 0.70710677, %v4948_v56 }
 0x1a9   : > { %v4968_v19 = vadd.f32 %v658_v45, %v4085_v53  ;;  %v1622_v12 = vadd.f32 1.1283791, %v1621_v3  ;;  %v4971_v50 = vmul.f32 0.5, %v4830_v9  ;;  %v2014_v2 = vadd.f32 0.00028619796, %v2013_v47 }
 0x1aa   : > { %6168 = vst [vmem:[#allocation65_spill] sm:$0xff] %v4965_v43  ;;  %v4973_v62 = vmin.f32 %v2051_v44, 16.0  ;;  %v1661_v13 = vmul.f32 %v1660_v28, %v4769_v42  ;;  %v1700_v24 = vadd.f32 0.18741608, %v1699_v34  ;;  %v1777_v57 = vmul.f32 %v1776_v18, %v4868_v25  ;;  %v6173_v28 = vld [vmem:[#allocation25_spill] sm:$0xff] }
 0x1ab   : > { %6169 = vst [vmem:[#allocation66_spill] sm:$0xff] %v4968_v19  ;;  %v2091_v27 = vmul.f32 %v4965_v43, %v4965_v43  ;;  %v1817_v1 = vmul.f32 %v1816_v14, %v4870_v49  ;;  %v1856_v23 = vadd.f32 0.0036580483, %v1855_v29  ;;  %v1975_v45 = vmul.f32 %v1974_v17, %v4927_v33  ;;  %v692_v17 = vpop.f32.mrf.mxu2 }
 0x1ac   : > { %6170 = vst [vmem:[#allocation67_spill] sm:$0xff] %v4971_v50  ;;  %v4982_v3 = vmul.f32 0.70710677, %v4968_v19  ;;  %v1739_v9 = vmul.f32 %v1738_v46, %v4818_v15  ;;  %v1896_v47 = vadd.f32 0.0036580483, %v1895_v31  ;;  %v6172_v50 = vld [vmem:[#allocation18_spill] sm:$0xff]  ;;  %v2015_v18 = vmul.f32 %v2014_v2, %v4945_v5 }
 0x1ad   : > { %v1936_v44 = vadd.f32 0.0036580483, %v1935_v26  ;;  %v2491_v34 = vpack.c.bf16 %v6173_v28, %v6172_v50  ;;  %v2053_v42 = vmul.f32 2.1237322e-06, %v4973_v62  ;;  %v4989_v43 = vmin.f32 %v2091_v27, 16.0  ;;  %v6174_v46 = vld [vmem:[#allocation19_spill] sm:$0xff] }
 0x1ae   : > { %6171 = vst [vmem:[#allocation68_spill] sm:$0xff] %v4982_v3  ;;  %v2131_v14 = vmul.f32 %v4982_v3, %v4982_v3  ;;  %v1662_v29 = vadd.f32 1.1283791, %v1661_v13  ;;  %v1701_v19 = vmul.f32 %v1700_v24, %v4793_v40  ;;  %v1778_v51 = vadd.f32 0.05243302, %v1777_v57 }
 0x1af   : > { %2779 = vmatmul.bf16.vlgmr.msrb.gmra.mxu0 %v2491_v34  ;;  %v2492_v31 = vpack.c.bf16 %v4696_v41, %v6174_v46  ;;  %v1818_v26 = vadd.f32 0.05243302, %v1817_v1  ;;  %v1857_v50 = vmul.f32 %v1856_v23, %v4898_v36  ;;  %v1976_v2 = vadd.f32 0.0036580483, %v1975_v45  ;;  %v626_v46 = vpop.f32.mrf.mxu0 }
 0x1b0   : > { %v4997_v28 = vmin.f32 %v2131_v14, 16.0  ;;  %v1740_v27 = vadd.f32 0.18741608, %v1739_v9  ;;  %v5000_v63 = vmul.f32 0.5, %v4839_v61  ;;  %v1897_v3 = vmul.f32 %v1896_v47, %v4900_v22 }
 0x1b1   : > { %2813 = vmatmul.bf16.vlgmr.msrb.gmra.mxu1 %v2492_v31  ;;  %v5004_v24 = vadd.f32 %v692_v17, %v4099_v60  ;;  %v1937_v13 = vmul.f32 %v1936_v44, %v4902_v30  ;;  %v2016_v57 = vadd.f32 0.0036580483, %v2015_v18  ;;  %v2054_v41 = vadd.f32 0.00028619796, %v2053_v42 }
 0x1b2   : > { %6175 = vst [vmem:[#allocation18_spill] sm:$0xff] %v5000_v63  ;;  %v2093_v1 = vmul.f32 2.1237322e-06, %v4989_v43  ;;  %v5009_v23 = vmul.f32 %v1622_v12, %v4714_v16  ;;  %v5012_v45 = vmul.f32 %v1662_v29, %v4735_v35  ;;  %v1702_v61 = vadd.f32 1.1283791, %v1701_v19  ;;  %v6178_v16 = vld [vmem:[#allocation20_spill] sm:$0xff] }
 0x1b3   : > { %6176 = vst [vmem:[#allocation25_spill] sm:$0xff] %v5004_v24  ;;  %v1779_v9 = vmul.f32 %v1778_v51, %v4868_v25  ;;  %v1819_v47 = vmul.f32 %v1818_v26, %v4870_v49  ;;  %v1858_v34 = vadd.f32 0.05243302, %v1857_v50  ;;  %v1977_v14 = vmul.f32 %v1976_v2, %v4927_v33 }
 0x1b4   : > { %v2133_v44 = vmul.f32 2.1237322e-06, %v4997_v28  ;;  %v1741_v42 = vmul.f32 %v1740_v27, %v4818_v15  ;;  %v1898_v18 = vadd.f32 0.05243302, %v1897_v3  ;;  %v5020_v17 = vmul.f32 0.70710677, %v5004_v24 }
 0x1b5   : > { %v2493_v35 = vpack.c.bf16 %v4729_v48, %v6178_v16  ;;  %v1938_v12 = vadd.f32 0.05243302, %v1937_v13  ;;  %v2017_v19 = vmul.f32 %v2016_v57, %v4945_v5  ;;  %v2055_v51 = vmul.f32 %v2054_v41, %v4973_v62  ;;  %v6179_v3 = vld [vmem:[#allocation23_spill] sm:$0xff]  ;;  %v726_v16 = vpop.f32.mrf.mxu3  ;;  %v660_v41 = vpop.f32.mrf.mxu1 }
 0x1b6   : > { %6177 = vst [vmem:[#allocation19_spill] sm:$0xff] %v5020_v17  ;;  %v2094_v29 = vadd.f32 0.00028619796, %v2093_v1  ;;  %v5027_v31 = vmul.f32 %v1702_v61, %v4756_v4  ;;  %v1780_v26 = vadd.f32 0.18741608, %v1779_v9  ;;  %v5030_v50 = vmul.f32 0.5, %v4859_v58 }
 0x1b7   : > { %2847 = vmatmul.bf16.vlgmr.msrb.gmra.mxu2 %v2493_v35  ;;  %v2494_v2 = vpack.c.bf16 %v4781_v11, %v6179_v3  ;;  %v1820_v27 = vadd.f32 0.18741608, %v1819_v47  ;;  %v1859_v48 = vmul.f32 %v1858_v34, %v4898_v36  ;;  %v1978_v13 = vadd.f32 0.05243302, %v1977_v14 }
 0x1b8   : > { %v2134_v57 = vadd.f32 0.00028619796, %v2133_v44  ;;  %v1742_v1 = vadd.f32 1.1283791, %v1741_v42  ;;  %v1899_v24 = vmul.f32 %v1898_v18, %v4900_v22  ;;  %v2171_v4 = vmul.f32 %v5020_v17, %v5020_v17 }
 0x1b9   : > { %2881 = vmatmul.bf16.vlgmr.msrb.gmra.mxu3 %v2494_v2  ;;  %v5039_v58 = vadd.f32 %v626_v46, %v4083_v52  ;;  %v1939_v61 = vmul.f32 %v1938_v12, %v4902_v30  ;;  %v2018_v11 = vadd.f32 0.05243302, %v2017_v19  ;;  %v2056_v9 = vadd.f32 0.0036580483, %v2055_v51 }
 0x1ba   : > { %v2095_v47 = vmul.f32 %v2094_v29, %v4989_v43  ;;  %v1781_v34 = vmul.f32 %v1780_v26, %v4868_v25  ;;  %v5045_v14 = vadd.f32 %v726_v16, %v4103_v0  ;;  %v5051_v42 = vadd.f32 %v660_v41, %v4085_v53 }
 0x1bb   : > { %v5048_v44 = vmul.f32 0.70710677, %v5039_v58  ;;  %v1821_v52 = vmul.f32 %v1820_v27, %v4870_v49  ;;  %v1860_v18 = vadd.f32 0.18741608, %v1859_v48  ;;  %v1979_v35 = vmul.f32 %v1978_v13, %v4927_v33 }
 0x1bc   : > { %6180 = vst [vmem:[#allocation20_spill] sm:$0xff] %v5045_v14  ;;  %v2135_v12 = vmul.f32 %v2134_v57, %v4997_v28  ;;  %v5057_v19 = vmul.f32 %v1742_v1, %v4778_v32  ;;  %v1900_v51 = vadd.f32 0.18741608, %v1899_v24  ;;  %v5060_v29 = vmul.f32 0.5, %v4887_v54 }
 0x1bd   : > { %6181 = vst [vmem:[#allocation23_spill] sm:$0xff] %v5051_v42  ;;  %v5062_v46 = vmin.f32 %v2171_v4, 16.0  ;;  %v1940_v26 = vadd.f32 0.18741608, %v1939_v61  ;;  %v2019_v53 = vmul.f32 %v2018_v11, %v4945_v5  ;;  %v2057_v3 = vmul.f32 %v2056_v9, %v4973_v62 }
 0x1be   : > { %v2096_v2 = vadd.f32 0.0036580483, %v2095_v47  ;;  %v1782_v27 = vadd.f32 1.1283791, %v1781_v34  ;;  %v5067_v48 = vmul.f32 0.70710677, %v5045_v14  ;;  %v2251_v32 = vmul.f32 %v5048_v44, %v5048_v44 }
 0x1bf   : > { %6182 = vst [vmem:[#allocation69_spill] sm:$0xff] %v5062_v46  ;;  %v5072_v24 = vmul.f32 0.70710677, %v5051_v42  ;;  %v1822_v54 = vadd.f32 1.1283791, %v1821_v52  ;;  %v1861_v13 = vmul.f32 %v1860_v18, %v4898_v36  ;;  %v1901_v41 = vmul.f32 %v1900_v51, %v4900_v22  ;;  %v694_v52 = vpop.f32.mrf.mxu2  ;;  %v728_v42 = vpop.f32.mrf.mxu3 }
 0x1c0   : > { %6183 = vst [vmem:[#allocation70_spill] sm:$0xff] %v5067_v48  ;;  %v1980_v57 = vadd.f32 0.18741608, %v1979_v35  ;;  %v2136_v16 = vadd.f32 0.0036580483, %v2135_v12  ;;  %v5077_v1 = vmul.f32 0.5, %v4908_v38  ;;  %v1941_v11 = vmul.f32 %v1940_v26, %v4902_v30 }
 0x1c1   : > { %6184 = vst [vmem:[#allocation71_spill] sm:$0xff] %v5072_v24  ;;  %v5080_v4 = vmul.f32 0.5, %v4934_v55  ;;  %v2173_v61 = vmul.f32 2.1237322e-06, %v5062_v46  ;;  %v2020_v9 = vadd.f32 0.18741608, %v2019_v53  ;;  %v2097_v34 = vmul.f32 %v2096_v2, %v4989_v43 }
 0x1c2   : > { %6185 = vst [vmem:[#allocation72_spill] sm:$0xff] %v5077_v1  ;;  %v2058_v47 = vadd.f32 0.05243302, %v2057_v3  ;;  %v5086_v18 = vmul.f32 %v1782_v27, %v4821_v8  ;;  %v2211_v35 = vmul.f32 %v5067_v48, %v5067_v48  ;;  %v5090_v38 = vmin.f32 %v2251_v32, 16.0 }
 0x1c3   : > { %6186 = vst [vmem:[#allocation73_spill] sm:$0xff] %v5080_v4  ;;  %v2291_v55 = vmul.f32 %v5072_v24, %v5072_v24  ;;  %v5095_v12 = vmul.f32 %v1822_v54, %v4827_v10  ;;  %v1862_v51 = vadd.f32 1.1283791, %v1861_v13  ;;  %v1981_v26 = vmul.f32 %v1980_v57, %v4927_v33 }
 0x1c4   : > { %v2137_v53 = vmul.f32 %v2136_v16, %v4997_v28  ;;  %v1902_v3 = vadd.f32 1.1283791, %v1901_v41  ;;  %v5100_v8 = vmul.f32 0.5, %v4948_v56  ;;  %v2174_v2 = vadd.f32 0.00028619796, %v2173_v61  ;;  %v6190_v16 = vld [vmem:[#allocation17_spill] sm:$0xff] }
 0x1c5   : > { %v5103_v27 = vadd.f32 %v694_v52, %v4099_v60  ;;  %v1942_v32 = vadd.f32 1.1283791, %v1941_v11  ;;  %v2021_v14 = vmul.f32 %v2020_v9, %v4945_v5  ;;  %v2059_v48 = vmul.f32 %v2058_v47, %v4973_v62 }
 0x1c6   : > { %6187 = vst [vmem:[#allocation74_spill] sm:$0xff] %v5100_v8  ;;  %v2098_v10 = vadd.f32 0.05243302, %v2097_v34  ;;  %v5107_v54 = vmin.f32 %v2211_v35, 16.0  ;;  %v2253_v13 = vmul.f32 2.1237322e-06, %v5090_v38  ;;  %v5114_v56 = vmul.f32 %v1862_v51, %v4853_v37 }
 0x1c7   : > { %6188 = vst [vmem:[#allocation75_spill] sm:$0xff] %v5103_v27  ;;  %v5110_v57 = vmin.f32 %v2291_v55, 16.0  ;;  %v1144_v41 = vmul.f32 3.8918573e-05, %v6190_v16  ;;  %v1982_v61 = vadd.f32 1.1283791, %v1981_v26  ;;  %v5118_v9 = vmul.f32 %v1902_v3, %v4864_v21 }
 0x1c8   : > { %6189 = vst [vmem:[#allocation76_spill] sm:$0xff] %v5107_v54  ;;  %v2138_v60 = vadd.f32 0.05243302, %v2137_v53  ;;  %v1304_v11 = vmul.f32 3.8918573e-05, %v4558_v20  ;;  %v2175_v47 = vmul.f32 %v2174_v2, %v5062_v46  ;;  %v2099_v17 = vmul.f32 %v2098_v10, %v4989_v43 }
 0x1c9   : > { %6191 = vst [vmem:[#allocation17_spill] sm:$0xff] %v5114_v56  ;;  %v5122_v34 = vmul.f32 0.70710677, %v5103_v27  ;;  %v1145_v52 = vadd.f32 0.001143296, %v1144_v41  ;;  %v5129_v3 = vmul.f32 %v1942_v32, %v4877_v6  ;;  %v5132_v2 = vmul.f32 %v1982_v61, %v4905_v59  ;;  %v6220_v56 = vld [vmem:[#allocation49_spill] sm:$0xff] }
 0x1ca   : > { %6192 = vst [vmem:[#allocation77_spill] sm:$0xff] %v5118_v9  ;;  %v2022_v35 = vadd.f32 1.1283791, %v2021_v14  ;;  %v2060_v55 = vadd.f32 0.18741608, %v2059_v48  ;;  %v2139_v14 = vmul.f32 %v2138_v60, %v4997_v28 }
 0x1cb   : > { %6193 = vst [vmem:[#allocation78_spill] sm:$0xff] %v5122_v34  ;;  %v1305_v37 = vadd.f32 0.001143296, %v1304_v11  ;;  %v2213_v51 = vmul.f32 2.1237322e-06, %v5107_v54  ;;  %v1146_v21 = vmul.f32 %v1145_v52, %v6190_v16  ;;  %v2331_v41 = vmul.f32 %v5122_v34, %v5122_v34 }
 0x1cc   : > { %v2254_v26 = vadd.f32 0.00028619796, %v2253_v13  ;;  %v2293_v53 = vmul.f32 2.1237322e-06, %v5110_v57  ;;  %v2176_v10 = vadd.f32 0.0036580483, %v2175_v47  ;;  %v5139_v13 = vadd.f32 %v728_v42, %v4103_v0 }
 0x1cd   : > { %v1306_v48 = vmul.f32 %v1305_v37, %v4558_v20  ;;  %v1147_v11 = vadd.f32 0.014752088, %v1146_v21  ;;  %v5142_v52 = vmul.f32 %v2022_v35, %v4930_v7  ;;  %v2061_v6 = vmul.f32 %v2060_v55, %v4973_v62 }
 0x1ce   : > { %6194 = vst [vmem:[#allocation79_spill] sm:$0xff] %v5139_v13  ;;  %v2100_v32 = vadd.f32 0.18741608, %v2099_v17  ;;  %v2214_v61 = vadd.f32 0.00028619796, %v2213_v51  ;;  %v2255_v60 = vmul.f32 %v2254_v26, %v5090_v38  ;;  %v5148_v34 = vmul.f32 0.5, %v5039_v58 }
 0x1cf   : > { %6195 = vst [vmem:[#allocation80_spill] sm:$0xff] %v5142_v52  ;;  %v1307_v59 = vadd.f32 0.014752088, %v1306_v48  ;;  %v2294_v27 = vadd.f32 0.00028619796, %v2293_v53  ;;  %v1148_v47 = vmul.f32 %v1147_v11, %v6190_v16  ;;  %v2177_v7 = vmul.f32 %v2176_v10, %v5062_v46 }
 0x1d0   : > { %v2140_v37 = vadd.f32 0.18741608, %v2139_v14  ;;  %6196 = vst [vmem:[#allocation81_spill] sm:$0xff] %v5148_v34  ;;  %v1184_v42 = vmul.f32 3.8918573e-05, %v4491_v39  ;;  %v5153_v35 = vmin.f32 %v2331_v41, 16.0  ;;  %v2101_v26 = vmul.f32 %v2100_v32, %v4989_v43 }
 0x1d1   : > { %v1308_v0 = vmul.f32 %v1307_v59, %v4558_v20  ;;  %v5156_v17 = vmul.f32 0.70710677, %v5139_v13  ;;  %v1149_v55 = vadd.f32 0.112945676, %v1148_v47  ;;  %v2062_v51 = vadd.f32 1.1283791, %v2061_v6 }
 0x1d2   : > { %6197 = vst [vmem:[#allocation82_spill] sm:$0xff] %v5153_v35  ;;  %v1185_v21 = vadd.f32 0.001143296, %v1184_v42  ;;  %v2215_v58 = vmul.f32 %v2214_v61, %v5107_v54  ;;  %v2256_v14 = vadd.f32 0.0036580483, %v2255_v60  ;;  %v2295_v48 = vmul.f32 %v2294_v27, %v5110_v57  ;;  %v6199_v13 = vld [vmem:[#allocation28_spill] sm:$0xff] }
 0x1d3   : > { %6198 = vst [vmem:[#allocation83_spill] sm:$0xff] %v5156_v17  ;;  %v1309_v53 = vadd.f32 0.112945676, %v1308_v0  ;;  %v1150_v11 = vmul.f32 %v1149_v55, %v6190_v16  ;;  %v2141_v10 = vmul.f32 %v2140_v37, %v4997_v28  ;;  %v1344_v47 = vmul.f32 3.8918573e-05, %v6199_v13  ;;  %v6200_v60 = vld [vmem:[#allocation64_spill] sm:$0xff] }
 0x1d4   : > { %v1186_v59 = vmul.f32 %v1185_v21, %v4491_v39  ;;  %v2178_v6 = vadd.f32 0.05243302, %v2177_v7  ;;  %v2333_v32 = vmul.f32 2.1237322e-06, %v5153_v35  ;;  %v2371_v0 = vmul.f32 %v5156_v17, %v5156_v17 }
 0x1d5   : > { %v1310_v41 = vmul.f32 %v1309_v53, %v4558_v20  ;;  %v1151_v61 = vadd.f32 0.4994258, %v1150_v11  ;;  %v5170_v42 = vmul.f32 %v2062_v51, %v6200_v60  ;;  %v2102_v27 = vadd.f32 1.1283791, %v2101_v26 }
 0x1d6   : > { %v1187_v24 = vadd.f32 0.014752088, %v1186_v59  ;;  %v2257_v37 = vmul.f32 %v2256_v14, %v5090_v38  ;;  %v2296_v53 = vadd.f32 0.0036580483, %v2295_v48  ;;  %v1345_v34 = vadd.f32 0.001143296, %v1344_v47 }
 0x1d7   : > { %6201 = vst [vmem:[#allocation28_spill] sm:$0xff] %v5170_v42  ;;  %v1311_v55 = vadd.f32 0.4994258, %v1310_v41  ;;  %v1152_v21 = vmul.f32 %v1151_v61, %v6190_v16  ;;  %v2142_v8 = vadd.f32 1.1283791, %v2141_v10  ;;  %v2179_v11 = vmul.f32 %v2178_v6, %v5062_v46  ;;  %v6203_v16 = vld [vmem:[#allocation22_spill] sm:$0xff] }
 0x1d8   : > { %v2216_v7 = vadd.f32 0.0036580483, %v2215_v58  ;;  %v1188_v63 = vmul.f32 %v1187_v24, %v4491_v39  ;;  %v2334_v17 = vadd.f32 0.00028619796, %v2333_v32  ;;  %v5177_v51 = vmin.f32 %v2371_v0, 16.0  ;;  %v6205_v47 = vld [vmem:[#allocation65_spill] sm:$0xff] }
 0x1d9   : > { %v1312_v4 = vmul.f32 %v1311_v55, %v4558_v20  ;;  %v5179_v26 = vadd.f32 1.0, %v1152_v21  ;;  %v1346_v48 = vmul.f32 %v1345_v34, %v6199_v13  ;;  %v1224_v59 = vmul.f32 3.8918573e-05, %v6203_v16  ;;  %v6204_v20 = vld [vmem:[#allocation31_spill] sm:$0xff]  ;;  %v6207_v32 = vld [vmem:[#allocation68_spill] sm:$0xff] }
 0x1da   : > { %6202 = vst [vmem:[#allocation64_spill] sm:$0xff] %v5177_v51  ;;  %v1189_v14 = vadd.f32 0.112945676, %v1188_v63  ;;  %v2258_v10 = vadd.f32 0.05243302, %v2257_v37  ;;  %v2297_v58 = vmul.f32 %v2296_v53, %v5110_v57  ;;  %v5189_v6 = vmul.f32 %v2102_v27, %v6205_v47 }
 0x1db   : > { %v5181_v41 = vadd.f32 1.0, %v1312_v4  ;;  %3544 = vrcp.f32 %v5179_v26  ;;  %v1384_v24 = vmul.f32 3.8918573e-05, %v6204_v20  ;;  %v5192_v0 = vmul.f32 %v2142_v8, %v6207_v32 }
 0x1dc   : > { %6206 = vst [vmem:[#allocation22_spill] sm:$0xff] %v5189_v6  ;;  %v5195_v4 = vmul.f32 %v2216_v7, %v5107_v54  ;;  %v5198_v63 = vadd.f32 0.18741608, %v2179_v11  ;;  %v5201_v34 = vmul.f32 %v2334_v17, %v5153_v35  ;;  %v5204_v61 = vmul.f32 2.1237322e-06, %v5177_v51 }
 0x1dd   : > { %6208 = vst [vmem:[#allocation31_spill] sm:$0xff] %v5192_v0  ;;  %3546 = vrcp.f32 %v5181_v41  ;;  %v1163_v60 = vand.u32 2147483647, %v5179_v26  ;;  %v1165_v27 = vand.u32 2147483648, %v5179_v26  ;;  %v1190_v8 = vmul.f32 %v1189_v14, %v4491_v39 }
 0x1de   : > { %6209 = vst [vmem:[#allocation65_spill] sm:$0xff] %v5195_v4  ;;  %v1347_v55 = vadd.f32 0.014752088, %v1346_v48  ;;  %v1225_v37 = vadd.f32 0.001143296, %v1224_v59  ;;  %v5210_v53 = vmul.f32 %v2258_v10, %v5090_v38  ;;  %v6211_v4 = vld [vmem:[#allocation24_spill] sm:$0xff]  ;;  %vm1159_vm0 = vweird.f32 %v5179_v26 }
 0x1df   : > { %6210 = vst [vmem:[#allocation68_spill] sm:$0xff] %v5198_v63  ;;  %v5212_v21 = vadd.f32 0.05243302, %v2297_v58  ;;  %v1323_v7 = vand.u32 2147483647, %v5181_v41  ;;  %vm1319_vm1 = vweird.f32 %v5181_v41  ;;  %v1325_v14 = vand.u32 2147483648, %v5181_v41 }
 0x1e0   : > { %v1385_v17 = vadd.f32 0.001143296, %v1384_v24  ;;  %v1191_v11 = vadd.f32 0.4994258, %v1190_v8  ;;  %v1348_v47 = vmul.f32 %v1347_v55, %v6199_v13  ;;  %v1226_v32 = vmul.f32 %v1225_v37, %v6203_v16 }
 0x1e1   : > { %v1264_v63 = vmul.f32 3.8918573e-05, %v6211_v4  ;;  %v3545_v0 = vpop.eup %3544  ;;  %vm5223_vm2 = vcmp.eq.f32.partialorder %v1163_v60, 8.507059e+37  ;;  %v1166_v24 = vor.u32 1.1754944e-38, %v1165_v27  ;;  %vm5229_vm3 = vcmp.eq.f32.partialorder %v1323_v7, 8.507059e+37  ;;  %v6216_v7 = vld [vmem:[#allocation32_spill] sm:$0xff] }
 0x1e2   : > { %v1386_v48 = vmul.f32 %v1385_v17, %v6204_v20  ;;  %v1155_v10 = vmul.f32 %v3545_v0, %v5179_v26  ;;  %v1192_v8 = vmul.f32 %v1191_v11, %v4491_v39  ;;  %v1349_v55 = vadd.f32 0.112945676, %v1348_v47 }
 0x1e3   : > { %v3547_v59 = vpop.eup %3546  ;;  %v1227_v6 = vadd.f32 0.014752088, %v1226_v32  ;;  %v1265_v42 = vadd.f32 0.001143296, %v1264_v63  ;;  %v1326_v9 = vor.u32 1.1754944e-38, %v1325_v14  ;;  %vm1160_vm4 = vweird.f32 %v3545_v0 }
 0x1e4   : > { %v1315_v37 = vmul.f32 %v3547_v59, %v5181_v41  ;;  %v1387_v54 = vadd.f32 0.014752088, %v1386_v48  ;;  %v1156_v17 = vsub.f32 1.0, %v1155_v10  ;;  %v5233_v35 = vadd.f32 1.0, %v1192_v8  ;;  %vm1161_vm6 = vmor %vm1159_vm0, %vm1160_vm4 }
 0x1e5   : > { %v1350_v60 = vmul.f32 %v1349_v55, %v6199_v13  ;;  %v1228_v27 = vmul.f32 %v1227_v6, %v6203_v16  ;;  %v1424_v47 = vmul.f32 3.8918573e-05, %v6216_v7  ;;  %vm1320_vm5 = vweird.f32 %v3547_v59  ;;  %v6217_v55 = vld [vmem:[#allocation33_spill] sm:$0xff] }
 0x1e6   : > { %v1316_v1 = vsub.f32 1.0, %v1315_v37  ;;  %v1388_v39 = vmul.f32 %v1387_v54, %v6204_v20  ;;  %v1157_v11 = vmul.f32 %v3545_v0, %v1156_v17  ;;  %3548 = vrcp.f32 %v5233_v35  ;;  %v6218_v17 = vld [vmem:[#allocation42_spill] sm:$0xff]  ;;  %vm1321_vm7 = vmor %vm1319_vm1, %vm1320_vm5 }
 0x1e7   : > { %v1351_v48 = vadd.f32 0.4994258, %v1350_v60  ;;  %v1229_v10 = vadd.f32 0.112945676, %v1228_v27  ;;  %v1266_v63 = vmul.f32 %v1265_v42, %v6211_v4  ;;  %v1464_v14 = vmul.f32 3.8918573e-05, %v6217_v55 }
 0x1e8   : > { %v1317_v32 = vmul.f32 %v3547_v59, %v1316_v1  ;;  %v1158_v8 = vadd.f32 %v3545_v0, %v1157_v11  ;;  %v1389_v52 = vadd.f32 0.112945676, %v1388_v39  ;;  %v5247_v46 = vmul.f32 3.8918573e-05, %v6218_v17 }
 0x1e9   : > { %v1352_v6 = vmul.f32 %v1351_v48, %v6199_v13  ;;  %v1230_v37 = vmul.f32 %v1229_v10, %v6203_v16  ;;  %v1267_v42 = vadd.f32 0.014752088, %v1266_v63  ;;  %v1425_v27 = vadd.f32 0.001143296, %v1424_v47  ;;  %v6219_v48 = vld [vmem:[#allocation37_spill] sm:$0xff] }
 0x1ea   : > { %v1318_v54 = vadd.f32 %v3547_v59, %v1317_v32  ;;  %v1162_v1 = vsel %vm1161_vm6, %v3545_v0, %v1158_v8  ;;  %v1390_v60 = vmul.f32 %v1389_v52, %v6204_v20  ;;  %vm1199_vm8 = vweird.f32 %v5233_v35 }
 0x1eb   : > { %v1167_v26 = vsel %vm5223_vm2, %v1166_v24, %v1162_v1  ;;  %v5254_v11 = vadd.f32 1.0, %v1352_v6  ;;  %v1231_v13 = vadd.f32 0.4994258, %v1230_v37  ;;  %v1268_v41 = vmul.f32 %v1267_v42, %v6211_v4 }
 0x1ec   : > { %v1322_v39 = vsel %vm1321_vm7, %v3547_v59, %v1318_v54  ;;  %v3549_v32 = vpop.eup %3548  ;;  %v1168_v10 = vmul.f32 %v1167_v26, %v6219_v48  ;;  %v1391_v8 = vadd.f32 0.4994258, %v1390_v60  ;;  %v1203_v58 = vand.u32 2147483647, %v5233_v35  ;;  %v6221_v48 = vld [vmem:[#allocation21_spill] sm:$0xff] }
 0x1ed   : > { %v1327_v0 = vsel %vm5229_vm3, %v1326_v9, %v1322_v39  ;;  %v1195_v47 = vmul.f32 %v3549_v32, %v5233_v35  ;;  %3550 = vrcp.f32 %v5254_v11  ;;  %v1205_v24 = vand.u32 2147483648, %v5233_v35 }
 0x1ee   : > { %v1328_v52 = vmul.f32 %v1327_v0, %v6220_v56  ;;  %v3204_v59 = vclamps-f32 %v1168_v10, 1.0  ;;  %v1426_v63 = vmul.f32 %v1425_v27, %v6216_v7  ;;  %v1232_v54 = vmul.f32 %v1231_v13, %v6203_v16  ;;  %v6224_v0 = vld [vmem:[#allocation30_spill] sm:$0xff] }
 0x1ef   : > { %v1196_v9 = vsub.f32 1.0, %v1195_v47  ;;  %v1392_v6 = vmul.f32 %v1391_v8, %v6204_v20  ;;  %vm1200_vm9 = vweird.f32 %v3549_v32  ;;  %v1363_v37 = vand.u32 2147483647, %v5254_v11 }
 0x1f0   : > { %v3208_v51 = vclamps-f32 %v1328_v52, 1.0  ;;  %v2419_v56 = vadd.f32 1.0, %v3204_v59  ;;  %v1269_v1 = vadd.f32 0.112945676, %v1268_v41  ;;  %v5270_v26 = vadd.f32 1.0, %v1232_v54  ;;  %vm1201_vm11 = vmor %vm1199_vm8, %vm1200_vm9 }
 0x1f1   : > { %v1197_v42 = vmul.f32 %v3549_v32, %v1196_v9  ;;  %v5272_v39 = vadd.f32 1.0, %v1392_v6  ;;  %vm5275_vm10 = vcmp.eq.f32.partialorder %v1203_v58, 8.507059e+37  ;;  %v1206_v16 = vor.u32 1.1754944e-38, %v1205_v24 }
 0x1f2   : > { %v2423_v60 = vadd.f32 1.0, %v3208_v51  ;;  %v2459_v10 = vmul.f32 %v2419_v56, %v6221_v48  ;;  %v1365_v20 = vand.u32 2147483648, %v5254_v11  ;;  %3552 = vrcp.f32 %v5270_v26 }
 0x1f3   : > { %v3551_v13 = vpop.eup %3550  ;;  %v1198_v52 = vadd.f32 %v3549_v32, %v1197_v42  ;;  %v1270_v41 = vmul.f32 %v1269_v1, %v6211_v4  ;;  %vm1359_vm12 = vweird.f32 %v5254_v11  ;;  %v1427_v59 = vadd.f32 0.014752088, %v1426_v63  ;;  %v6227_v1 = vld [vmem:[#allocation43_spill] sm:$0xff] }
 0x1f4   : > { %v2463_v8 = vmul.f32 %v2423_v60, %v6224_v0  ;;  %v1355_v47 = vmul.f32 %v3551_v13, %v5254_v11  ;;  %v1465_v58 = vadd.f32 0.001143296, %v1464_v14  ;;  %vm5288_vm13 = vcmp.eq.f32.partialorder %v1363_v37, 8.507059e+37 }
 0x1f5   : > { %v1202_v51 = vsel %vm1201_vm11, %v3549_v32, %v1198_v52  ;;  %3554 = vrcp.f32 %v5272_v39  ;;  %v1243_v35 = vand.u32 2147483647, %v5270_v26  ;;  %v1245_v56 = vand.u32 2147483648, %v5270_v26 }
 0x1f6   : > { %v2495_v24 = vpack.c.bf16 %v2463_v8, %v2459_v10  ;;  %v1207_v54 = vsel %vm5275_vm10, %v1206_v16, %v1202_v51  ;;  %v1356_v6 = vsub.f32 1.0, %v1355_v47  ;;  %vm1360_vm14 = vweird.f32 %v3551_v13 }
 0x1f7   : > { %v1208_v63 = vmul.f32 %v1207_v54, %v6227_v1  ;;  %v1366_v14 = vor.u32 1.1754944e-38, %v1365_v20  ;;  %v1271_v32 = vadd.f32 0.4994258, %v1270_v41  ;;  %vm1239_vm15 = vweird.f32 %v5270_v26  ;;  %vm1361_vm2 = vmor %vm1359_vm12, %vm1360_vm14 }
 0x1f8   : > { %2784 = vmatmul.bf16.gmra.mxu0 %v2495_v24  ;;  %v1357_v37 = vmul.f32 %v3551_v13, %v1356_v6  ;;  %v1428_v60 = vmul.f32 %v1427_v59, %v6216_v7  ;;  %v1466_v42 = vmul.f32 %v1465_v58, %v6217_v55  ;;  %v1625_v48 = vadd.f32 0.001143296, %v5247_v46  ;;  %v3553_v10 = vpop.eup %3552 }
 0x1f9   : > { %v3205_v27 = vclamps-f32 %v1208_v63, 1.0  ;;  %v1403_v16 = vand.u32 2147483647, %v5272_v39  ;;  %v1405_v0 = vand.u32 2147483648, %v5272_v39  ;;  %v1272_v8 = vmul.f32 %v1271_v32, %v6211_v4  ;;  %v6232_v63 = vld [vmem:[#allocation53_spill] sm:$0xff] }
 0x1fa   : > { %v1358_v52 = vadd.f32 %v3551_v13, %v1357_v37  ;;  %v1235_v20 = vmul.f32 %v3553_v10, %v5270_v26  ;;  %vm5306_vm0 = vcmp.eq.f32.partialorder %v1243_v35, 8.507059e+37  ;;  %v1246_v47 = vor.u32 1.1754944e-38, %v1245_v56 }
 0x1fb   : > { %vm1399_vm1 = vweird.f32 %v5272_v39  ;;  %v3555_v59 = vpop.eup %3554  ;;  %v5314_v46 = vadd.f32 1.0, %v1272_v8  ;;  %v1429_v58 = vadd.f32 0.112945676, %v1428_v60  ;;  %v1467_v24 = vadd.f32 0.014752088, %v1466_v42 }
 0x1fc   : > { %v1626_v4 = vmul.f32 %v1625_v48, %v6218_v17  ;;  %v1362_v51 = vsel %vm1361_vm2, %v3551_v13, %v1358_v52  ;;  %v2420_v54 = vadd.f32 1.0, %v3205_v27  ;;  %v1236_v6 = vsub.f32 1.0, %v1235_v20 }
 0x1fd   : > { %v1395_v35 = vmul.f32 %v3555_v59, %v5272_v39  ;;  %v1367_v56 = vsel %vm5288_vm13, %v1366_v14, %v1362_v51  ;;  %vm5320_vm3 = vcmp.eq.f32.partialorder %v1403_v16, 8.507059e+37  ;;  %v1406_v11 = vor.u32 1.1754944e-38, %v1405_v0  ;;  %v6233_v14 = vld [vmem:[#allocation26_spill] sm:$0xff] }
 0x1fe   : > { %3556 = vrcp.f32 %v5314_v46  ;;  %v1368_v32 = vmul.f32 %v1367_v56, %v6232_v63  ;;  %v1237_v37 = vmul.f32 %v3553_v10, %v1236_v6  ;;  %vm1240_vm4 = vweird.f32 %v3553_v10  ;;  %v6234_v63 = vld [vmem:[#allocation34_spill] sm:$0xff] }
 0x1ff   : > { %v1396_v60 = vsub.f32 1.0, %v1395_v35  ;;  %vm1400_vm5 = vweird.f32 %v3555_v59  ;;  %v1430_v13 = vmul.f32 %v1429_v58, %v6216_v7  ;;  %v1468_v42 = vmul.f32 %v1467_v24, %v6217_v55  ;;  %vm1241_vm6 = vmor %vm1239_vm15, %vm1240_vm4 }
 0x200   : > { %v1627_v48 = vadd.f32 0.014752088, %v1626_v4  ;;  %v3209_v9 = vclamps-f32 %v1368_v32, 1.0  ;;  %v2460_v27 = vmul.f32 %v2420_v54, %v6233_v14  ;;  %v1238_v16 = vadd.f32 %v3553_v10, %v1237_v37  ;;  %vm1401_vm7 = vmor %vm1399_vm1, %vm1400_vm5  ;;  %v6235_v37 = vld [vmem:[#allocation38_spill] sm:$0xff] }
 0x201   : > { %v1397_v8 = vmul.f32 %v3555_v59, %v1396_v60  ;;  %v1283_v0 = vand.u32 2147483647, %v5314_v46  ;;  %v1431_v52 = vadd.f32 0.4994258, %v1430_v13  ;;  %v1469_v20 = vadd.f32 0.112945676, %v1468_v42 }
 0x202   : > { %v1628_v51 = vmul.f32 %v1627_v48, %v6218_v17  ;;  %v2424_v6 = vadd.f32 1.0, %v3209_v9  ;;  %v1242_v35 = vsel %vm1241_vm6, %v3553_v10, %v1238_v16  ;;  %v1285_v24 = vand.u32 2147483648, %v5314_v46  ;;  %v6236_v10 = vld [vmem:[#allocation44_spill] sm:$0xff]  ;;  %v6237_v16 = vld [vmem:[#allocation54_spill] sm:$0xff] }
 0x203   : > { %v1398_v58 = vadd.f32 %v3555_v59, %v1397_v8  ;;  %v1247_v54 = vsel %vm5306_vm0, %v1246_v47, %v1242_v35  ;;  %v1432_v26 = vmul.f32 %v1431_v52, %v6216_v7  ;;  %v1470_v56 = vmul.f32 %v1469_v20, %v6217_v55 }
 0x204   : > { %v3557_v4 = vpop.eup %3556  ;;  %v1504_v32 = vmul.f32 3.8918573e-05, %v6234_v63  ;;  %v2464_v60 = vmul.f32 %v2424_v6, %v6235_v37  ;;  %v1248_v13 = vmul.f32 %v1247_v54, %v6236_v10  ;;  %v1629_v9 = vadd.f32 0.112945676, %v1628_v51  ;;  %v6240_v37 = vld [vmem:[#allocation27_spill] sm:$0xff]  ;;  %v6241_v10 = vld [vmem:[#allocation40_spill] sm:$0xff] }
 0x205   : > { %v1402_v42 = vsel %vm1401_vm7, %v3555_v59, %v1398_v58  ;;  %v1275_v48 = vmul.f32 %v3557_v4, %v5314_v46  ;;  %v5347_v47 = vadd.f32 1.0, %v1432_v26  ;;  %v1471_v39 = vadd.f32 0.4994258, %v1470_v56 }
 0x206   : > { %v1407_v41 = vsel %vm5320_vm3, %v1406_v11, %v1402_v42  ;;  %v2496_v14 = vpack.c.bf16 %v2464_v60, %v2460_v27  ;;  %v3206_v7 = vclamps-f32 %v1248_v13, 1.0  ;;  %v5351_v20 = vadd.f32 0.00028619796, %v5204_v61  ;;  %v6242_v42 = vld [vmem:[#allocation45_spill] sm:$0xff] }
 0x207   : > { %v1408_v8 = vmul.f32 %v1407_v41, %v6237_v16  ;;  %v1276_v52 = vsub.f32 1.0, %v1275_v48  ;;  %vm1279_vm8 = vweird.f32 %v5314_v46  ;;  %vm1280_vm9 = vweird.f32 %v3557_v4 }
 0x208   : > { %3558 = vrcp.f32 %v5347_v47  ;;  %2818 = vmatmul.bf16.gmra.mxu1 %v2496_v14  ;;  %v2421_v1 = vadd.f32 1.0, %v3206_v7  ;;  %v1472_v6 = vmul.f32 %v1471_v39, %v6217_v55  ;;  %vm5356_vm10 = vcmp.eq.f32.partialorder %v1283_v0, 8.507059e+37  ;;  %vm1281_vm11 = vmor %vm1279_vm8, %vm1280_vm9  ;;  %v6243_v14 = vld [vmem:[#allocation36_spill] sm:$0xff] }
 0x209   : > { %v3210_v59 = vclamps-f32 %v1408_v8, 1.0  ;;  %v1277_v11 = vmul.f32 %v3557_v4, %v1276_v52  ;;  %v1286_v51 = vor.u32 1.1754944e-38, %v1285_v24  ;;  %v1630_v35 = vmul.f32 %v1629_v9, %v6218_v17  ;;  %v6244_v8 = vld [vmem:[#allocation48_spill] sm:$0xff] }
 0x20a   : > { %v1505_v61 = vadd.f32 0.001143296, %v1504_v32  ;;  %v1443_v26 = vand.u32 2147483647, %v5347_v47  ;;  %v5362_v56 = vadd.f32 1.0, %v1472_v6  ;;  %v2461_v60 = vmul.f32 %v2421_v1, %v6240_v37 }
 0x20b   : > { %v2425_v58 = vadd.f32 1.0, %v3210_v59  ;;  %v1278_v54 = vadd.f32 %v3557_v4, %v1277_v11  ;;  %v1445_v55 = vand.u32 2147483648, %v5347_v47  ;;  %v1631_v0 = vadd.f32 0.4994258, %v1630_v35 }
 0x20c   : > { %v1506_v24 = vmul.f32 %v1505_v61, %v6234_v63  ;;  %3560 = vrcp.f32 %v5362_v56  ;;  %v1664_v48 = vmul.f32 3.8918573e-05, %v6242_v42  ;;  %v5374_v39 = vadd.f32 0.18741608, %v5210_v53 }
 0x20d   : > { %v2465_v13 = vmul.f32 %v2425_v58, %v6241_v10  ;;  %v1282_v32 = vsel %vm1281_vm11, %v3557_v4, %v1278_v54  ;;  %v1632_v9 = vmul.f32 %v1631_v0, %v6218_v17  ;;  %v1544_v7 = vmul.f32 3.8918573e-05, %v6243_v14 }
 0x20e   : > { %v3559_v41 = vpop.eup %3558  ;;  %v1287_v46 = vsel %vm5356_vm10, %v1286_v51, %v1282_v32  ;;  %vm1439_vm12 = vweird.f32 %v5347_v47  ;;  %v1483_v59 = vand.u32 2147483647, %v5362_v56  ;;  %v1485_v1 = vand.u32 2147483648, %v5362_v56 }
 0x20f   : > { %v2497_v16 = vpack.c.bf16 %v2465_v13, %v2461_v60  ;;  %v1288_v52 = vmul.f32 %v1287_v46, %v6244_v8  ;;  %v1435_v4 = vmul.f32 %v3559_v41, %v5347_v47  ;;  %v5385_v53 = vadd.f32 1.0, %v1632_v9 }
 0x210   : > { %v1507_v11 = vadd.f32 0.014752088, %v1506_v24  ;;  %vm5387_vm13 = vcmp.eq.f32.partialorder %v1443_v26, 8.507059e+37  ;;  %v1446_v27 = vor.u32 1.1754944e-38, %v1445_v55  ;;  %v1665_v51 = vadd.f32 0.001143296, %v1664_v48 }
 0x211   : > { %2852 = vmatmul.bf16.gmra.mxu2 %v2497_v16  ;;  %v1436_v6 = vsub.f32 1.0, %v1435_v4  ;;  %v3207_v35 = vclamps-f32 %v1288_v52, 1.0  ;;  %vm1479_vm14 = vweird.f32 %v5362_v56  ;;  %3562 = vrcp.f32 %v5385_v53 }
 0x212   : > { %v1545_v61 = vadd.f32 0.001143296, %v1544_v7  ;;  %v3561_v58 = vpop.eup %3560  ;;  %vm1440_vm15 = vweird.f32 %v3559_v41  ;;  %v1508_v37 = vmul.f32 %v1507_v11, %v6234_v63  ;;  %v1666_v60 = vmul.f32 %v1665_v51, %v6242_v42  ;;  %v6249_v51 = vld [vmem:[#allocation56_spill] sm:$0xff] }
 0x213   : > { %v1437_v54 = vmul.f32 %v3559_v41, %v1436_v6  ;;  %v1475_v26 = vmul.f32 %v3561_v58, %v5362_v56  ;;  %vm5396_vm0 = vcmp.eq.f32.partialorder %v1483_v59, 8.507059e+37  ;;  %v1486_v55 = vor.u32 1.1754944e-38, %v1485_v1  ;;  %vm1441_vm1 = vmor %vm1439_vm12, %vm1440_vm15 }
 0x214   : > { %v1643_v24 = vand.u32 2147483647, %v5385_v53  ;;  %v1645_v13 = vand.u32 2147483648, %v5385_v53  ;;  %v1509_v32 = vadd.f32 0.112945676, %v1508_v37  ;;  %v2422_v46 = vadd.f32 1.0, %v3207_v35 }
 0x215   : > { %v1438_v10 = vadd.f32 %v3559_v41, %v1437_v54  ;;  %v1667_v48 = vadd.f32 0.014752088, %v1666_v60  ;;  %v1476_v9 = vsub.f32 1.0, %v1475_v26  ;;  %v1546_v7 = vmul.f32 %v1545_v61, %v6243_v14  ;;  %v6252_v37 = vld [vmem:[#allocation39_spill] sm:$0xff] }
 0x216   : > { %v1704_v16 = vmul.f32 3.8918573e-05, %v4793_v40  ;;  %vm1480_vm2 = vweird.f32 %v3561_v58  ;;  %vm1639_vm3 = vweird.f32 %v5385_v53  ;;  %v1510_v52 = vmul.f32 %v1509_v32, %v6234_v63 }
 0x217   : > { %v1442_v8 = vsel %vm1441_vm1, %v3559_v41, %v1438_v10  ;;  %v1668_v4 = vmul.f32 %v1667_v48, %v6242_v42  ;;  %v3563_v59 = vpop.eup %3562  ;;  %v1477_v47 = vmul.f32 %v3561_v58, %v1476_v9  ;;  %v1547_v11 = vadd.f32 0.014752088, %v1546_v7  ;;  %vm1481_vm5 = vmor %vm1479_vm14, %vm1480_vm2 }
 0x218   : > { %v1447_v1 = vsel %vm5387_vm13, %v1446_v27, %v1442_v8  ;;  %v1705_v6 = vadd.f32 0.001143296, %v1704_v16  ;;  %v1635_v61 = vmul.f32 %v3563_v59, %v5385_v53  ;;  %vm5413_vm4 = vcmp.eq.f32.partialorder %v1643_v24, 8.507059e+37 }
 0x219   : > { %v1448_v35 = vmul.f32 %v1447_v1, %v6249_v51  ;;  %v1511_v54 = vadd.f32 0.4994258, %v1510_v52  ;;  %v1584_v60 = vmul.f32 3.8918573e-05, %v6252_v37  ;;  %v1478_v26 = vadd.f32 %v3561_v58, %v1477_v47 }
 0x21a   : > { %v1669_v10 = vadd.f32 0.112945676, %v1668_v4  ;;  %v1548_v32 = vmul.f32 %v1547_v11, %v6243_v14  ;;  %v1706_v17 = vmul.f32 %v1705_v6, %v4793_v40  ;;  %v1636_v48 = vsub.f32 1.0, %v1635_v61  ;;  %v6253_v11 = vld [vmem:[#allocation57_spill] sm:$0xff] }
 0x21b   : > { %v3211_v27 = vclamps-f32 %v1448_v35, 1.0  ;;  %vm1640_vm6 = vweird.f32 %v3563_v59  ;;  %v1512_v24 = vmul.f32 %v1511_v54, %v6234_v63  ;;  %v1482_v9 = vsel %vm1481_vm5, %v3561_v58, %v1478_v26  ;;  %v6254_v63 = vld [vmem:[#allocation29_spill] sm:$0xff] }
 0x21c   : > { %v1670_v7 = vmul.f32 %v1669_v10, %v6242_v42  ;;  %v1549_v16 = vadd.f32 0.112945676, %v1548_v32  ;;  %v1707_v8 = vadd.f32 0.014752088, %v1706_v17  ;;  %v1487_v4 = vsel %vm5396_vm0, %v1486_v55, %v1482_v9  ;;  %v6255_v61 = vld [vmem:[#allocation41_spill] sm:$0xff]  ;;  %vm1641_vm7 = vmor %vm1639_vm3, %vm1640_vm6 }
 0x21d   : > { %v2426_v52 = vadd.f32 1.0, %v3211_v27  ;;  %v1637_v1 = vmul.f32 %v3563_v59, %v1636_v48  ;;  %v5427_v47 = vadd.f32 1.0, %v1512_v24  ;;  %v1488_v6 = vmul.f32 %v1487_v4, %v6253_v11 }
 0x21e   : > { %v1671_v56 = vadd.f32 0.4994258, %v1670_v7  ;;  %v1550_v51 = vmul.f32 %v1549_v16, %v6243_v14  ;;  %v1708_v35 = vmul.f32 %v1707_v8, %v4793_v40  ;;  %v2462_v58 = vmul.f32 %v2422_v46, %v6254_v63 }
 0x21f   : > { %v2466_v54 = vmul.f32 %v2426_v52, %v6255_v61  ;;  %v1638_v26 = vadd.f32 %v3563_v59, %v1637_v1  ;;  %3564 = vrcp.f32 %v5427_v47  ;;  %v3212_v10 = vclamps-f32 %v1488_v6, 1.0 }
 0x220   : > { %v1646_v0 = vor.u32 1.1754944e-38, %v1645_v13  ;;  %v1672_v55 = vmul.f32 %v1671_v56, %v6242_v42  ;;  %v1585_v32 = vadd.f32 0.001143296, %v1584_v60  ;;  %v1551_v48 = vadd.f32 0.4994258, %v1550_v51 }
 0x221   : > { %v2498_v17 = vpack.c.bf16 %v2466_v54, %v2462_v58  ;;  %v1642_v27 = vsel %vm1641_vm7, %v3563_v59, %v1638_v26  ;;  %v1709_v24 = vadd.f32 0.112945676, %v1708_v35  ;;  %v1523_v9 = vand.u32 2147483647, %v5427_v47  ;;  %v6259_v54 = vld [vmem:[#allocation52_spill] sm:$0xff] }
 0x222   : > { %v1647_v46 = vsel %vm5413_vm4, %v1646_v0, %v1642_v27  ;;  %v1525_v7 = vand.u32 2147483648, %v5427_v47  ;;  %v1744_v16 = vmul.f32 3.8918573e-05, %v4818_v15  ;;  %v5445_v13 = vadd.f32 1.0, %v1672_v55 }
 0x223   : > { %2886 = vmatmul.bf16.gmra.mxu3 %v2498_v17  ;;  %v1648_v53 = vmul.f32 %v1647_v46, %v5009_v23  ;;  %v1552_v42 = vmul.f32 %v1551_v48, %v6243_v14  ;;  %v1710_v59 = vmul.f32 %v1709_v24, %v4793_v40  ;;  %v5451_v60 = vmul.f32 %v5212_v21, %v5110_v57 }
 0x224   : > { %v5454_v41 = vadd.f32 0.0036580483, %v5201_v34  ;;  %v2427_v8 = vadd.f32 1.0, %v3212_v10  ;;  %v1586_v52 = vmul.f32 %v1585_v32, %v6252_v37  ;;  %v5459_v23 = vmul.f32 %v5374_v39, %v5090_v38  ;;  %v6258_v39 = vld [vmem:[#allocation46_spill] sm:$0xff] }
 0x225   : > { %v3565_v4 = vpop.eup %3564  ;;  %v3216_v1 = vclamps-f32 %v1648_v53, 1.0  ;;  %vm1519_vm8 = vweird.f32 %v5427_v47  ;;  %3566 = vrcp.f32 %v5445_v13  ;;  %vm5464_vm9 = vcmp.eq.f32.partialorder %v1523_v9, 8.507059e+37 }
 0x226   : > { %v1515_v14 = vmul.f32 %v3565_v4, %v5427_v47  ;;  %v5468_v34 = vadd.f32 1.0, %v1552_v42  ;;  %v1745_v11 = vadd.f32 0.001143296, %v1744_v16  ;;  %v1526_v56 = vor.u32 1.1754944e-38, %v1525_v7 }
 0x227   : > { %v2431_v6 = vadd.f32 1.0, %v3216_v1  ;;  %v1711_v51 = vadd.f32 0.4994258, %v1710_v59  ;;  %v1587_v35 = vadd.f32 0.014752088, %v1586_v52  ;;  %v2467_v63 = vmul.f32 %v2427_v8, %v6258_v39 }
 0x228   : > { %v1516_v58 = vsub.f32 1.0, %v1515_v14  ;;  %v1683_v61 = vand.u32 2147483647, %v5445_v13  ;;  %3568 = vrcp.f32 %v5468_v34  ;;  %v1685_v10 = vand.u32 2147483648, %v5445_v13 }
 0x229   : > { %v2471_v26 = vmul.f32 %v2431_v6, %v6259_v54  ;;  %v1712_v0 = vmul.f32 %v1711_v51, %v4793_v40  ;;  %v1784_v55 = vmul.f32 3.8918573e-05, %v4868_v25  ;;  %vm1520_vm10 = vweird.f32 %v3565_v4 }
 0x22a   : > { %v1517_v32 = vmul.f32 %v3565_v4, %v1516_v58  ;;  %vm1679_vm11 = vweird.f32 %v5445_v13  ;;  %v1588_v17 = vmul.f32 %v1587_v35, %v6252_v37  ;;  %v1746_v27 = vmul.f32 %v1745_v11, %v4818_v15  ;;  %vm1521_vm13 = vmor %vm1519_vm8, %vm1520_vm10 }
 0x22b   : > { %v3567_v48 = vpop.eup %3566  ;;  %v2499_v24 = vpack.c.bf16 %v2471_v26, %v2467_v63  ;;  %v1563_v46 = vand.u32 2147483647, %v5468_v34  ;;  %v1565_v9 = vand.u32 2147483648, %v5468_v34  ;;  %v5482_v7 = vadd.f32 1.0, %v1712_v0  ;;  %v6264_v63 = vld [vmem:[#allocation61_spill] sm:$0xff] }
 0x22c   : > { %v1518_v16 = vadd.f32 %v3565_v4, %v1517_v32  ;;  %v1675_v40 = vmul.f32 %v3567_v48, %v5445_v13  ;;  %vm5485_vm12 = vcmp.eq.f32.partialorder %v1683_v61, 8.507059e+37  ;;  %v1589_v42 = vadd.f32 0.112945676, %v1588_v17 }
 0x22d   : > { %2789 = vmatmul.bf16.gmra.mxu0 %v2499_v24  ;;  %v1686_v59 = vor.u32 1.1754944e-38, %v1685_v10  ;;  %vm1559_vm14 = vweird.f32 %v5468_v34  ;;  %3570 = vrcp.f32 %v5482_v7  ;;  %v1785_v8 = vadd.f32 0.001143296, %v1784_v55 }
 0x22e   : > { %v3569_v52 = vpop.eup %3568  ;;  %v1522_v1 = vsel %vm1521_vm13, %v3565_v4, %v1518_v16  ;;  %v1676_v14 = vsub.f32 1.0, %v1675_v40  ;;  %v1590_v11 = vmul.f32 %v1589_v42, %v6252_v37  ;;  %v1747_v6 = vadd.f32 0.014752088, %v1746_v27 }
 0x22f   : > { %v1527_v51 = vsel %vm5464_vm9, %v1526_v56, %v1522_v1  ;;  %v1555_v35 = vmul.f32 %v3569_v52, %v5468_v34  ;;  %vm5497_vm15 = vcmp.eq.f32.partialorder %v1563_v46, 8.507059e+37  ;;  %v1566_v39 = vor.u32 1.1754944e-38, %v1565_v9  ;;  %v6267_v34 = vld [vmem:[#allocation62_spill] sm:$0xff] }
 0x230   : > { %v1528_v58 = vmul.f32 %v1527_v51, %v6264_v63  ;;  %v1677_v61 = vmul.f32 %v3567_v48, %v1676_v14  ;;  %vm1680_vm0 = vweird.f32 %v3567_v48  ;;  %v1591_v54 = vadd.f32 0.4994258, %v1590_v11 }
 0x231   : > { %v1556_v4 = vsub.f32 1.0, %v1555_v35  ;;  %v1748_v26 = vmul.f32 %v1747_v6, %v4818_v15  ;;  %v1786_v10 = vmul.f32 %v1785_v8, %v4868_v25  ;;  %v1944_v21 = vmul.f32 3.8918573e-05, %v4902_v30  ;;  %vm1681_vm2 = vmor %vm1679_vm11, %vm1680_vm0 }
 0x232   : > { %v3213_v56 = vclamps-f32 %v1528_v58, 1.0  ;;  %v1678_v0 = vadd.f32 %v3567_v48, %v1677_v61  ;;  %vm1719_vm1 = vweird.f32 %v5482_v7  ;;  %v1723_v55 = vand.u32 2147483647, %v5482_v7 }
 0x233   : > { %v1592_v32 = vmul.f32 %v1591_v54, %v6252_v37  ;;  %v3571_v17 = vpop.eup %3570  ;;  %v1557_v27 = vmul.f32 %v3569_v52, %v1556_v4  ;;  %vm1560_vm3 = vweird.f32 %v3569_v52  ;;  %v1749_v24 = vadd.f32 0.112945676, %v1748_v26  ;;  %v6268_v26 = vld [vmem:[#allocation47_spill] sm:$0xff] }
 0x234   : > { %v1787_v46 = vadd.f32 0.014752088, %v1786_v10  ;;  %v1682_v9 = vsel %vm1681_vm2, %v3567_v48, %v1678_v0  ;;  %v1715_v16 = vmul.f32 %v3571_v17, %v5482_v7  ;;  %v1725_v40 = vand.u32 2147483648, %v5482_v7  ;;  %vm1561_vm4 = vmor %vm1559_vm14, %vm1560_vm3 }
 0x235   : > { %v1945_v42 = vadd.f32 0.001143296, %v1944_v21  ;;  %v1687_v8 = vsel %vm5485_vm12, %v1686_v59, %v1682_v9  ;;  %v1558_v1 = vadd.f32 %v3569_v52, %v1557_v27  ;;  %v5514_v14 = vadd.f32 1.0, %v1592_v32  ;;  %v6269_v32 = vld [vmem:[#allocation55_spill] sm:$0xff] }
 0x236   : > { %v1750_v37 = vmul.f32 %v1749_v24, %v4818_v15  ;;  %v1688_v13 = vmul.f32 %v1687_v8, %v5012_v45  ;;  %v2428_v11 = vadd.f32 1.0, %v3213_v56  ;;  %v1716_v48 = vsub.f32 1.0, %v1715_v16 }
 0x237   : > { %v1788_v6 = vmul.f32 %v1787_v46, %v4868_v25  ;;  %v1562_v51 = vsel %vm1561_vm4, %v3569_v52, %v1558_v1  ;;  %vm5521_vm5 = vcmp.eq.f32.partialorder %v1723_v55, 8.507059e+37  ;;  %3572 = vrcp.f32 %v5514_v14 }
 0x238   : > { %v1824_v53 = vmul.f32 3.8918573e-05, %v4870_v49  ;;  %v3217_v59 = vclamps-f32 %v1688_v13, 1.0  ;;  %v1567_v45 = vsel %vm5497_vm15, %v1566_v39, %v1562_v51  ;;  %v1717_v63 = vmul.f32 %v3571_v17, %v1716_v48 }
 0x239   : > { %vm1720_vm6 = vweird.f32 %v3571_v17  ;;  %v1568_v58 = vmul.f32 %v1567_v45, %v6267_v34  ;;  %v1726_v61 = vor.u32 1.1754944e-38, %v1725_v40  ;;  %v1751_v54 = vadd.f32 0.4994258, %v1750_v37  ;;  %v6272_v34 = vld [vmem:[#allocation50_spill] sm:$0xff] }
 0x23a   : > { %v1789_v4 = vadd.f32 0.112945676, %v1788_v6  ;;  %v2432_v52 = vadd.f32 1.0, %v3217_v59  ;;  %v2468_v10 = vmul.f32 %v2428_v11, %v6268_v26  ;;  %v1718_v21 = vadd.f32 %v3571_v17, %v1717_v63  ;;  %vm1721_vm7 = vmor %vm1719_vm1, %vm1720_vm6 }
 0x23b   : > { %v1946_v56 = vmul.f32 %v1945_v42, %v4902_v30  ;;  %v3214_v0 = vclamps-f32 %v1568_v58, 1.0  ;;  %v1603_v47 = vand.u32 2147483647, %v5514_v14  ;;  %v1752_v39 = vmul.f32 %v1751_v54, %v4818_v15 }
 0x23c   : > { %v1790_v55 = vmul.f32 %v1789_v4, %v4868_v25  ;;  %v2472_v27 = vmul.f32 %v2432_v52, %v6269_v32  ;;  %v1722_v24 = vsel %vm1721_vm7, %v3571_v17, %v1718_v21  ;;  %v1825_v9 = vadd.f32 0.001143296, %v1824_v53  ;;  %v6273_v4 = vld [vmem:[#allocation58_spill] sm:$0xff] }
 0x23d   : > { %v1947_v46 = vadd.f32 0.014752088, %v1946_v56  ;;  %v3573_v16 = vpop.eup %3572  ;;  %v1727_v40 = vsel %vm5521_vm5, %v1726_v61, %v1722_v24  ;;  %v5540_v42 = vadd.f32 1.0, %v1752_v39  ;;  %v1984_v7 = vmul.f32 3.8918573e-05, %v4927_v33 }
 0x23e   : > { %v1791_v8 = vadd.f32 0.4994258, %v1790_v55  ;;  %v5544_v1 = vadd.f32 0.18741608, %v5451_v60  ;;  %v2500_v15 = vpack.c.bf16 %v2472_v27, %v2468_v10  ;;  %v1728_v37 = vmul.f32 %v1727_v40, %v5027_v31  ;;  %v6276_v40 = vld [vmem:[#allocation35_spill] sm:$0xff] }
 0x23f   : > { %v1595_v13 = vmul.f32 %v3573_v16, %v5514_v14  ;;  %v5549_v17 = vadd.f32 1.1283791, %v5459_v23  ;;  %v2429_v11 = vadd.f32 1.0, %v3214_v0  ;;  %vm1599_vm8 = vweird.f32 %v5514_v14 }
 0x240   : > { %3574 = vrcp.f32 %v5540_v42  ;;  %2823 = vmatmul.bf16.gmra.mxu1 %v2500_v15  ;;  %v3218_v48 = vclamps-f32 %v1728_v37, 1.0  ;;  %v1605_v51 = vand.u32 2147483648, %v5514_v14  ;;  %v1792_v60 = vmul.f32 %v1791_v8, %v4868_v25 }
 0x241   : > { %v1596_v6 = vsub.f32 1.0, %v1595_v13  ;;  %vm5555_vm9 = vcmp.eq.f32.partialorder %v1603_v47, 8.507059e+37  ;;  %v1948_v31 = vmul.f32 %v1947_v46, %v4902_v30  ;;  %v1826_v23 = vmul.f32 %v1825_v9, %v4870_v49 }
 0x242   : > { %v1985_v53 = vadd.f32 0.001143296, %v1984_v7  ;;  %v2433_v59 = vadd.f32 1.0, %v3218_v48  ;;  %vm1600_vm10 = vweird.f32 %v3573_v16  ;;  %v5561_v63 = vadd.f32 1.0, %v1792_v60 }
 0x243   : > { %v1597_v45 = vmul.f32 %v3573_v16, %v1596_v6  ;;  %v2469_v58 = vmul.f32 %v2429_v11, %v6272_v34  ;;  %v1763_v61 = vand.u32 2147483647, %v5540_v42  ;;  %v1949_v54 = vadd.f32 0.112945676, %v1948_v31  ;;  %vm1601_vm11 = vmor %vm1599_vm8, %vm1600_vm10 }
 0x244   : > { %v1827_v25 = vadd.f32 0.014752088, %v1826_v23  ;;  %v2473_v52 = vmul.f32 %v2433_v59, %v6273_v4  ;;  %3576 = vrcp.f32 %v5561_v63  ;;  %v1986_v10 = vmul.f32 %v1985_v53, %v4927_v33 }
 0x245   : > { %v1598_v26 = vadd.f32 %v3573_v16, %v1597_v45  ;;  %v1606_v56 = vor.u32 1.1754944e-38, %v1605_v51  ;;  %v1950_v0 = vmul.f32 %v1949_v54, %v4902_v30  ;;  %v1864_v39 = vmul.f32 3.8918573e-05, %v4898_v36 }
 0x246   : > { %v3575_v21 = vpop.eup %3574  ;;  %v1828_v47 = vmul.f32 %v1827_v25, %v4870_v49  ;;  %v2501_v55 = vpack.c.bf16 %v2473_v52, %v2469_v58  ;;  %vm1759_vm12 = vweird.f32 %v5540_v42  ;;  %vm5577_vm13 = vcmp.eq.f32.partialorder %v1763_v61, 8.507059e+37 }
 0x247   : > { %v1602_v32 = vsel %vm1601_vm11, %v3573_v16, %v1598_v26  ;;  %v1755_v27 = vmul.f32 %v3575_v21, %v5540_v42  ;;  %v1765_v14 = vand.u32 2147483648, %v5540_v42  ;;  %v1951_v9 = vadd.f32 0.4994258, %v1950_v0 }
 0x248   : > { %v1607_v24 = vsel %vm5555_vm9, %v1606_v56, %v1602_v32  ;;  %2857 = vmatmul.bf16.gmra.mxu2 %v2501_v55  ;;  %v1829_v15 = vadd.f32 0.112945676, %v1828_v47  ;;  %v1987_v16 = vadd.f32 0.014752088, %v1986_v10  ;;  %vm1760_vm14 = vweird.f32 %v3575_v21 }
 0x249   : > { %v1608_v8 = vmul.f32 %v1607_v24, %v6276_v40  ;;  %v1756_v7 = vsub.f32 1.0, %v1755_v27  ;;  %v1803_v37 = vand.u32 2147483647, %v5561_v63  ;;  %v1952_v13 = vmul.f32 %v1951_v9, %v4902_v30  ;;  %vm1761_vm0 = vmor %vm1759_vm12, %vm1760_vm14 }
 0x24a   : > { %v1865_v11 = vadd.f32 0.001143296, %v1864_v39  ;;  %v3577_v48 = vpop.eup %3576  ;;  %v1830_v60 = vmul.f32 %v1829_v15, %v4870_v49  ;;  %v1988_v35 = vmul.f32 %v1987_v16, %v4927_v33  ;;  %v1766_v31 = vor.u32 1.1754944e-38, %v1765_v14  ;;  %v6279_v14 = vld [vmem:[#allocation51_spill] sm:$0xff] }
 0x24b   : > { %v3215_v6 = vclamps-f32 %v1608_v8, 1.0  ;;  %v1757_v51 = vmul.f32 %v3575_v21, %v1756_v7  ;;  %v1795_v23 = vmul.f32 %v3577_v48, %v5561_v63  ;;  %vm1799_vm15 = vweird.f32 %v5561_v63 }
 0x24c   : > { %v5589_v53 = vadd.f32 1.0, %v1952_v13  ;;  %v1831_v45 = vadd.f32 0.4994258, %v1830_v60  ;;  %v1989_v34 = vadd.f32 0.112945676, %v1988_v35  ;;  %v1866_v30 = vmul.f32 %v1865_v11, %v4898_v36 }
 0x24d   : > { %v1758_v59 = vadd.f32 %v3575_v21, %v1757_v51  ;;  %v1796_v58 = vsub.f32 1.0, %v1795_v23  ;;  %vm5595_vm1 = vcmp.eq.f32.partialorder %v1803_v37, 8.507059e+37  ;;  %v1805_v54 = vand.u32 2147483648, %v5561_v63 }
 0x24e   : > { %3578 = vrcp.f32 %v5589_v53  ;;  %v2430_v4 = vadd.f32 1.0, %v3215_v6  ;;  %v1832_v52 = vmul.f32 %v1831_v45, %v4870_v49  ;;  %v2024_v26 = vmul.f32 3.8918573e-05, %v4945_v5 }
 0x24f   : > { %v1762_v25 = vsel %vm1761_vm0, %v3575_v21, %v1758_v59  ;;  %v1797_v42 = vmul.f32 %v3577_v48, %v1796_v58  ;;  %vm1800_vm2 = vweird.f32 %v3577_v48  ;;  %v1990_v56 = vmul.f32 %v1989_v34, %v4927_v33 }
 0x250   : > { %v1767_v10 = vsel %vm5577_vm13, %v1766_v31, %v1762_v25  ;;  %v1963_v47 = vand.u32 2147483647, %v5589_v53  ;;  %v5608_v39 = vadd.f32 1.0, %v1832_v52  ;;  %v1867_v55 = vadd.f32 0.014752088, %v1866_v30  ;;  %vm1801_vm3 = vmor %vm1799_vm15, %vm1800_vm2 }
 0x251   : > { %v1768_v0 = vmul.f32 %v1767_v10, %v5057_v19  ;;  %v1798_v21 = vadd.f32 %v3577_v48, %v1797_v42  ;;  %v1806_v32 = vor.u32 1.1754944e-38, %v1805_v54  ;;  %v1991_v27 = vadd.f32 0.4994258, %v1990_v56 }
 0x252   : > { %v1904_v49 = vmul.f32 3.8918573e-05, %v4900_v22  ;;  %v2470_v46 = vmul.f32 %v2430_v4, %v6279_v14  ;;  %vm1959_vm4 = vweird.f32 %v5589_v53  ;;  %3580 = vrcp.f32 %v5608_v39 }
 0x253   : > { %v3219_v24 = vclamps-f32 %v1768_v0, 1.0  ;;  %v2025_v19 = vadd.f32 0.001143296, %v2024_v26  ;;  %v1802_v40 = vsel %vm1801_vm3, %v3577_v48, %v1798_v21  ;;  %v1965_v8 = vand.u32 2147483648, %v5589_v53 }
 0x254   : > { %v3579_v9 = vpop.eup %3578  ;;  %v1992_v7 = vmul.f32 %v1991_v27, %v4927_v33  ;;  %v1868_v15 = vmul.f32 %v1867_v55, %v4898_v36  ;;  %v1807_v37 = vsel %vm5595_vm1, %v1806_v32, %v1802_v40  ;;  %vm5622_vm5 = vcmp.eq.f32.partialorder %v1963_v47, 8.507059e+37  ;;  %v6282_v33 = vld [vmem:[#allocation59_spill] sm:$0xff] }
 0x255   : > { %v2434_v16 = vadd.f32 1.0, %v3219_v24  ;;  %v1955_v63 = vmul.f32 %v3579_v9, %v5589_v53  ;;  %v1808_v11 = vmul.f32 %v1807_v37, %v5086_v18  ;;  %v1843_v48 = vand.u32 2147483647, %v5608_v39 }
 0x256   : > { %v1845_v6 = vand.u32 2147483648, %v5608_v39  ;;  %v5629_v51 = vadd.f32 1.0, %v1992_v7  ;;  %v1869_v31 = vadd.f32 0.112945676, %v1868_v15  ;;  %v2026_v23 = vmul.f32 %v2025_v19, %v4945_v5 }
 0x257   : > { %v2474_v60 = vmul.f32 %v2434_v16, %v6282_v33  ;;  %v1956_v35 = vsub.f32 1.0, %v1955_v63  ;;  %v1966_v59 = vor.u32 1.1754944e-38, %v1965_v8  ;;  %vm1839_vm6 = vweird.f32 %v5608_v39 }
 0x258   : > { %3582 = vrcp.f32 %v5629_v51  ;;  %v1905_v45 = vadd.f32 0.001143296, %v1904_v49  ;;  %v3581_v34 = vpop.eup %3580  ;;  %vm1960_vm7 = vweird.f32 %v3579_v9  ;;  %v1870_v58 = vmul.f32 %v1869_v31, %v4898_v36  ;;  %v6287_v31 = vld [vmem:[#allocation60_spill] sm:$0xff] }
 0x259   : > { %v2502_v18 = vpack.c.bf16 %v2474_v60, %v2470_v46  ;;  %v1957_v30 = vmul.f32 %v3579_v9, %v1956_v35  ;;  %v3220_v61 = vclamps-f32 %v1808_v11, 1.0  ;;  %v1835_v54 = vmul.f32 %v3581_v34, %v5608_v39  ;;  %vm1961_vm9 = vmor %vm1959_vm4, %vm1960_vm7 }
 0x25a   : > { %vm5637_vm8 = vcmp.eq.f32.partialorder %v1843_v48, 8.507059e+37  ;;  %v1846_v4 = vor.u32 1.1754944e-38, %v1845_v6  ;;  %v2003_v26 = vand.u32 2147483647, %v5629_v51  ;;  %v1871_v10 = vadd.f32 0.4994258, %v1870_v58 }
 0x25b   : > { %2891 = vmatmul.bf16.gmra.mxu3 %v2502_v18  ;;  %v1958_v52 = vadd.f32 %v3579_v9, %v1957_v30  ;;  %v2027_v42 = vadd.f32 0.014752088, %v2026_v23  ;;  %v1836_v56 = vsub.f32 1.0, %v1835_v54  ;;  %v2005_v0 = vand.u32 2147483648, %v5629_v51 }
 0x25c   : > { %v1906_v47 = vmul.f32 %v1905_v45, %v4900_v22  ;;  %v2064_v55 = vmul.f32 3.8918573e-05, %v4973_v62  ;;  %vm1840_vm10 = vweird.f32 %v3581_v34  ;;  %vm1999_vm11 = vweird.f32 %v5629_v51 }
 0x25d   : > { %v1962_v21 = vsel %vm1961_vm9, %v3579_v9, %v1958_v52  ;;  %v1872_v32 = vmul.f32 %v1871_v10, %v4898_v36  ;;  %v2028_v27 = vmul.f32 %v2027_v42, %v4945_v5  ;;  %v1837_v24 = vmul.f32 %v3581_v34, %v1836_v56  ;;  %vm1841_vm13 = vmor %vm1839_vm6, %vm1840_vm10 }
 0x25e   : > { %v3583_v49 = vpop.eup %3582  ;;  %v1967_v53 = vsel %vm5622_vm5, %v1966_v59, %v1962_v21  ;;  %v1907_v14 = vadd.f32 0.014752088, %v1906_v47  ;;  %v2065_v46 = vadd.f32 0.001143296, %v2064_v55  ;;  %v2435_v40 = vadd.f32 1.0, %v3220_v61 }
 0x25f   : > { %v1968_v19 = vmul.f32 %v1967_v53, %v5129_v3  ;;  %v1995_v8 = vmul.f32 %v3583_v49, %v5629_v51  ;;  %v5654_v9 = vadd.f32 1.0, %v1872_v32  ;;  %v1838_v7 = vadd.f32 %v3581_v34, %v1837_v24 }
 0x260   : > { %vm5656_vm12 = vcmp.eq.f32.partialorder %v2003_v26, 8.507059e+37  ;;  %v2029_v36 = vadd.f32 0.112945676, %v2028_v27  ;;  %v1908_v16 = vmul.f32 %v1907_v14, %v4900_v22  ;;  %v2066_v3 = vmul.f32 %v2065_v46, %v4973_v62 }
 0x261   : > { %v3224_v37 = vclamps-f32 %v1968_v19, 1.0  ;;  %v1996_v63 = vsub.f32 1.0, %v1995_v8  ;;  %3584 = vrcp.f32 %v5654_v9  ;;  %v1842_v13 = vsel %vm1841_vm13, %v3581_v34, %v1838_v7 }
 0x262   : > { %vm2000_vm14 = vweird.f32 %v3583_v49  ;;  %v2030_v11 = vmul.f32 %v2029_v36, %v4945_v5  ;;  %v2104_v48 = vmul.f32 3.8918573e-05, %v4989_v43  ;;  %v1847_v33 = vsel %vm5637_vm8, %v1846_v4, %v1842_v13 }
 0x263   : > { %v2439_v6 = vadd.f32 1.0, %v3224_v37  ;;  %v1997_v60 = vmul.f32 %v3583_v49, %v1996_v63  ;;  %v1909_v35 = vadd.f32 0.112945676, %v1908_v16  ;;  %v2475_v39 = vmul.f32 %v2435_v40, %v6287_v31  ;;  %vm2001_vm15 = vmor %vm1999_vm11, %vm2000_vm14  ;;  %v6290_v16 = vld [vmem:[#allocation63_spill] sm:$0xff] }
 0x264   : > { %v1848_v23 = vmul.f32 %v1847_v33, %v5095_v12  ;;  %v2006_v59 = vor.u32 1.1754944e-38, %v2005_v0  ;;  %v2031_v45 = vadd.f32 0.4994258, %v2030_v11  ;;  %v2067_v58 = vadd.f32 0.014752088, %v2066_v3 }
 0x265   : > { %v2479_v18 = vmul.f32 %v2439_v6, %v5030_v50  ;;  %v1998_v34 = vadd.f32 %v3583_v49, %v1997_v60  ;;  %v1910_v30 = vmul.f32 %v1909_v35, %v4900_v22  ;;  %v2105_v25 = vadd.f32 0.001143296, %v2104_v48 }
 0x266   : > { %v3221_v61 = vclamps-f32 %v1848_v23, 1.0  ;;  %v2032_v54 = vmul.f32 %v2031_v45, %v4945_v5  ;;  %v2264_v4 = vmul.f32 3.8918573e-05, %v5090_v38  ;;  %v2068_v50 = vmul.f32 %v2067_v58, %v4973_v62  ;;  %v6293_v45 = vld [vmem:[#allocation17_spill] sm:$0xff] }
 0x267   : > { %v3585_v52 = vpop.eup %3584  ;;  %v2503_v12 = vpack.c.bf16 %v2479_v18, %v2475_v39  ;;  %v2002_v26 = vsel %vm2001_vm15, %v3583_v49, %v1998_v34  ;;  %v1911_v10 = vadd.f32 0.4994258, %v1910_v30  ;;  %v5682_v42 = vmul.f32 %v5544_v1, %v5110_v57 }
 0x268   : > { %v2007_v56 = vsel %vm5656_vm12, %v2006_v59, %v2002_v26  ;;  %v1875_v51 = vmul.f32 %v3585_v52, %v5654_v9  ;;  %v1883_v5 = vand.u32 2147483647, %v5654_v9  ;;  %v5689_v47 = vadd.f32 1.0, %v2032_v54 }
 0x269   : > { %2794 = vmatmul.bf16.gmra.mxu0 %v2503_v12  ;;  %v2008_v0 = vmul.f32 %v2007_v56, %v5132_v2  ;;  %v1912_v55 = vmul.f32 %v1911_v10, %v4900_v22  ;;  %v2069_v21 = vadd.f32 0.112945676, %v2068_v50  ;;  %vm1879_vm0 = vweird.f32 %v5654_v9 }
 0x26a   : > { %v1876_v32 = vsub.f32 1.0, %v1875_v51  ;;  %v2106_v1 = vmul.f32 %v2105_v25, %v4989_v43  ;;  %v2265_v27 = vadd.f32 0.001143296, %v2264_v4  ;;  %v2436_v53 = vadd.f32 1.0, %v3221_v61 }
 0x26b   : > { %v3225_v49 = vclamps-f32 %v2008_v0, 1.0  ;;  %v1885_v24 = vand.u32 2147483648, %v5654_v9  ;;  %3586 = vrcp.f32 %v5689_v47  ;;  %vm1880_vm1 = vweird.f32 %v3585_v52 }
 0x26c   : > { %v1877_v14 = vmul.f32 %v3585_v52, %v1876_v32  ;;  %v5696_v2 = vadd.f32 1.0, %v1912_v55  ;;  %v2070_v46 = vmul.f32 %v2069_v21, %v4973_v62  ;;  %vm5699_vm2 = vcmp.eq.f32.partialorder %v1883_v5, 8.507059e+37  ;;  %vm1881_vm3 = vmor %vm1879_vm0, %vm1880_vm1 }
 0x26d   : > { %v2440_v22 = vadd.f32 1.0, %v3225_v49  ;;  %v2107_v40 = vadd.f32 0.014752088, %v2106_v1  ;;  %v2266_v8 = vmul.f32 %v2265_v27, %v5090_v38  ;;  %v2043_v15 = vand.u32 2147483647, %v5689_v47  ;;  %v6296_v27 = vld [vmem:[#allocation69_spill] sm:$0xff] }
 0x26e   : > { %v1878_v7 = vadd.f32 %v3585_v52, %v1877_v14  ;;  %v2045_v36 = vand.u32 2147483648, %v5689_v47  ;;  %3588 = vrcp.f32 %v5696_v2  ;;  %v2476_v37 = vmul.f32 %v2436_v53, %v6290_v16 }
 0x26f   : > { %v2480_v63 = vmul.f32 %v2440_v22, %v5060_v29  ;;  %v1886_v3 = vor.u32 1.1754944e-38, %v1885_v24  ;;  %v2071_v13 = vadd.f32 0.4994258, %v2070_v46  ;;  %v2108_v48 = vmul.f32 %v2107_v40, %v4989_v43 }
 0x270   : > { %v1882_v11 = vsel %vm1881_vm3, %v3585_v52, %v1878_v7  ;;  %v2267_v6 = vadd.f32 0.014752088, %v2266_v8  ;;  %v2144_v33 = vmul.f32 3.8918573e-05, %v4997_v28  ;;  %v5715_v35 = vmul.f32 %v5549_v17, %v5048_v44 }
 0x271   : > { %v3587_v60 = vpop.eup %3586  ;;  %v2504_v31 = vpack.c.bf16 %v2480_v63, %v2476_v37  ;;  %v1887_v29 = vsel %vm5699_vm2, %v1886_v3, %v1882_v11  ;;  %vm2039_vm4 = vweird.f32 %v5689_v47  ;;  %vm5721_vm5 = vcmp.eq.f32.partialorder %v2043_v15, 8.507059e+37 }
 0x272   : > { %v2035_v9 = vmul.f32 %v3587_v60, %v5689_v47  ;;  %v2046_v23 = vor.u32 1.1754944e-38, %v2045_v36  ;;  %v2072_v59 = vmul.f32 %v2071_v13, %v4973_v62  ;;  %v1888_v18 = vmul.f32 %v1887_v29, %v6293_v45  ;;  %v6297_v47 = vld [vmem:[#allocation80_spill] sm:$0xff]  ;;  %v6299_v29 = vld [vmem:[#allocation77_spill] sm:$0xff] }
 0x273   : > { %2828 = vmatmul.bf16.gmra.mxu1 %v2504_v31  ;;  %v1923_v44 = vand.u32 2147483647, %v5696_v2  ;;  %v2109_v17 = vadd.f32 0.112945676, %v2108_v48  ;;  %v2268_v34 = vmul.f32 %v2267_v6, %v5090_v38  ;;  %v1925_v61 = vand.u32 2147483648, %v5696_v2 }
 0x274   : > { %v3589_v30 = vpop.eup %3588  ;;  %v2036_v58 = vsub.f32 1.0, %v2035_v9  ;;  %v5730_v54 = vadd.f32 1.0, %v2072_v59  ;;  %v2145_v25 = vadd.f32 0.001143296, %v2144_v33  ;;  %vm1919_vm6 = vweird.f32 %v5696_v2 }
 0x275   : > { %v1915_v4 = vmul.f32 %v3589_v30, %v5696_v2  ;;  %v2110_v62 = vmul.f32 %v2109_v17, %v4989_v43  ;;  %v2269_v52 = vadd.f32 0.112945676, %v2268_v34  ;;  %vm2040_vm7 = vweird.f32 %v3587_v60 }
 0x276   : > { %v2037_v12 = vmul.f32 %v3587_v60, %v2036_v58  ;;  %3590 = vrcp.f32 %v5730_v54  ;;  %v2304_v26 = vmul.f32 3.8918573e-05, %v5110_v57  ;;  %v3222_v10 = vclamps-f32 %v1888_v18, 1.0  ;;  %vm2041_vm9 = vmor %vm2039_vm4, %vm2040_vm7  ;;  %v6300_v18 = vld [vmem:[#allocation72_spill] sm:$0xff] }
 0x277   : > { %v1916_v50 = vsub.f32 1.0, %v1915_v4  ;;  %vm5737_vm8 = vcmp.eq.f32.partialorder %v1923_v44, 8.507059e+37  ;;  %v2111_v51 = vadd.f32 0.4994258, %v2110_v62  ;;  %v1926_v0 = vor.u32 1.1754944e-38, %v1925_v61 }
 0x278   : > { %v2038_v5 = vadd.f32 %v3587_v60, %v2037_v12  ;;  %v2270_v55 = vmul.f32 %v2269_v52, %v5090_v38  ;;  %v2146_v21 = vmul.f32 %v2145_v25, %v4997_v28  ;;  %vm1920_vm10 = vweird.f32 %v3589_v30 }
 0x279   : > { %v1917_v32 = vmul.f32 %v3589_v30, %v1916_v50  ;;  %v2112_v1 = vmul.f32 %v2111_v51, %v4989_v43  ;;  %v2184_v49 = vmul.f32 3.8918573e-05, %v6296_v27  ;;  %v2305_v46 = vadd.f32 0.001143296, %v2304_v26  ;;  %vm1921_vm11 = vmor %vm1919_vm6, %vm1920_vm10 }
 0x27a   : > { %v2042_v53 = vsel %vm2041_vm9, %v3587_v60, %v2038_v5  ;;  %v2271_v24 = vadd.f32 0.4994258, %v2270_v55  ;;  %v2147_v14 = vadd.f32 0.014752088, %v2146_v21  ;;  %v2437_v19 = vadd.f32 1.0, %v3222_v10 }
 0x27b   : > { %v2047_v22 = vsel %vm5721_vm5, %v2046_v23, %v2042_v53  ;;  %v1918_v40 = vadd.f32 %v3589_v30, %v1917_v32  ;;  %v5749_v8 = vadd.f32 1.0, %v2112_v1  ;;  %v2306_v16 = vmul.f32 %v2305_v46, %v5110_v57  ;;  %v6305_v32 = vld [vmem:[#allocation28_spill] sm:$0xff]  ;;  %v6306_v53 = vld [vmem:[#allocation82_spill] sm:$0xff] }
 0x27c   : > { %v3591_v7 = vpop.eup %3590  ;;  %v2048_v15 = vmul.f32 %v2047_v22, %v6297_v47  ;;  %v2272_v43 = vmul.f32 %v2271_v24, %v5090_v38  ;;  %v2148_v36 = vmul.f32 %v2147_v14, %v4997_v28  ;;  %vm2079_vm12 = vweird.f32 %v5730_v54  ;;  %v6298_v38 = vld [vmem:[#allocation67_spill] sm:$0xff] }
 0x27d   : > { %v1922_v37 = vsel %vm1921_vm11, %v3589_v30, %v1918_v40  ;;  %v2075_v63 = vmul.f32 %v3591_v7, %v5730_v54  ;;  %3592 = vrcp.f32 %v5749_v8  ;;  %v2083_v2 = vand.u32 2147483647, %v5730_v54 }
 0x27e   : > { %v3226_v3 = vclamps-f32 %v2048_v15, 1.0  ;;  %v1927_v13 = vsel %vm5737_vm8, %v1926_v0, %v1922_v37  ;;  %v2085_v11 = vand.u32 2147483648, %v5730_v54  ;;  %v2477_v48 = vmul.f32 %v2437_v19, %v6298_v38  ;;  %v6307_v19 = vld [vmem:[#allocation76_spill] sm:$0xff] }
 0x27f   : > { %v2076_v6 = vsub.f32 1.0, %v2075_v63  ;;  %v2123_v33 = vand.u32 2147483647, %v5749_v8  ;;  %v5766_v60 = vadd.f32 1.0, %v2272_v43  ;;  %v1928_v9 = vmul.f32 %v1927_v13, %v6299_v29 }
 0x280   : > { %v2441_v31 = vadd.f32 1.0, %v3226_v3  ;;  %v2149_v39 = vadd.f32 0.112945676, %v2148_v36  ;;  %v2307_v23 = vadd.f32 0.014752088, %v2306_v16  ;;  %vm2080_vm13 = vweird.f32 %v3591_v7 }
 0x281   : > { %v2077_v59 = vmul.f32 %v3591_v7, %v2076_v6  ;;  %v2125_v45 = vand.u32 2147483648, %v5749_v8  ;;  %3594 = vrcp.f32 %v5766_v60  ;;  %vm5772_vm14 = vcmp.eq.f32.partialorder %v2083_v2, 8.507059e+37  ;;  %vm2081_vm0 = vmor %vm2079_vm12, %vm2080_vm13 }
 0x282   : > { %v2481_v44 = vmul.f32 %v2441_v31, %v6300_v18  ;;  %v2086_v34 = vor.u32 1.1754944e-38, %v2085_v11  ;;  %v2185_v30 = vadd.f32 0.001143296, %v2184_v49  ;;  %vm2119_vm15 = vweird.f32 %v5749_v8 }
 0x283   : > { %v3593_v58 = vpop.eup %3592  ;;  %v2078_v61 = vadd.f32 %v3591_v7, %v2077_v59  ;;  %v2150_v25 = vmul.f32 %v2149_v39, %v4997_v28  ;;  %v2308_v4 = vmul.f32 %v2307_v23, %v5110_v57  ;;  %v3223_v52 = vclamps-f32 %v1928_v9, 1.0 }
 0x284   : > { %v2505_v62 = vpack.c.bf16 %v2481_v44, %v2477_v48  ;;  %v2115_v12 = vmul.f32 %v3593_v58, %v5749_v8  ;;  %vm5782_vm1 = vcmp.eq.f32.partialorder %v2123_v33, 8.507059e+37  ;;  %v2126_v50 = vor.u32 1.1754944e-38, %v2125_v45  ;;  %v6308_v48 = vld [vmem:[#allocation18_spill] sm:$0xff]  ;;  %v6309_v33 = vld [vmem:[#allocation73_spill] sm:$0xff] }
 0x285   : > { %v2082_v10 = vsel %vm2081_vm0, %v3591_v7, %v2078_v61  ;;  %v2283_v56 = vand.u32 2147483647, %v5766_v60  ;;  %v2151_v51 = vadd.f32 0.4994258, %v2150_v25  ;;  %vm2279_vm2 = vweird.f32 %v5766_v60  ;;  %v6310_v8 = vld [vmem:[#allocation22_spill] sm:$0xff]  ;;  %v6311_v61 = vld [vmem:[#allocation64_spill] sm:$0xff] }
 0x286   : > { %2862 = vmatmul.bf16.gmra.mxu2 %v2505_v62  ;;  %v2087_v5 = vsel %vm5772_vm14, %v2086_v34, %v2082_v10  ;;  %v2116_v0 = vsub.f32 1.0, %v2115_v12  ;;  %v2309_v54 = vadd.f32 0.112945676, %v2308_v4  ;;  %v2186_v55 = vmul.f32 %v2185_v30, %v6296_v27 }
 0x287   : > { %v3595_v21 = vpop.eup %3594  ;;  %v2088_v1 = vmul.f32 %v2087_v5, %v6305_v32  ;;  %vm2120_vm3 = vweird.f32 %v3593_v58  ;;  %v2152_v49 = vmul.f32 %v2151_v51, %v4997_v28  ;;  %v2344_v24 = vmul.f32 3.8918573e-05, %v6306_v53 }
 0x288   : > { %v2117_v14 = vmul.f32 %v3593_v58, %v2116_v0  ;;  %v2275_v46 = vmul.f32 %v3595_v21, %v5766_v60  ;;  %v2310_v22 = vmul.f32 %v2309_v54, %v5110_v57  ;;  %v2224_v40 = vmul.f32 3.8918573e-05, %v6307_v19  ;;  %vm2121_vm4 = vmor %vm2119_vm15, %vm2120_vm3 }
 0x289   : > { %v3227_v7 = vclamps-f32 %v2088_v1, 1.0  ;;  %v2438_v47 = vadd.f32 1.0, %v3223_v52  ;;  %v5797_v15 = vadd.f32 1.0, %v2152_v49  ;;  %v2187_v43 = vadd.f32 0.014752088, %v2186_v55 }
 0x28a   : > { %v2118_v36 = vadd.f32 %v3593_v58, %v2117_v14  ;;  %v2276_v16 = vsub.f32 1.0, %v2275_v46  ;;  %v2285_v37 = vand.u32 2147483648, %v5766_v60  ;;  %v2311_v63 = vadd.f32 0.4994258, %v2310_v22 }
 0x28b   : > { %v2442_v28 = vadd.f32 1.0, %v3227_v7  ;;  %vm2280_vm5 = vweird.f32 %v3595_v21  ;;  %3596 = vrcp.f32 %v5797_v15  ;;  %v2345_v3 = vadd.f32 0.001143296, %v2344_v24  ;;  %v6314_v24 = vld [vmem:[#allocation74_spill] sm:$0xff]  ;;  %v6315_v7 = vld [vmem:[#allocation81_spill] sm:$0xff] }
 0x28c   : > { %v2122_v13 = vsel %vm2121_vm4, %v3593_v58, %v2118_v36  ;;  %v2277_v2 = vmul.f32 %v3595_v21, %v2276_v16  ;;  %v2312_v11 = vmul.f32 %v2311_v63, %v5110_v57  ;;  %v2225_v38 = vadd.f32 0.001143296, %v2224_v40  ;;  %vm2281_vm7 = vmor %vm2279_vm2, %vm2280_vm5 }
 0x28d   : > { %v2478_v6 = vmul.f32 %v2438_v47, %v6308_v48  ;;  %v2482_v31 = vmul.f32 %v2442_v28, %v6309_v33  ;;  %v2127_v29 = vsel %vm5782_vm1, %v2126_v50, %v2122_v13  ;;  %v2188_v9 = vmul.f32 %v2187_v43, %v6296_v27  ;;  %v6316_v33 = vld [vmem:[#allocation31_spill] sm:$0xff] }
 0x28e   : > { %v2128_v39 = vmul.f32 %v2127_v29, %v6310_v8  ;;  %v2278_v23 = vadd.f32 %v3595_v21, %v2277_v2  ;;  %vm2284_vm6 = vcmp.eq.f32.partialorder %v2283_v56, 8.507059e+37  ;;  %v5811_v59 = vadd.f32 1.0, %v2312_v11 }
 0x28f   : > { %v2506_v45 = vpack.c.bf16 %v2482_v31, %v2478_v6  ;;  %v2286_v57 = vor.u32 1.1754944e-38, %v2285_v37  ;;  %v2189_v18 = vadd.f32 0.112945676, %v2188_v9  ;;  %v2346_v44 = vmul.f32 %v2345_v3, %v6306_v53 }
 0x290   : > { %v3228_v17 = vclamps-f32 %v2128_v39, 1.0  ;;  %v2282_v34 = vsel %vm2281_vm7, %v3595_v21, %v2278_v23  ;;  %3598 = vrcp.f32 %v5811_v59  ;;  %v2226_v30 = vmul.f32 %v2225_v38, %v6307_v19 }
 0x291   : > { %v3597_v58 = vpop.eup %3596  ;;  %v2375_v25 = vmul.f32 %v5351_v20, %v6311_v61  ;;  %2896 = vmatmul.bf16.gmra.mxu3 %v2506_v45  ;;  %v2287_v4 = vsel %vm2284_vm6, %v2286_v57, %v2282_v34  ;;  %v2163_v62 = vand.u32 2147483647, %v5797_v15  ;;  %v2190_v60 = vmul.f32 %v2189_v18, %v6296_v27  ;;  %v6317_v45 = vld [vmem:[#allocation71_spill] sm:$0xff] }
 0x292   : > { %v2302_v52 = vadd.f32 1.1283791, %v5682_v42  ;;  %v2337_v12 = vmul.f32 %v5454_v41, %v6306_v53  ;;  %v2288_v26 = vmul.f32 %v2287_v4, %v5715_v35  ;;  %v2155_v10 = vmul.f32 %v3597_v58, %v5797_v15 }
 0x293   : > { %v2443_v50 = vadd.f32 1.0, %v3228_v17  ;;  %vm2159_vm8 = vweird.f32 %v5797_v15  ;;  %v2191_v56 = vadd.f32 0.4994258, %v2190_v60  ;;  %v2347_v20 = vadd.f32 0.014752088, %v2346_v44 }
 0x294   : > { %v3232_v51 = vclamps-f32 %v2288_v26, 1.0  ;;  %v2156_v5 = vsub.f32 1.0, %v2155_v10  ;;  %v2165_v0 = vand.u32 2147483648, %v5797_v15  ;;  %v2227_v54 = vadd.f32 0.014752088, %v2226_v30  ;;  %v6318_v26 = vld [vmem:[#allocation68_spill] sm:$0xff] }
 0x295   : > { %vm5830_vm9 = vcmp.eq.f32.partialorder %v2163_v62, 8.507059e+37  ;;  %v2192_v41 = vmul.f32 %v2191_v56, %v6296_v27  ;;  %v2348_v42 = vmul.f32 %v2347_v20, %v6306_v53  ;;  %v2384_v35 = vmul.f32 3.8918573e-05, %v6311_v61 }
 0x296   : > { %v3599_v21 = vpop.eup %3598  ;;  %v2447_v32 = vadd.f32 1.0, %v3232_v51  ;;  %v2157_v1 = vmul.f32 %v3597_v58, %v2156_v5  ;;  %vm2160_vm10 = vweird.f32 %v3597_v58  ;;  %v2228_v49 = vmul.f32 %v2227_v54, %v6307_v19 }
 0x297   : > { %v2483_v14 = vmul.f32 %v2443_v50, %v6314_v24  ;;  %v2315_v46 = vmul.f32 %v3599_v21, %v5811_v59  ;;  %v5840_v22 = vadd.f32 1.0, %v2192_v41  ;;  %v2349_v40 = vadd.f32 0.112945676, %v2348_v42  ;;  %vm2161_vm11 = vmor %vm2159_vm8, %vm2160_vm10  ;;  %v6319_v50 = vld [vmem:[#allocation65_spill] sm:$0xff]  ;;  %v6320_v42 = vld [vmem:[#allocation66_spill] sm:$0xff] }
 0x298   : > { %v2487_v47 = vmul.f32 %v2447_v32, %v6315_v7  ;;  %v2158_v43 = vadd.f32 %v3597_v58, %v2157_v1  ;;  %v2229_v36 = vadd.f32 0.112945676, %v2228_v49  ;;  %v2385_v16 = vadd.f32 0.001143296, %v2384_v35 }
 0x299   : > { %v2166_v37 = vor.u32 1.1754944e-38, %v2165_v0  ;;  %v2316_v63 = vsub.f32 1.0, %v2315_v46  ;;  %v2323_v28 = vand.u32 2147483647, %v5811_v59  ;;  %3600 = vrcp.f32 %v5840_v22 }
 0x29a   : > { %v2507_v3 = vpack.c.bf16 %v2487_v47, %v2483_v14  ;;  %v2162_v13 = vsel %vm2161_vm11, %v3597_v58, %v2158_v43  ;;  %v2325_v2 = vand.u32 2147483648, %v5811_v59  ;;  %v2350_v11 = vmul.f32 %v2349_v40, %v6306_v53  ;;  %v6328_v43 = vld [vmem:[#allocation25_spill] sm:$0xff] }
 0x29b   : > { %v2167_v38 = vsel %vm5830_vm9, %v2166_v37, %v2162_v13  ;;  %v2317_v48 = vmul.f32 %v3599_v21, %v2316_v63  ;;  %vm2320_vm12 = vweird.f32 %v3599_v21  ;;  %v2230_v15 = vmul.f32 %v2229_v36, %v6307_v19 }
 0x29c   : > { %v2338_v6 = vadd.f32 0.05243302, %v2337_v12  ;;  %2799 = vmatmul.bf16.gmra.mxu0 %v2507_v3  ;;  %v2168_v31 = vmul.f32 %v2167_v38, %v6316_v33  ;;  %v2351_v29 = vadd.f32 0.4994258, %v2350_v11  ;;  %v2386_v9 = vmul.f32 %v2385_v16, %v6311_v61  ;;  %v2780_v33 = vpop.f32.mrf.mxu0 }
 0x29d   : > { %v2376_v8 = vadd.f32 0.0036580483, %v2375_v25  ;;  %v2318_v39 = vadd.f32 %v3599_v21, %v2317_v48  ;;  %vm2319_vm13 = vweird.f32 %v5811_v59  ;;  %v2231_v23 = vadd.f32 0.4994258, %v2230_v15 }
 0x29e   : > { %v2303_v57 = vmul.f32 %v2302_v52, %v6317_v45  ;;  %vm2321_vm14 = vmor %vm2319_vm13, %vm2320_vm12  ;;  %v2326_v18 = vor.u32 1.1754944e-38, %v2325_v2  ;;  %v2352_v44 = vmul.f32 %v2351_v29, %v6306_v53  ;;  %v2387_v17 = vadd.f32 0.014752088, %v2386_v9  ;;  %v6324_v29 = vld [vmem:[#allocation19_spill] sm:$0xff]  ;;  %v2848_v45 = vpop.f32.mrf.mxu2 }
 0x29f   : > { %v3601_v34 = vpop.eup %3600  ;;  %v3229_v30 = vclamps-f32 %v2168_v31, 1.0  ;;  %v2322_v58 = vsel %vm2321_vm14, %v3599_v21, %v2318_v39  ;;  %vm2324_vm15 = vcmp.eq.f32.partialorder %v2323_v28, 8.507059e+37  ;;  %v2232_v4 = vmul.f32 %v2231_v23, %v6307_v19  ;;  %v6321_v21 = vld [vmem:[#allocation23_spill] sm:$0xff]  ;;  %v2814_v31 = vpop.f32.mrf.mxu1 }
 0x2a0   : > { %v2339_v62 = vmul.f32 %v2338_v6, %v6306_v53  ;;  %v2327_v25 = vsel %vm2324_vm15, %v2326_v18, %v2322_v58  ;;  %v2195_v60 = vmul.f32 %v3601_v34, %v5840_v22  ;;  %v5860_v12 = vadd.f32 1.0, %v2352_v44  ;;  %v5894_v6 = vld [vmem:[%s6023_s6] ss:$0 sm:$0xff] }
 0x2a1   : > { %v2328_v59 = vmul.f32 %v2327_v25, %v2303_v57  ;;  %v5862_v52 = vadd.f32 1.0, %v2232_v4  ;;  %v2181_v10 = vmul.f32 %v6318_v26, %v6296_v27  ;;  %v2218_v56 = vadd.f32 0.05243302, %v6319_v50  ;;  %v2882_v57 = vpop.f32.mrf.mxu3  ;;  %v6325_v26 = vld [vmem:[#allocation78_spill] sm:$0xff] }
 0x2a2   : > { %v2196_v20 = vsub.f32 1.0, %v2195_v60  ;;  %v2388_v51 = vmul.f32 %v2387_v17, %v6311_v61  ;;  %v2377_v5 = vmul.f32 %v2376_v8, %v6311_v61  ;;  %v2444_v54 = vadd.f32 1.0, %v3229_v30 }
 0x2a3   : > { %v3233_v0 = vclamps-f32 %v2328_v59, 1.0  ;;  %3602 = vrcp.f32 %v5860_v12  ;;  %v2340_v55 = vadd.f32 0.18741608, %v2339_v62  ;;  %vm2200_vm0 = vweird.f32 %v3601_v34 }
 0x2a4   : > { %v2197_v41 = vmul.f32 %v3601_v34, %v2196_v20  ;;  %3604 = vrcp.f32 %v5862_v52  ;;  %v764_v35 = vmul.f32 0.5, %v6320_v42  ;;  %v768_v27 = vmul.f32 0.5, %v6321_v21 }
 0x2a5   : > { %v2448_v32 = vadd.f32 1.0, %v3233_v0  ;;  %v2205_v1 = vand.u32 2147483648, %v5840_v22  ;;  %vm2199_vm1 = vweird.f32 %v5840_v22  ;;  %v2203_v24 = vand.u32 2147483647, %v5840_v22 }
 0x2a6   : > { %v2198_v49 = vadd.f32 %v3601_v34, %v2197_v41  ;;  %v2389_v14 = vadd.f32 0.112945676, %v2388_v51  ;;  %v2219_v46 = vmul.f32 %v2218_v56, %v6307_v19  ;;  %v2378_v40 = vadd.f32 0.05243302, %v2377_v5  ;;  %vm5877_vm2 = vmor %vm2199_vm1, %vm2200_vm0 }
 0x2a7   : > { %v2484_v7 = vmul.f32 %v2444_v54, %v764_v35  ;;  %v2488_v47 = vmul.f32 %v2448_v32, %v768_v27  ;;  %v2182_v36 = vadd.f32 1.1283791, %v2181_v10  ;;  %v2341_v16 = vmul.f32 %v2340_v55, %v6306_v53  ;;  %v2816_v41 = vpop.f32.mrf.mxu1  ;;  %v2850_v32 = vpop.f32.mrf.mxu2 }
 0x2a8   : > { %v2202_v37 = vsel %vm5877_vm2, %v3601_v34, %v2198_v49  ;;  %v2390_v63 = vmul.f32 %v2389_v14, %v6311_v61  ;;  %v2206_v3 = vor.u32 1.1754944e-38, %v2205_v1  ;;  %vm2204_vm3 = vcmp.eq.f32.partialorder %v2203_v24, 8.507059e+37 }
 0x2a9   : > { %v3603_v28 = vpop.eup %3602  ;;  %v2508_v22 = vpack.c.bf16 %v2488_v47, %v2484_v7  ;;  %v2220_v38 = vadd.f32 0.18741608, %v2219_v46  ;;  %v2379_v48 = vmul.f32 %v2378_v40, %v6311_v61  ;;  %v2183_v9 = vmul.f32 %v2182_v36, %v6324_v29 }
 0x2aa   : > { %v5885_v13 = vpop.eup %3604  ;;  %v2355_v2 = vmul.f32 %v3603_v28, %v5860_v12  ;;  %v2391_v11 = vadd.f32 0.4994258, %v2390_v63  ;;  %v2207_v15 = vsel %vm2204_vm3, %v2206_v3, %v2202_v37  ;;  %v2342_v8 = vadd.f32 1.1283791, %v2341_v16  ;;  %v6329_v16 = vld [vmem:[#allocation75_spill] sm:$0xff]  ;;  %v6330_v3 = vld [vmem:[#allocation70_spill] sm:$0xff] }
 0x2ab   : > { %2833 = vmatmul.bf16.gmra.mxu1 %v2508_v22  ;;  %v2235_v53 = vmul.f32 %v5885_v13, %v5862_v52  ;;  %v2363_v18 = vand.u32 2147483647, %v5860_v12  ;;  %v2365_v44 = vand.u32 2147483648, %v5860_v12  ;;  %v2781_v34 = vadd.f32 %v5894_v6, %v2780_v33 }
 0x2ac   : > { %v2356_v39 = vsub.f32 1.0, %v2355_v2  ;;  %v2392_v23 = vmul.f32 %v2391_v11, %v6311_v61  ;;  %v2208_v30 = vmul.f32 %v2207_v15, %v2183_v9  ;;  %vm2360_vm4 = vweird.f32 %v3603_v28 }
 0x2ad   : > { %v2236_v17 = vsub.f32 1.0, %v2235_v53  ;;  %v2221_v62 = vmul.f32 %v2220_v38, %v6307_v19  ;;  %v2380_v25 = vadd.f32 0.18741608, %v2379_v48  ;;  %v2815_v59 = vadd.f32 %v2814_v31, %v2781_v34 }
 0x2ae   : > { %v2357_v58 = vmul.f32 %v3603_v28, %v2356_v39  ;;  %v5901_v4 = vadd.f32 1.0, %v2392_v23  ;;  %v2343_v10 = vmul.f32 %v2342_v8, %v6325_v26  ;;  %vm2359_vm5 = vweird.f32 %v5860_v12  ;;  %v2782_v12 = vpop.f32.mrf.mxu0 }
 0x2af   : > { %v2237_v60 = vmul.f32 %v5885_v13, %v2236_v17  ;;  %vm2361_vm6 = vmor %vm2359_vm5, %vm2360_vm4  ;;  %v2366_v56 = vor.u32 1.1754944e-38, %v2365_v44  ;;  %vm2240_vm7 = vweird.f32 %v5885_v13  ;;  %v2849_v51 = vadd.f32 %v2848_v45, %v2815_v59  ;;  %v2819_v8 = vpop.f32.mrf.mxu1  ;;  %v2853_v45 = vpop.f32.mrf.mxu2  ;;  %v6331_v17 = vld [vmem:[#allocation83_spill] sm:$0xff] }
 0x2b0   : > { %v2358_v50 = vadd.f32 %v3603_v28, %v2357_v58  ;;  %3606 = vrcp.f32 %v5901_v4  ;;  %v3230_v5 = vclamps-f32 %v2208_v30, 1.0  ;;  %vm2364_vm8 = vcmp.eq.f32.partialorder %v2363_v18, 8.507059e+37 }
 0x2b1   : > { %v2238_v20 = vadd.f32 %v5885_v13, %v2237_v60  ;;  %v2245_v0 = vand.u32 2147483648, %v5862_v52  ;;  %vm2239_vm9 = vweird.f32 %v5862_v52  ;;  %v2243_v55 = vand.u32 2147483647, %v5862_v52  ;;  %v2884_v52 = vpop.f32.mrf.mxu3 }
 0x2b2   : > { %v2362_v19 = vsel %vm2361_vm6, %v3603_v28, %v2358_v50  ;;  %vm5913_vm10 = vmor %vm2239_vm9, %vm2240_vm7  ;;  %v2783_v21 = vadd.f32 %v5894_v6, %v2782_v12  ;;  %v2883_v27 = vadd.f32 %v2882_v57, %v2849_v51  ;;  %v2222_v1 = vadd.f32 1.1283791, %v2221_v62 }
 0x2b3   : > { %v2367_v54 = vsel %vm2364_vm8, %v2366_v56, %v2362_v19  ;;  %v2381_v49 = vmul.f32 %v2380_v25, %v6311_v61  ;;  %v2242_v24 = vsel %vm5913_vm10, %v5885_v13, %v2238_v20  ;;  %v2445_v40 = vadd.f32 1.0, %v3230_v5  ;;  %v6332_v20 = vld [vmem:[#allocation20_spill] sm:$0xff]  ;;  %v6333_v5 = vld [vmem:[#allocation79_spill] sm:$0xff] }
 0x2b4   : > { %v2368_v42 = vmul.f32 %v2367_v54, %v2343_v10  ;;  %v2246_v7 = vor.u32 1.1754944e-38, %v2245_v0  ;;  %v2817_v47 = vadd.f32 %v2816_v41, %v2783_v21  ;;  %2907 = vst [vmem:[%s5924_s30] sm:$0xff] %v2883_v27  ;;  %v765_v36 = vmul.f32 0.5, %v6328_v43 }
 0x2b5   : > { %vm2244_vm11 = vcmp.eq.f32.partialorder %v2243_v55, 8.507059e+37  ;;  %v769_v37 = vmul.f32 0.5, %v6329_v16  ;;  %v2223_v13 = vmul.f32 %v2222_v1, %v6330_v3  ;;  %v2382_v2 = vadd.f32 1.1283791, %v2381_v49 }
 0x2b6   : > { %v3607_v14 = vpop.eup %3606  ;;  %v3234_v46 = vclamps-f32 %v2368_v42, 1.0  ;;  %v2247_v28 = vsel %vm2244_vm11, %v2246_v7, %v2242_v24  ;;  %v2851_v22 = vadd.f32 %v2850_v32, %v2817_v47  ;;  %v2485_v38 = vmul.f32 %v2445_v40, %v765_v36  ;;  %v2785_v9 = vpop.f32.mrf.mxu0 }
 0x2b7   : > { %v2395_v61 = vmul.f32 %v3607_v14, %v5901_v4  ;;  %v2405_v15 = vand.u32 2147483648, %v5901_v4  ;;  %v2248_v33 = vmul.f32 %v2247_v28, %v2223_v13  ;;  %vm2400_vm12 = vweird.f32 %v3607_v14  ;;  %v2821_v54 = vpop.f32.mrf.mxu1  ;;  %v2855_v55 = vpop.f32.mrf.mxu2 }
 0x2b8   : > { %v2449_v63 = vadd.f32 1.0, %v3234_v46  ;;  %v2885_v53 = vadd.f32 %v2884_v52, %v2851_v22  ;;  %v2403_v29 = vand.u32 2147483647, %v5901_v4  ;;  %v2786_v23 = vadd.f32 %v5894_v6, %v2785_v9 }
 0x2b9   : > { %v2396_v11 = vsub.f32 1.0, %v2395_v61  ;;  %vm2399_vm13 = vweird.f32 %v5901_v4  ;;  %v2406_v18 = vor.u32 1.1754944e-38, %v2405_v15  ;;  %v2383_v34 = vmul.f32 %v2382_v2, %v6331_v17  ;;  %v2887_v62 = vpop.f32.mrf.mxu3 }
 0x2ba   : > { %v2489_v48 = vmul.f32 %v2449_v63, %v769_v37  ;;  %2908 = vst [vmem:[%s5924_s30 + $0x8] sm:$0xff] %v2885_v53  ;;  %vm2401_vm14 = vmor %vm2399_vm13, %vm2400_vm12  ;;  %v2820_v44 = vadd.f32 %v2819_v8, %v2786_v23  ;;  %v3231_v30 = vclamps-f32 %v2248_v33, 1.0  ;;  %vm2404_vm15 = vcmp.eq.f32.partialorder %v2403_v29, 8.507059e+37 }
 0x2bb   : > { %v2397_v31 = vmul.f32 %v3607_v14, %v2396_v11  ;;  %v766_v51 = vmul.f32 0.5, %v6332_v20  ;;  %v770_v19 = vmul.f32 0.5, %v6333_v5 }
 0x2bc   : > { %v2509_v39 = vpack.c.bf16 %v2489_v48, %v2485_v38  ;;  %v2854_v60 = vadd.f32 %v2853_v45, %v2820_v44  ;;  %v2446_v50 = vadd.f32 1.0, %v3231_v30 }
 0x2bd   : > { %v2398_v57 = vadd.f32 %v3607_v14, %v2397_v31 }
 0x2be   : > { %2867 = vmatmul.bf16.gmra.mxu2 %v2509_v39  ;;  %v2888_v26 = vadd.f32 %v2887_v62, %v2854_v60  ;;  %v2787_v56 = vpop.f32.mrf.mxu0  ;;  %v2486_v41 = vmul.f32 %v2446_v50, %v766_v51 }
 0x2bf   : > { %v2402_v58 = vsel %vm2401_vm14, %v3607_v14, %v2398_v57  ;;  %v2788_v4 = vadd.f32 %v5894_v6, %v2787_v56  ;;  %v2824_v24 = vpop.f32.mrf.mxu1 }
 0x2c0   : > { %v2407_v25 = vsel %vm2404_vm15, %v2406_v18, %v2402_v58  ;;  %2909 = vst [vmem:[%s5924_s30 + $0x10] sm:$0xff] %v2888_v26 }
 0x2c1   : > { %v2408_v59 = vmul.f32 %v2407_v25, %v2383_v34  ;;  %v2822_v12 = vadd.f32 %v2821_v54, %v2788_v4  ;;  %v2889_v27 = vpop.f32.mrf.mxu3 }
 0x2c3   : > { %v3235_v10 = vclamps-f32 %v2408_v59, 1.0  ;;  %v2856_v35 = vadd.f32 %v2855_v55, %v2822_v12 }
 0x2c5   : > { %v2450_v0 = vadd.f32 1.0, %v3235_v10  ;;  %v2890_v32 = vadd.f32 %v2889_v27, %v2856_v35 }
 0x2c6   : > { %v2790_v1 = vpop.f32.mrf.mxu0 }
 0x2c7   : > { %v2490_v42 = vmul.f32 %v2450_v0, %v770_v19  ;;  %2910 = vst [vmem:[%s5924_s30 + $0x18] sm:$0xff] %v2890_v32  ;;  %v2791_v49 = vadd.f32 %v5894_v6, %v2790_v1  ;;  %v2826_v36 = vpop.f32.mrf.mxu1 }
 0x2c9   : > { %v2510_v21 = vpack.c.bf16 %v2490_v42, %v2486_v41  ;;  %v2825_v14 = vadd.f32 %v2824_v24, %v2791_v49 }
 0x2cb   : > { %2901 = vmatmul.bf16.gmra.mxu3 %v2510_v21  ;;  %v2858_v52 = vpop.f32.mrf.mxu2 }
 0x2cc   : > { %v2859_v40 = vadd.f32 %v2858_v52, %v2825_v14 }
 0x2ce   : > { %v2792_v46 = vpop.f32.mrf.mxu0 }
 0x2cf   : > { %v2793_v7 = vadd.f32 %v5894_v6, %v2792_v46 }
 0x2d1   : > { %v2827_v16 = vadd.f32 %v2826_v36, %v2793_v7 }
 0x2d3   : > { %v2860_v61 = vpop.f32.mrf.mxu2 }
 0x2d4   : > { %v2861_v37 = vadd.f32 %v2860_v61, %v2827_v16 }
 0x2de   : > { %v2892_v47 = vpop.f32.mrf.mxu3 }
 0x2df   : > { %v2893_v43 = vadd.f32 %v2892_v47, %v2859_v40 }
 0x2e1   : > { %2911 = vst [vmem:[%s5924_s30 + $0x20] sm:$0xff] %v2893_v43 }
 0x2e6   : > { %v2894_v63 = vpop.f32.mrf.mxu3  ;;  %v2795_v22 = vpop.f32.mrf.mxu0 }
 0x2e7   : > { %v2895_v28 = vadd.f32 %v2894_v63, %v2861_v37  ;;  %v2796_v3 = vadd.f32 %v5894_v6, %v2795_v22 }
 0x2e9   : > { %2912 = vst [vmem:[%s5924_s30 + $0x28] sm:$0xff] %v2895_v28 }
 0x2ee   : > { %v2797_v38 = vpop.f32.mrf.mxu0 }
 0x2ef   : > { %v2798_v15 = vadd.f32 %v5894_v6, %v2797_v38 }
 0x2f0   : > { %v2829_v13 = vpop.f32.mrf.mxu1 }
 0x2f1   : > { %v2830_v11 = vadd.f32 %v2829_v13, %v2796_v3 }
 0x2f8   : > { %v2831_v31 = vpop.f32.mrf.mxu1 }
 0x2f9   : > { %v2832_v9 = vadd.f32 %v2831_v31, %v2798_v15 }
 0x309   : > { %v2863_v2 = vpop.f32.mrf.mxu2 }
 0x30a   : > { %v2864_v48 = vadd.f32 %v2863_v2, %v2830_v11 }
 0x311   : > { %v2865_v29 = vpop.f32.mrf.mxu2 }
 0x312   : > { %v2866_v8 = vadd.f32 %v2865_v29, %v2832_v9 }
 0x314   : > { %v2897_v53 = vpop.f32.mrf.mxu3 }
 0x315   : > { %v2898_v33 = vadd.f32 %v2897_v53, %v2864_v48 }
 0x317   : > { %2913 = vst [vmem:[%s5924_s30 + $0x30] sm:$0xff] %v2898_v33 }
 0x319   : > { %v2800_v45 = vpop.f32.mrf.mxu0 }
 0x31a   : > { %v2801_v57 = vadd.f32 %v5894_v6, %v2800_v45 }
 0x31c   : > { %v2899_v39 = vpop.f32.mrf.mxu3 }
 0x31d   : > { %v2900_v23 = vadd.f32 %v2899_v39, %v2866_v8 }
 0x31f   : > { %2914 = vst [vmem:[%s5924_s30 + $0x38] sm:$0xff] %v2900_v23 }
 0x321   : > { %v2802_v34 = vpop.f32.mrf.mxu0 }
 0x322   : > { %v2803_v58 = vadd.f32 %v5894_v6, %v2802_v34 }
 0x328   : > { %v2834_v18 = vpop.f32.mrf.mxu1 }
 0x329   : > { %v2835_v17 = vadd.f32 %v2834_v18, %v2801_v57 }
 0x330   : > { %v2836_v60 = vpop.f32.mrf.mxu1 }
 0x331   : > { %v2837_v26 = vadd.f32 %v2836_v60, %v2803_v58 }
 0x341   : > { %v2868_v44 = vpop.f32.mrf.mxu2 }
 0x342   : > { %v2869_v30 = vadd.f32 %v2868_v44, %v2835_v17 }
 0x349   : > { %v2870_v59 = vpop.f32.mrf.mxu2 }
 0x34a   : > { %v2871_v10 = vadd.f32 %v2870_v59, %v2837_v26 }
 0x34e   : > { %v2902_v62 = vpop.f32.mrf.mxu3 }
 0x34f   : > { %v2903_v25 = vadd.f32 %v2902_v62, %v2869_v30 }
 0x351   : > { %2915 = vst [vmem:[%s5924_s30 + $0x40] sm:$0xff] %v2903_v25 }
 0x355   : > { %2924 = sbr.rel (!%p3960_p11) target bundleno = 889 (0x379), region = 72 }
 0x356   : > { %v2904_v50 = vpop.f32.mrf.mxu3 }
 0x357   : > { %v2905_v56 = vadd.f32 %v2904_v50, %v2871_v10 }
 0x359   : > { %2916 = vst [vmem:[%s5924_s30 + $0x48] sm:$0xff] %v2905_v56 }
 0x35a   : > { %s6345_s28 = smov (!%p2927_p6, %s2926_s28), 10 }
 0x35b   : > { %s3364_s17 = sshll.u32 %s6345_s28, 3 }
 0x35c   : > { %s2930_s1 = ssub.s32 80, %s3364_s17 }
 0x35d   : > { %s2931_s8 = sshll.u32 %s2930_s1, 4 }
 0x35e   : > { %2932 = vsyncadd %s2918_s18, %s2931_s8  ;;  %p5963_p5 = scmp.ne.s32.totalorder %s3364_s17, 0  ;;  %s3436_s15 = smul.u32 80, %s3929_s27 }
 0x35f   : > { %s2937_s9 = sshll.u32 %s5924_s30, 4  ;;  %s3368_s16 = sshll.u32 %s6345_s28, 7  ;;  %s5973_s9 = int_to_ptr.vmem [resolvable:$true] %s2937_s9 }
 0x360   : > { %s2935_s20 = scalar_lea.hbm %s6024_s7, %s3436_s15  ;;  %s3767_s21 = sshra.s32 %s5973_s9, 4  ;;  %s3768_s21 = int_to_ptr.vmem [resolvable:$true] %s3767_s21 }
 0x361   : > { %s2939_s19 = sshll.u32 %s2935_s20, 4  ;;  %s3769_s11 = sshrl.u32 %s3368_s16, 4  ;;  %s5975_s19 = int_to_ptr.hbm [resolvable:$true] %s2939_s19 }
 0x362   : > { %s3774_s14 = scalar_lea.vmem %s3768_s21, %s3769_s11  ;;  %s3865_s27 = smov [#allocation11]  }
 0x363   : > { %p3775_p11 = scmp.ne.s32.totalorder %s3768_s21, %s3774_s14  ;;  %s3778_s30 = scalar_lea.vmem %s3865_s27, 160 }
 0x364   : > { %p3780_p1 = scmp.lt.s32.totalorder %s3778_s30, %s3774_s14 }
 0x365   : > { %p3776_p9 = pnand %p3775_p11, %p5963_p5 }
 0x367   : > { %p3777_p10 = pneg %p3776_p9 }
 0x369   : > { %p3782_p0 = pnand %p3780_p1, %p3777_p10 }
 0x36b   : > { %3785 = shalt.err (!%p3782_p0)
}
 0x36c   : > { %s3786_s10 = sshra.s32 %s5975_s19, 4  ;;  %s3797_s15 = scalar_lea.hbm %s6024_s7, 136  ;;  %s3787_s10 = int_to_ptr.hbm [resolvable:$true] %s3786_s10 }
 0x36d   : > { %s3793_s17 = scalar_lea.hbm %s3787_s10, %s3769_s11  ;;  %p3798_p4 = scmp.lt.s32.totalorder %s3787_s10, %s6024_s7 }
 0x36e   : > { %p3794_p3 = scmp.ne.s32.totalorder %s3787_s10, %s3793_s17  ;;  %p3799_p12 = scmp.lt.s32.totalorder %s3797_s15, %s3793_s17 }
 0x370   : > { %p3795_p7 = pnand %p3794_p3, %p5963_p5  ;;  %p3800_p13 = por %p3799_p12, %p3798_p4 }
 0x372   : > { %p3796_p8 = pneg %p3795_p7 }
 0x374   : > { %p3801_p2 = pnand %p3800_p13, %p3796_p8 }
 0x376   : > { %3804 = shalt.err (!%p3801_p2)
}
 0x377   : > { %s3866_s20 = smov 128   ;;  %s3867_s21 = smov 8  }
 0x378   : > { %2945 = dma.vmem_to_hbm [thread:$0]  (%p5963_p5), %s5973_s9, %s3368_s16, %s5975_s19, %s2918_s18, %s3866_s20, %s3866_s20, %s3867_s21  }
 0x379 PF: > { %s2954_s11 = sand.u32 1, %s3840_s2   ;;  %p6335_p6 = scmp.ne.s32.totalorder %s6080_s13, 0 }
 0x37a   : > { %p6336_p11 = scmp.ge.s32.totalorder %s3852_s26, 2  ;;  %s2955_s14 = scalar_lea.sflag [#allocation4], %s2954_s11 }
 0x37c   : > { %p3471_p9 = pnand %p6336_p11, %p6335_p6 }
 0x37e   : > { %p3472_p10 = pneg %p3471_p9 }
 0x380   : > { %3835 = dma.done.wait (%p3472_p10), %s2955_s14, 1280  }
 0x381   : > { %3837 = vsyncadd (%p3472_p10), %s2955_s14, 4294966016  ;;  %s6337_s12 = sld [smem:[#allocation16_spill]]  ;;  %p22_p1 = scmp.ge.s32.totalorder %s3933_s29, 4  }
 0x382   : > { %s6338_s2 = smov %s3844_s24  ;;  %s6339_s24 = smov %s3848_s25 }
 0x383   : > { %s6341_s26 = smov %s3933_s29  ;;  %24 = sbr.rel (!%p22_p1) target bundleno = 10 (0xa), region = 109 }
 0x387   : > { %s6340_s25 = smov %s6337_s12 }
 0x388   :  { %2961 = vsyncpa [#allocation3], 1 }
 0x389   :  { %2963 = vsyncpa [#allocation3 + $0x1], 1 }
 0x38a   :  { %2964 = vsyncpa [#allocation6], 1 }
 0x38b   :  { %2965 = vsyncpa [#allocation9], 1 }
 0x38c   :  { %2966 = vsyncpa [#allocation4], 1 }
 0x38d   :  { %2968 = vsyncpa [#allocation4 + $0x1], 1 }

</bundles_post_ra>
